<compile_context>
chip_gen: v5e
topology: v5e:2x2
jax: 0.10.0
libtpu: 0.0.40
codegen_flags: <defaults>
</compile_context>

<pallas_src>
import functools

import jax
import jax.numpy as jnp
from jax.experimental import pallas as pl
from jax.experimental.pallas import tpu as pltpu


def _mysconv_kernel(x_ref, w_ref, o_ref, cat_ref, acc_ref, *, stride, eps):
    # x_ref  : (B, H, W, Cin)          unpadded input tile
    # w_ref  : (3, 3*Cin, Cout)        kw-fused conv weights (rows ordered (kw, cin))
    # o_ref  : (B, Ho, Wo, Cout)       output tile
    # cat_ref: (B, H+2, Wo, 3*Cin)     VMEM scratch: zero-padded, kw-concatenated slab
    # acc_ref: (B*Ho*Wo, Cout) f32     VMEM scratch: conv accumulator
    B, H, W, Cin = x_ref.shape
    _, Ho, Wo, Cout = o_ref.shape
    s = stride

    # ---- Build the zero-padded, kw-concatenated slab in VMEM -------------------
    # Invariant: cat[b, hp, wo, kw*Cin + c] == x_padded[b, hp, s*wo + kw, c], where
    # x_padded is x with a 1-pixel zero border.  All padding positions are re-zeroed
    # every grid step (scratch contents from a previous step are never reused).
    zero_row = jnp.zeros((B, 1, Wo, 3 * Cin), jnp.float32)
    cat_ref[:, 0:1, :, :] = zero_row                       # padded row hp = 0
    cat_ref[:, H + 1:H + 2, :, :] = zero_row               # padded row hp = H+1

    for kw in range(3):
        c0, c1 = kw * Cin, (kw + 1) * Cin
        # Valid output columns wo satisfy 1 <= s*wo + kw <= W.
        lo = max(0, -((kw - 1) // s))
        hi = min(Wo - 1, (W - kw) // s)
        if lo > 0:                                          # left zero padding
            cat_ref[:, 1:H + 1, 0:lo, c0:c1] = jnp.zeros((B, H, lo, Cin), jnp.float32)
        if hi < Wo - 1:                                     # right zero padding
            cat_ref[:, 1:H + 1, hi + 1:Wo, c0:c1] = (
                jnp.zeros((B, H, Wo - 1 - hi, Cin), jnp.float32))
        cnt = hi - lo + 1
        if cnt > 0:
            src0 = s * lo + kw - 1
            if s == 1:
                src = x_ref[:, :, src0:src0 + cnt, :]
            else:
                # stride > 1: strided column select (correct but slower; default s=1)
                src = x_ref[:, :, pl.ds(src0, cnt, stride=s), :]
            cat_ref[:, 1:H + 1, lo:hi + 1, c0:c1] = src.astype(jnp.float32)

    # ---- 3x3 conv as 3 MXU matmuls with K = 3*Cin (accumulate in VMEM) ---------
    M = B * Ho * Wo
    for kh in range(3):
        if s == 1:
            patch = cat_ref[:, kh:kh + Ho, :, :]            # (B, Ho, Wo, 3*Cin)
        else:
            patch = cat_ref[:, pl.ds(kh, Ho, stride=s), :, :]
        patch = patch.reshape(M, 3 * Cin)                   # Wo % 8 == 0 -> layout-safe
        d = jnp.dot(patch, w_ref[kh], preferred_element_type=jnp.float32)
        if kh == 0:
            acc_ref[...] = d
        else:
            acc_ref[...] += d
    # NOTE: conv bias intentionally omitted — it cancels in InstanceNorm(affine=False).

    # ---- InstanceNorm2d(affine=False) + ReLU (one-pass statistics) -------------
    acc = acc_ref[...].reshape(B, Ho * Wo, Cout)
    inv_hw = 1.0 / float(Ho * Wo)
    s1 = jnp.sum(acc, axis=1, keepdims=True)                # (B, 1, Cout)
    s2 = jnp.sum(acc * acc, axis=1, keepdims=True)          # (B, 1, Cout)
    mean = s1 * inv_hw
    var = s2 * inv_hw - mean * mean                         # biased variance
    y = (acc - mean) * jax.lax.rsqrt(var + eps)
    y = jnp.maximum(y, 0.0)                                 # ReLU
    o_ref[...] = y.reshape(B, Ho, Wo, Cout).astype(o_ref.dtype)


def mysconv_forward(x_nchw, weight_oihw, bias=None, *, stride=1, eps=1e-5,
                    batch_tile=8):
    """Forward pass of mySConv.

    x_nchw:      (N, Cin, H, W)      PyTorch NCHW input
    weight_oihw: (Cout, Cin, 3, 3)   PyTorch Conv2d weight layout
    bias:        (Cout,) or None.    Accepted for interface parity but unused: a
                 per-channel bias added before InstanceNorm2d(affine=False) shifts
                 the mean and cancels exactly (fp-rounding-level difference only).
    returns:     (N, Cout, Ho, Wo)   NCHW, matching PyTorch semantics
    """
    del bias  # mathematically a no-op before InstanceNorm2d(affine=False)
    N, Cin, H, W = x_nchw.shape
    Cout = weight_oihw.shape[0]
    Ho = (H + 2 - 3) // stride + 1
    Wo = (W + 2 - 3) // stride + 1

    # Batch tile: amortize per-step overhead but keep >= 2 grid steps (v7x megacore).
    bt = max(1, min(batch_tile, (N + 1) // 2))
    grid_n = -(-N // bt)
    n_pad = grid_n * bt

    # NCHW -> NHWC (Cout stays lane-dense in the kernel).  Pad batch with zero
    # images if needed (produces finite zeros; sliced off below).
    x_nhwc = jnp.transpose(x_nchw, (0, 2, 3, 1))
    if n_pad != N:
        x_nhwc = jnp.pad(x_nhwc, ((0, n_pad - N), (0, 0), (0, 0), (0, 0)))

    # OIHW -> (kh, 3*Cin, Cout); rows of each (3*Cin, Cout) slice are ordered
    # (kw, cin), matching the kernel's channel-concatenation order.
    w_fused = jnp.transpose(weight_oihw, (2, 3, 1, 0)).reshape(3, 3 * Cin, Cout)

    kernel = functools.partial(_mysconv_kernel, stride=stride, eps=eps)

    out_nhwc = pl.pallas_call(
        kernel,
        out_shape=jax.ShapeDtypeStruct((n_pad, Ho, Wo, Cout), x_nchw.dtype),
        grid_spec=pltpu.PrefetchScalarGridSpec(
            num_scalar_prefetch=0,
            grid=(grid_n,),
            in_specs=[
                pl.BlockSpec((bt, H, W, Cin), lambda n: (n, 0, 0, 0)),
                pl.BlockSpec((3, 3 * Cin, Cout), lambda n: (0, 0, 0)),
            ],
            out_specs=pl.BlockSpec((bt, Ho, Wo, Cout), lambda n: (n, 0, 0, 0)),
            scratch_shapes=[
                pltpu.VMEM((bt, H + 2, Wo, 3 * Cin), jnp.float32),  # padded kw-fused slab
                pltpu.VMEM((bt * Ho * Wo, Cout), jnp.float32),      # f32 conv accumulator
            ],
        ),
        compiler_params=pltpu.CompilerParams(
            dimension_semantics=("parallel",),
            vmem_limit_bytes=32 * 1024 * 1024,
        ),
    )(x_nhwc, w_fused)

    out_nhwc = out_nhwc[:N]
    # Back to NCHW for PyTorch parity.  The kernel's out_spec stays NHWC
    # (lane-dense Cout=128); the final transpose is a cheap XLA op outside it.
    # TODO(synk): skip this transpose if the surrounding model can stay NHWC.
    return jnp.transpose(out_nhwc, (0, 3, 1, 2))


if __name__ == "__main__":
    # Module defaults: num_filter=128, in_channels=128, stride=1.
    N, Cin, Cout, H, W = 4, 128, 128, 16, 16
    stride = 1

    key = jax.random.PRNGKey(0)
    kx, kw_, kb = jax.random.split(key, 3)

    x = jax.random.normal(kx, (N, Cin, H, W), dtype=jnp.float32)
    # Deterministic Conv2d-style init (uniform in +/- 1/sqrt(fan_in)).
    fan_in = Cin * 3 * 3
    bound = 1.0 / (fan_in ** 0.5)
    weight = jax.random.uniform(kw_, (Cout, Cin, 3, 3),
                                minval=-bound, maxval=bound, dtype=jnp.float32)
    bias = jax.random.uniform(kb, (Cout,),
                              minval=-bound, maxval=bound, dtype=jnp.float32)

    out = mysconv_forward(x, weight, bias, stride=stride)
    jax.block_until_ready(out)

    # Reference: XLA conv (with bias) + InstanceNorm2d(affine=False) + ReLU.
    ref_conv = jax.lax.conv_general_dilated(
        x, weight, window_strides=(stride, stride), padding=((1, 1), (1, 1)),
        dimension_numbers=("NCHW", "OIHW", "NCHW")) + bias[None, :, None, None]
    ref_mean = jnp.mean(ref_conv, axis=(2, 3), keepdims=True)
    ref_var = jnp.mean((ref_conv - ref_mean) ** 2, axis=(2, 3), keepdims=True)
    ref = jnp.maximum((ref_conv - ref_mean) * jax.lax.rsqrt(ref_var + 1e-5), 0.0)

    assert out.shape == (N, Cout, H // stride, W // stride)
    max_err = float(jnp.max(jnp.abs(out - ref)))
    assert max_err < 2e-3, f"max abs error vs reference: {max_err}"
    assert bool(jnp.all(out >= 0.0))  # ReLU output is non-negative
    print("KERNEL_OK")
</pallas_src>

<mosaic_0001>
module attributes {stable_mosaic.version = 11 : i64} {
  func.func @_mysconv_kernel(%arg0: i32, %arg1: memref<2x16x16x128xf32, #tpu.memory_space<vmem>>, %arg2: memref<3x384x128xf32, #tpu.memory_space<vmem>>, %arg3: memref<2x16x16x128xf32, #tpu.memory_space<vmem>>, %arg4: memref<2x18x16x384xf32, #tpu.memory_space<vmem>>, %arg5: memref<512x128xf32, #tpu.memory_space<vmem>>) attributes {dimension_semantics = [#tpu.dimension_semantics<parallel>], iteration_bounds = array<i64: 2>, scalar_prefetch = 0 : i64, scratch_operands = 2 : i64, tpu.core_type = #tpu.core_type<tc>, window_params = [{transform_indices = @transform_0, window_bounds = array<i64: 2, 16, 16, 128>}, {pipeline_mode = #tpu.pipeline_mode<synchronous>, transform_indices = @transform_1, window_bounds = array<i64: 3, 384, 128>}, {transform_indices = @transform_2, window_bounds = array<i64: 2, 16, 16, 128>}]} {
    %cst = arith.constant 0.000000e+00 : f32
    %0 = vector.broadcast %cst : f32 to vector<2x1x16x384xf32>
    %c0 = arith.constant 0 : index
    %c0_0 = arith.constant 0 : index
    %c0_1 = arith.constant 0 : index
    %c0_2 = arith.constant 0 : index
    %1 = vector.load %arg4[%c0, %c0_0, %c0_1, %c0_2] : memref<2x18x16x384xf32, #tpu.memory_space<vmem>>, vector<2x1x16x384xf32>
    tpu.vector_store %arg4[%c0, %c0_0, %c0_1, %c0_2], %0 {strides = array<i32>} : memref<2x18x16x384xf32, #tpu.memory_space<vmem>>, vector<2x1x16x384xf32>,
    %c0_3 = arith.constant 0 : index
    %c17 = arith.constant 17 : index
    %c0_4 = arith.constant 0 : index
    %c0_5 = arith.constant 0 : index
    %2 = vector.load %arg4[%c0_3, %c17, %c0_4, %c0_5] : memref<2x18x16x384xf32, #tpu.memory_space<vmem>>, vector<2x1x16x384xf32>
    tpu.vector_store %arg4[%c0_3, %c17, %c0_4, %c0_5], %0 {strides = array<i32>} : memref<2x18x16x384xf32, #tpu.memory_space<vmem>>, vector<2x1x16x384xf32>,
    %cst_6 = arith.constant 0.000000e+00 : f32
    %3 = vector.broadcast %cst_6 : f32 to vector<2x16x1x128xf32>
    %c0_7 = arith.constant 0 : index
    %c1 = arith.constant 1 : index
    %c0_8 = arith.constant 0 : index
    %c0_9 = arith.constant 0 : index
    %4 = vector.load %arg4[%c0_7, %c1, %c0_8, %c0_9] : memref<2x18x16x384xf32, #tpu.memory_space<vmem>>, vector<2x16x1x128xf32>
    tpu.vector_store %arg4[%c0_7, %c1, %c0_8, %c0_9], %3 {strides = array<i32>} : memref<2x18x16x384xf32, #tpu.memory_space<vmem>>, vector<2x16x1x128xf32>,
    %c0_10 = arith.constant 0 : index
    %c0_11 = arith.constant 0 : index
    %c0_12 = arith.constant 0 : index
    %c0_13 = arith.constant 0 : index
    %5 = vector.load %arg1[%c0_10, %c0_11, %c0_12, %c0_13] : memref<2x16x16x128xf32, #tpu.memory_space<vmem>>, vector<2x16x15x128xf32>
    %c0_14 = arith.constant 0 : index
    %c1_15 = arith.constant 1 : index
    %c1_16 = arith.constant 1 : index
    %c0_17 = arith.constant 0 : index
    %6 = vector.load %arg4[%c0_14, %c1_15, %c1_16, %c0_17] : memref<2x18x16x384xf32, #tpu.memory_space<vmem>>, vector<2x16x15x128xf32>
    tpu.vector_store %arg4[%c0_14, %c1_15, %c1_16, %c0_17], %5 {strides = array<i32>} : memref<2x18x16x384xf32, #tpu.memory_space<vmem>>, vector<2x16x15x128xf32>,
    %c0_18 = arith.constant 0 : index
    %c0_19 = arith.constant 0 : index
    %c0_20 = arith.constant 0 : index
    %c0_21 = arith.constant 0 : index
    %7 = vector.load %arg1[%c0_18, %c0_19, %c0_20, %c0_21] : memref<2x16x16x128xf32, #tpu.memory_space<vmem>>, vector<2x16x16x128xf32>
    %c0_22 = arith.constant 0 : index
    %c1_23 = arith.constant 1 : index
    %c0_24 = arith.constant 0 : index
    %c128 = arith.constant 128 : index
    %8 = vector.load %arg4[%c0_22, %c1_23, %c0_24, %c128] : memref<2x18x16x384xf32, #tpu.memory_space<vmem>>, vector<2x16x16x128xf32>
    tpu.vector_store %arg4[%c0_22, %c1_23, %c0_24, %c128], %7 {strides = array<i32>} : memref<2x18x16x384xf32, #tpu.memory_space<vmem>>, vector<2x16x16x128xf32>,
    %cst_25 = arith.constant 0.000000e+00 : f32
    %9 = vector.broadcast %cst_25 : f32 to vector<2x16x1x128xf32>
    %c0_26 = arith.constant 0 : index
    %c1_27 = arith.constant 1 : index
    %c15 = arith.constant 15 : index
    %c256 = arith.constant 256 : index
    %10 = vector.load %arg4[%c0_26, %c1_27, %c15, %c256] : memref<2x18x16x384xf32, #tpu.memory_space<vmem>>, vector<2x16x1x128xf32>
    tpu.vector_store %arg4[%c0_26, %c1_27, %c15, %c256], %9 {strides = array<i32>} : memref<2x18x16x384xf32, #tpu.memory_space<vmem>>, vector<2x16x1x128xf32>,
    %c0_28 = arith.constant 0 : index
    %c0_29 = arith.constant 0 : index
    %c1_30 = arith.constant 1 : index
    %c0_31 = arith.constant 0 : index
    %11 = vector.load %arg1[%c0_28, %c0_29, %c1_30, %c0_31] : memref<2x16x16x128xf32, #tpu.memory_space<vmem>>, vector<2x16x15x128xf32>
    %c0_32 = arith.constant 0 : index
    %c1_33 = arith.constant 1 : index
    %c0_34 = arith.constant 0 : index
    %c256_35 = arith.constant 256 : index
    %12 = vector.load %arg4[%c0_32, %c1_33, %c0_34, %c256_35] : memref<2x18x16x384xf32, #tpu.memory_space<vmem>>, vector<2x16x15x128xf32>
    tpu.vector_store %arg4[%c0_32, %c1_33, %c0_34, %c256_35], %11 {strides = array<i32>} : memref<2x18x16x384xf32, #tpu.memory_space<vmem>>, vector<2x16x15x128xf32>,
    %c0_36 = arith.constant 0 : index
    %c0_37 = arith.constant 0 : index
    %c0_38 = arith.constant 0 : index
    %c0_39 = arith.constant 0 : index
    %13 = vector.load %arg4[%c0_36, %c0_37, %c0_38, %c0_39] : memref<2x18x16x384xf32, #tpu.memory_space<vmem>>, vector<2x16x16x384xf32>
    %14 = vector.shape_cast %13 : vector<2x16x16x384xf32> to vector<512x384xf32>
    %c0_40 = arith.constant 0 : index
    %c0_41 = arith.constant 0 : index
    %c0_42 = arith.constant 0 : index
    %15 = vector.load %arg2[%c0_40, %c0_41, %c0_42] : memref<3x384x128xf32, #tpu.memory_space<vmem>>, vector<1x384x128xf32>
    %16 = vector.shape_cast %15 : vector<1x384x128xf32> to vector<384x128xf32>
    %cst_43 = arith.constant dense<0.000000e+00> : vector<512x128xf32>
    %17 = tpu.matmul %14, %16, %cst_43 {dimension_numbers = #tpu.dot_dimension_numbers<[1], [0], [0], [1], [0, 0, 1, 1], [], []>} : vector<512x384xf32>, vector<384x128xf32>, vector<512x128xf32> -> vector<512x128xf32>
    %c0_44 = arith.constant 0 : index
    %c0_45 = arith.constant 0 : index
    %18 = vector.load %arg5[%c0_44, %c0_45] : memref<512x128xf32, #tpu.memory_space<vmem>>, vector<512x128xf32>
    tpu.vector_store %arg5[%c0_44, %c0_45], %17 {strides = array<i32>} : memref<512x128xf32, #tpu.memory_space<vmem>>, vector<512x128xf32>,
    %c0_46 = arith.constant 0 : index
    %c1_47 = arith.constant 1 : index
    %c0_48 = arith.constant 0 : index
    %c0_49 = arith.constant 0 : index
    %19 = vector.load %arg4[%c0_46, %c1_47, %c0_48, %c0_49] : memref<2x18x16x384xf32, #tpu.memory_space<vmem>>, vector<2x16x16x384xf32>
    %20 = vector.shape_cast %19 : vector<2x16x16x384xf32> to vector<512x384xf32>
    %c1_50 = arith.constant 1 : index
    %c0_51 = arith.constant 0 : index
    %c0_52 = arith.constant 0 : index
    %21 = vector.load %arg2[%c1_50, %c0_51, %c0_52] : memref<3x384x128xf32, #tpu.memory_space<vmem>>, vector<1x384x128xf32>
    %22 = vector.shape_cast %21 : vector<1x384x128xf32> to vector<384x128xf32>
    %cst_53 = arith.constant dense<0.000000e+00> : vector<512x128xf32>
    %23 = tpu.matmul %20, %22, %cst_53 {dimension_numbers = #tpu.dot_dimension_numbers<[1], [0], [0], [1], [0, 0, 1, 1], [], []>} : vector<512x384xf32>, vector<384x128xf32>, vector<512x128xf32> -> vector<512x128xf32>
    %c0_54 = arith.constant 0 : index
    %c0_55 = arith.constant 0 : index
    %24 = vector.load %arg5[%c0_54, %c0_55] : memref<512x128xf32, #tpu.memory_space<vmem>>, vector<512x128xf32>
    %25 = arith.addf %24, %23 : vector<512x128xf32>
    %c0_56 = arith.constant 0 : index
    %c0_57 = arith.constant 0 : index
    %26 = vector.load %arg5[%c0_56, %c0_57] : memref<512x128xf32, #tpu.memory_space<vmem>>, vector<512x128xf32>
    tpu.vector_store %arg5[%c0_56, %c0_57], %25 {strides = array<i32>} : memref<512x128xf32, #tpu.memory_space<vmem>>, vector<512x128xf32>,
    %c0_58 = arith.constant 0 : index
    %c2 = arith.constant 2 : index
    %c0_59 = arith.constant 0 : index
    %c0_60 = arith.constant 0 : index
    %27 = vector.load %arg4[%c0_58, %c2, %c0_59, %c0_60] : memref<2x18x16x384xf32, #tpu.memory_space<vmem>>, vector<2x16x16x384xf32>
    %28 = vector.shape_cast %27 : vector<2x16x16x384xf32> to vector<512x384xf32>
    %c2_61 = arith.constant 2 : index
    %c0_62 = arith.constant 0 : index
    %c0_63 = arith.constant 0 : index
    %29 = vector.load %arg2[%c2_61, %c0_62, %c0_63] : memref<3x384x128xf32, #tpu.memory_space<vmem>>, vector<1x384x128xf32>
    %30 = vector.shape_cast %29 : vector<1x384x128xf32> to vector<384x128xf32>
    %cst_64 = arith.constant dense<0.000000e+00> : vector<512x128xf32>
    %31 = tpu.matmul %28, %30, %cst_64 {dimension_numbers = #tpu.dot_dimension_numbers<[1], [0], [0], [1], [0, 0, 1, 1], [], []>} : vector<512x384xf32>, vector<384x128xf32>, vector<512x128xf32> -> vector<512x128xf32>
    %c0_65 = arith.constant 0 : index
    %c0_66 = arith.constant 0 : index
    %32 = vector.load %arg5[%c0_65, %c0_66] : memref<512x128xf32, #tpu.memory_space<vmem>>, vector<512x128xf32>
    %33 = arith.addf %32, %31 : vector<512x128xf32>
    %c0_67 = arith.constant 0 : index
    %c0_68 = arith.constant 0 : index
    %34 = vector.load %arg5[%c0_67, %c0_68] : memref<512x128xf32, #tpu.memory_space<vmem>>, vector<512x128xf32>
    tpu.vector_store %arg5[%c0_67, %c0_68], %33 {strides = array<i32>} : memref<512x128xf32, #tpu.memory_space<vmem>>, vector<512x128xf32>,
    %c0_69 = arith.constant 0 : index
    %c0_70 = arith.constant 0 : index
    %35 = vector.load %arg5[%c0_69, %c0_70] : memref<512x128xf32, #tpu.memory_space<vmem>>, vector<512x128xf32>
    %36 = vector.shape_cast %35 : vector<512x128xf32> to vector<2x256x128xf32>
    %cst_71 = arith.constant dense<0.000000e+00> : vector<2x128xf32>
    %37 = vector.multi_reduction <add>, %36, %cst_71 [1] : vector<2x256x128xf32> to vector<2x128xf32>
    %38 = vector.shape_cast %37 : vector<2x128xf32> to vector<2x1x128xf32>
    %39 = arith.mulf %36, %36 : vector<2x256x128xf32>
    %cst_72 = arith.constant dense<0.000000e+00> : vector<2x128xf32>
    %40 = vector.multi_reduction <add>, %39, %cst_72 [1] : vector<2x256x128xf32> to vector<2x128xf32>
    %41 = vector.shape_cast %40 : vector<2x128xf32> to vector<2x1x128xf32>
    %cst_73 = arith.constant 3.906250e-03 : f32
    %42 = vector.broadcast %cst_73 : f32 to vector<2x1x128xf32>
    %43 = arith.mulf %38, %42 : vector<2x1x128xf32>
    %cst_74 = arith.constant 3.906250e-03 : f32
    %44 = vector.broadcast %cst_74 : f32 to vector<2x1x128xf32>
    %45 = arith.mulf %41, %44 : vector<2x1x128xf32>
    %46 = arith.mulf %43, %43 : vector<2x1x128xf32>
    %47 = arith.subf %45, %46 : vector<2x1x128xf32>
    %48 = vector.broadcast %43 : vector<2x1x128xf32> to vector<2x256x128xf32>
    %49 = arith.subf %36, %48 : vector<2x256x128xf32>
    %cst_75 = arith.constant 9.99999974E-6 : f32
    %50 = vector.broadcast %cst_75 : f32 to vector<2x1x128xf32>
    %51 = arith.addf %47, %50 : vector<2x1x128xf32>
    %52 = math.rsqrt %51 : vector<2x1x128xf32>
    %53 = vector.broadcast %52 : vector<2x1x128xf32> to vector<2x256x128xf32>
    %54 = arith.mulf %49, %53 : vector<2x256x128xf32>
    %cst_76 = arith.constant 0.000000e+00 : f32
    %55 = vector.broadcast %cst_76 : f32 to vector<2x256x128xf32>
    %56 = arith.maximumf %54, %55 : vector<2x256x128xf32>
    %57 = vector.shape_cast %56 : vector<2x256x128xf32> to vector<2x16x16x128xf32>
    %c0_77 = arith.constant 0 : index
    %c0_78 = arith.constant 0 : index
    %c0_79 = arith.constant 0 : index
    %c0_80 = arith.constant 0 : index
    %58 = vector.load %arg3[%c0_77, %c0_78, %c0_79, %c0_80] : memref<2x16x16x128xf32, #tpu.memory_space<vmem>>, vector<2x16x16x128xf32>
    tpu.vector_store %arg3[%c0_77, %c0_78, %c0_79, %c0_80], %57 {strides = array<i32>} : memref<2x16x16x128xf32, #tpu.memory_space<vmem>>, vector<2x16x16x128xf32>,
    return
  }
  func.func @transform_0(%arg0: i32) -> (i32, i32, i32, i32) {
    %c0_i32 = arith.constant 0 : i32
    %c0_i32_0 = arith.constant 0 : i32
    %c0_i32_1 = arith.constant 0 : i32
    %c0_i32_2 = arith.constant 0 : i32
    return %arg0, %c0_i32, %c0_i32_0, %c0_i32_1 : i32, i32, i32, i32
  }
  func.func @transform_1(%arg0: i32) -> (i32, i32, i32) {
    %c0_i32 = arith.constant 0 : i32
    %c0_i32_0 = arith.constant 0 : i32
    %c0_i32_1 = arith.constant 0 : i32
    %c0_i32_2 = arith.constant 0 : i32
    return %c0_i32, %c0_i32_0, %c0_i32_1 : i32, i32, i32
  }
  func.func @transform_2(%arg0: i32) -> (i32, i32, i32, i32) {
    %c0_i32 = arith.constant 0 : i32
    %c0_i32_0 = arith.constant 0 : i32
    %c0_i32_1 = arith.constant 0 : i32
    %c0_i32_2 = arith.constant 0 : i32
    return %arg0, %c0_i32, %c0_i32_0, %c0_i32_1 : i32, i32, i32, i32
  }
}

</mosaic_0001>

<bundles_post_ra>
// kernel: tpu_custom_call.1
= control target key start
LH: loop header
LB: loop body
LE: loop exit
PB: predicated region body
PF: predicated region fallthrough
CT: control target
= control target key end

     0   :  { %7 = vsyncpa [#allocation5], 0  ;;  %s7091_s0 = inlined_call_operand.hbm [shape: f32[4,16,16,128], index: 0, kind: input, shape index: {}]   ;;  %s7092_s1 = inlined_call_operand.hbm [shape: f32[3,384,128], index: 1, kind: input, shape index: {}]   ;;  %s7093_s2 = inlined_call_operand.hbm [shape: f32[4,16,16,128], index: 2, kind: output, shape index: {}]  }
   0x1   :  { %9 = vsyncpa [#allocation5 + $0x1], 0 }
   0x2   :  { %10 = vsyncpa [#allocation8], 0 }
   0x3   :  { %11 = vsyncpa [#allocation6], 0 }
   0x4   :  { %13 = vsyncpa [#allocation6 + $0x1], 0  ;;  %s4889_s9 = smov 0   ;;  %s4891_s10 = smov 0  }
   0x5   :  { %s4893_s11 = smov 0   ;;  %s4895_s12 = smov 0  }
   0x6 LB: > { %s4910_s13 = sadd.s32 4294967295, %s4866_s12   ;;  %s4597_s14 = sadd.s32 4294967294, %s4866_s12   ;;  %s4866_s12 = sphi %s4895_s12, %s7533_s12   ;;  %s4862_s11 = sphi %s4893_s11, %s7532_s11   ;;  %s4858_s10 = sphi %s4891_s10, %s7531_s10   ;;  %s4854_s9 = sphi %s4889_s9, %s7530_s9  }
   0x7   : > { %p39_p0 = scmp.ne.s32.totalorder %s4858_s10, %s4854_s9  ;;  %p40_p1 = scmp.eq.s32.totalorder %s4910_s13, 0 }
   0x8   : > { %p84_p2 = scmp.eq.s32.totalorder %s4910_s13, 1  ;;  %p90_p3 = scmp.eq.s32.totalorder %s4597_s14, 1 }
   0x9   : > { %p4919_p4 = por %p40_p1, %p39_p0  ;;  %p4598_p5 = scmp.ge.s32.totalorder %s4866_s12, 1 }
   0xa   : > { %p4924_p6 = por %p90_p3, %p39_p0  ;;  %p97_p7 = scmp.lt.s32.totalorder %s4866_s12, 3 }
   0xb   : > { %s108_s19 = sshll.u32 %s7092_s1, 4  ;;  %s4868_s21 = smov [#allocation7]   ;;  %s109_s19 = int_to_ptr.hbm [resolvable:$true] %s108_s19 }
   0xc   : > { %p4932_p8 = pnand %p4598_p5, %p97_p7  ;;  %s110_s22 = sshll.u32 %s4868_s21, 4  ;;  %s111_s22 = int_to_ptr.vmem [resolvable:$true] %s110_s22 }
   0xd   : > { %s4942_s23 = sadd.s32 1, %s4866_s12   ;;  %s4869_s24 = smov 128  }
   0xe   : > { %p4675_p9 = pneg %p4932_p8  ;;  %s4870_s25 = smov 8  }
   0xf   : > { %s23_s26 = ssub.s32 %s4866_s12, %s4942_s23  ;;  %s26_s27 = sadd.s32 1, %s4862_s11 }
  0x10   : > { %p4676_p10 = pnand %p4675_p9, %p40_p1  ;;  %p24_p12 = scmp.eq.s32.totalorder %s23_s26, 0 }
  0x11   : > { %p33_p13 = scmp.ne.s32.totalorder %s4862_s11, %s4858_s10  ;;  %p34_p0 = scmp.eq.s32.totalorder %s4866_s12, 0 }
  0x12   : > { %4678 = dma.hbm_to_vmem [thread:$0]  (!%p4676_p10), %s109_s19, 18432, %s111_s22, [#allocation8], %s4869_s24, %s4869_s24, %s4870_s25  }
  0x13   : > { %s4954_s28 = scalar_select %p24_p12, %s4862_s11, %s26_s27  }
  0x14   : > { %p4958_p3 = por %p84_p2, %p33_p13  ;;  %p4688_p5 = scmp.lt.s32.totalorder %s4866_s12, 2 }
  0x15   : > { %s124_s30 = sand.u32 1, %s4862_s11   ;;  %s4616_s3 = sshll.u32 %s4866_s12, 9 }
  0x16   : > { %p35_p7 = por %p34_p0, %p33_p13  ;;  %s4601_s4 = sshll.u32 %s124_s30, 9 }
  0x17   : > { %s134_s7 = scalar_lea.hbm %s7091_s0, %s4616_s3  ;;  %s128_s14 = scalar_lea.vmem [#allocation4], %s4601_s4 }
  0x18   : > { %s135_s8 = sshll.u32 %s134_s7, 4  ;;  %s137_s17 = sshll.u32 %s128_s14, 4  ;;  %s136_s8 = int_to_ptr.hbm [resolvable:$true] %s135_s8  ;;  %s138_s17 = int_to_ptr.vmem [resolvable:$true] %s137_s17 }
  0x19   : > { %p4968_p9 = pnand %p4688_p5, %p35_p7  ;;  %s125_s19 = scalar_lea.sflag [#allocation5], %s124_s30 }
  0x1a   : > { %s4766_s21 = sshra.s32 %s136_s8, 4  ;;  %s4773_s3 = scalar_lea.hbm %s7091_s0, 1024  ;;  %s4767_s21 = int_to_ptr.hbm [resolvable:$true] %s4766_s21 }
  0x1b   : > { %s4768_s22 = scalar_lea.hbm %s4767_s21, 512  ;;  %p4770_p10 = pneg %p4968_p9 }
  0x1c   : > { %p4769_p2 = scmp.ne.s32.totalorder %s4767_s21, %s4768_s22  ;;  %p4774_p0 = scmp.lt.s32.totalorder %s4767_s21, %s7091_s0 }
  0x1d   : > { %p4775_p5 = scmp.lt.s32.totalorder %s4773_s3, %s4768_s22 }
  0x1e   : > { %p4771_p12 = pnand %p4770_p10, %p4769_p2 }
  0x1f   : > { %p4776_p7 = por %p4775_p5, %p4774_p0 }
  0x20   : > { %p4772_p13 = pneg %p4771_p12 }
  0x22   : > { %p4777_p11 = pnand %p4776_p7, %p4772_p13 }
  0x24   : > { %4780 = shalt.err (!%p4777_p11)
}
  0x25   : > { %4682 = dma.hbm_to_vmem [thread:$0]  (!%p4968_p9), %s136_s8, 8192, %s138_s17, %s125_s19, %s4869_s24, %s4869_s24, %s4870_s25  }
  0x26   : > { %149 = sbr.rel (%p4932_p8) target bundleno = 1494 (0x5d6), region = 28 }
  0x2b   : > { %s4988_s30 = sand.u32 1, %s4858_s10  }
  0x2c   : > { %s4606_s6 = sshll.u32 %s4988_s30, 9  ;;  %s152_s7 = scalar_lea.sflag [#allocation5], %s4988_s30 }
  0x2d   : > { %s4994_s14 = scalar_lea.vmem [#allocation4], %s4606_s6 }
  0x2e   : > { %4841 = dma.done.wait (%p4919_p4), %s152_s7, 8192  }
  0x2f   : > { %4843 = vsyncadd (%p4919_p4), %s152_s7, 4294959104 }
  0x30   : > { %4845 = dma.done.wait (%p40_p1), [#allocation8], 18432  }
  0x31   : > { %4847 = vsyncadd (%p40_p1), [#allocation8], 4294948864  ;;  %v4871_v0 = vmov 0.0   ;;  %v1090_v1 = vld [vmem:[#allocation7 + $0x78] sm:$0xff]  ;;  %v1089_v2 = vld [vmem:[#allocation7 + $0x70] sm:$0xff]  ;;  %vm370_vm0 = vcmask 1040384  }
  0x32   : > { %217 = vst [vmem:[#allocation2 + $0x180] sm:$0x1] %v4871_v0  ;;  %4619 = vmatpush.msra.mxu1 %v1090_v1  ;;  %4620 = vmatpush.msra.mxu2 %v1090_v1  ;;  %v1088_v3 = vld [vmem:[#allocation7 + $0x68] sm:$0xff]  ;;  %v1087_v4 = vld [vmem:[#allocation7 + $0x60] sm:$0xff]  ;;  %v5007_v5 = vld [vmem:[%s4994_s14 + $0x70] sm:$0xff]  ;;  %s6517_s15 = scalar_lea.vmem [#allocation9], %s4606_s6 }
  0x33   : > { %184 = vst [vmem:[#allocation2] sm:$0xff] %v4871_v0  ;;  %4621 = vmatpush.msra.mxu3 %v1090_v1  ;;  %1123 = vmatpush.msra.mxu0 %v1090_v1  ;;  %v1086_v6 = vld [vmem:[#allocation7 + $0x58] sm:$0xff]  ;;  %v392_v7 = vrot.slane %v5007_v5, 7  ;;  %v1085_v8 = vld [vmem:[#allocation7 + $0x50] sm:$0xff]  ;;  %v1084_v9 = vld [vmem:[#allocation7 + $0x48] sm:$0xff]  ;;  %s4618_s20 = sshll.u32 %s4910_s13, 9 }
  0x34   : > { %4622 = vmatpush.msra.mxu1 %v1089_v2  ;;  %4623 = vmatpush.msra.mxu2 %v1089_v2  ;;  %v1083_v10 = vld [vmem:[#allocation7 + $0x40] sm:$0xff]  ;;  %v1082_v11 = vld [vmem:[#allocation7 + $0x38] sm:$0xff]  ;;  %v1081_v12 = vld [vmem:[#allocation7 + $0x30] sm:$0xff]  ;;  %210 = vst [vmem:[#allocation2 + $0x30] sm:$0x1] %v4871_v0  ;;  %s4510_s8 = scalar_lea.hbm %s7093_s2, %s4618_s20  ;;  %s4511_s13 = sshll.u32 %s6517_s15, 4  ;;  %s4512_s13 = int_to_ptr.vmem [resolvable:$true] %s4511_s13 }
  0x35   : > { %4624 = vmatpush.msra.mxu3 %v1089_v2  ;;  %1124 = vmatpush.msra.mxu0 %v1089_v2  ;;  %545 = vst [vmem:[#allocation2 + $0x180] sm:$0xfe] %v392_v7  ;;  %v1080_v13 = vld [vmem:[#allocation7 + $0x28] sm:$0xff]  ;;  %v1079_v14 = vld [vmem:[#allocation7 + $0x20] sm:$0xff]  ;;  %v1078_v15 = vld [vmem:[#allocation7 + $0x18] sm:$0xff]  ;;  %s4513_s17 = sshll.u32 %s4510_s8, 4  ;;  %s4514_s17 = int_to_ptr.hbm [resolvable:$true] %s4513_s17 }
  0x36   : > { %4625 = vmatpush.msra.mxu1 %v1088_v3  ;;  %4626 = vmatpush.msra.mxu2 %v1088_v3  ;;  %211 = vst [vmem:[#allocation2 + $0x60] sm:$0x1] %v4871_v0  ;;  %v1077_v16 = vld [vmem:[#allocation7 + $0x10] sm:$0xff]  ;;  %v1076_v17 = vld [vmem:[#allocation7 + $0x8] sm:$0xff]  ;;  %v1075_v18 = vld [vmem:[#allocation7] sm:$0xff]  ;;  %s4498_s18 = scalar_lea.sflag [#allocation6], %s4988_s30 }
  0x37   : > { %4627 = vmatpush.msra.mxu3 %v1088_v3  ;;  %1125 = vmatpush.msra.mxu0 %v1088_v3  ;;  %212 = vst [vmem:[#allocation2 + $0x90] sm:$0x1] %v4871_v0  ;;  %v1122_v20 = vld [vmem:[#allocation7 + $0x178] sm:$0xff]  ;;  %v1121_v26 = vld [vmem:[#allocation7 + $0x170] sm:$0xff]  ;;  %v1120_v30 = vld [vmem:[#allocation7 + $0x168] sm:$0xff]  ;;  %s4810_s19 = sshra.s32 %s4514_s17, 4  ;;  %s4811_s19 = int_to_ptr.hbm [resolvable:$true] %s4810_s19 }
  0x38   : > { %4628 = vmatpush.msra.mxu1 %v1087_v4  ;;  %4629 = vmatpush.msra.mxu2 %v1087_v4  ;;  %213 = vst [vmem:[#allocation2 + $0xc0] sm:$0x1] %v4871_v0  ;;  %v2022_v21 = vld [vmem:[#allocation7 + $0x1f8] sm:$0xff]  ;;  %v2021_v27 = vld [vmem:[#allocation7 + $0x1f0] sm:$0xff]  ;;  %v2020_v31 = vld [vmem:[#allocation7 + $0x1e8] sm:$0xff]  ;;  %s4812_s21 = scalar_lea.hbm %s4811_s19, 512  ;;  %p4817_p11 = scmp.lt.s32.totalorder %s4811_s19, %s7093_s2 }
  0x39   : > { %4630 = vmatpush.msra.mxu3 %v1087_v4  ;;  %1126 = vmatpush.msra.mxu0 %v1087_v4  ;;  %214 = vst [vmem:[#allocation2 + $0xf0] sm:$0x1] %v4871_v0  ;;  %v1106_v22 = vld [vmem:[#allocation7 + $0xf8] sm:$0xff]  ;;  %v1105_v29 = vld [vmem:[#allocation7 + $0xf0] sm:$0xff]  ;;  %v1104_v34 = vld [vmem:[#allocation7 + $0xe8] sm:$0xff]  ;;  %p4813_p1 = scmp.ne.s32.totalorder %s4811_s19, %s4812_s21  ;;  %s4816_s27 = scalar_lea.hbm %s7093_s2, 1024 }
  0x3a   : > { %4631 = vmatpush.msra.mxu1 %v1086_v6  ;;  %4632 = vmatpush.msra.mxu2 %v1086_v6  ;;  %215 = vst [vmem:[#allocation2 + $0x120] sm:$0x1] %v4871_v0  ;;  %v257_v23 = vld [vmem:[%s4994_s14 + $0x78] sm:$0x7f]  ;;  %v2037_v32 = vld [vmem:[#allocation7 + $0x270] sm:$0xff]  ;;  %v258_v36 = vld [vmem:[%s4994_s14 + $0x80] sm:$0xff]  ;;  %p4818_p9 = scmp.lt.s32.totalorder %s4816_s27, %s4812_s21 }
  0x3b   : > { %4633 = vmatpush.msra.mxu3 %v1086_v6  ;;  %1127 = vmatpush.msra.mxu0 %v1086_v6  ;;  %216 = vst [vmem:[#allocation2 + $0x150] sm:$0x1] %v4871_v0  ;;  %v393_v24 = vrot.slane %v257_v23, 7  ;;  %v2038_v28 = vld [vmem:[#allocation7 + $0x278] sm:$0xff]  ;;  %v288_v33 = vld [vmem:[%s4994_s14 + $0x170] sm:$0xff]  ;;  %v274_v39 = vld [vmem:[%s4994_s14 + $0x100] sm:$0xff]  ;;  %p4814_p4 = pnand %p4813_p1, %p4958_p3 }
  0x3c   : > { %4634 = vmatpush.msra.mxu1 %v1085_v8  ;;  %4635 = vmatpush.msra.mxu2 %v1085_v8  ;;  %218 = vst [vmem:[#allocation2 + $0x1b0] sm:$0x1] %v4871_v0  ;;  %v931_v19 = vld [vmem:[#allocation2 + $0x180] sm:$0xff]  ;;  %v289_v35 = vld [vmem:[%s4994_s14 + $0x178] sm:$0x7f]  ;;  %v440_v37 = vrot.slane %v288_v33, 7  ;;  %p4819_p2 = por %p4818_p9, %p4817_p11 }
  0x3d   : > { %4636 = vmatpush.msra.mxu3 %v1085_v8  ;;  %1128 = vmatpush.msra.mxu0 %v1085_v8  ;;  %219 = vst [vmem:[#allocation2 + $0x1e0] sm:$0x1] %v4871_v0  ;;  %v394_v25 = vsel %vm370_vm0, %v392_v7, %v393_v24  ;;  %v441_v38 = vrot.slane %v289_v35, 7  ;;  %v395_v40 = vrot.slane %v258_v36, 7  ;;  %v290_v41 = vld [vmem:[%s4994_s14 + $0x180] sm:$0xff]  ;;  %v419_v45 = vrot.slane %v274_v39, 7  ;;  %p4815_p8 = pneg %p4814_p4 }
  0x3e   : > { %4637 = vmatpush.msra.mxu1 %v1084_v9  ;;  %4638 = vmatpush.msra.mxu2 %v1084_v9  ;;  %220 = vst [vmem:[#allocation2 + $0x210] sm:$0x1] %v4871_v0  ;;  %v5088_v42 = vld [vmem:[%s4994_s14] sm:$0xff]  ;;  %v259_v43 = vld [vmem:[%s4994_s14 + $0x88] sm:$0x7f]  ;;  %v443_v50 = vrot.slane %v290_v41, 7 }
  0x3f   : > { %4639 = vmatpush.msra.mxu3 %v1084_v9  ;;  %1129 = vmatpush.msra.mxu0 %v1084_v9  ;;  %221 = vst [vmem:[#allocation2 + $0x240] sm:$0x1] %v4871_v0  ;;  %v275_v44 = vld [vmem:[%s4994_s14 + $0x108] sm:$0x7f]  ;;  %v1119_v46 = vld [vmem:[#allocation7 + $0x160] sm:$0xff]  ;;  %v5094_v49 = vsel %vm370_vm0, %v440_v37, %v441_v38  ;;  %v371_v53 = vrot.slane %v5088_v42, 7  ;;  %p4820_p10 = pnand %p4819_p2, %p4815_p8 }
  0x40   : > { %4640 = vmatpush.msra.mxu1 %v1083_v10  ;;  %4641 = vmatpush.msra.mxu2 %v1083_v10  ;;  %222 = vst [vmem:[#allocation2 + $0x270] sm:$0x1] %v4871_v0  ;;  %v2019_v47 = vld [vmem:[#allocation7 + $0x1e0] sm:$0xff]  ;;  %v2036_v48 = vld [vmem:[#allocation7 + $0x268] sm:$0xff]  ;;  %v396_v54 = vrot.slane %v259_v43, 7  ;;  %v420_v56 = vrot.slane %v275_v44, 7 }
  0x41   : > { %4642 = vmatpush.msra.mxu3 %v1083_v10  ;;  %1130 = vmatpush.msra.mxu0 %v1083_v10  ;;  %223 = vst [vmem:[#allocation2 + $0x2a0] sm:$0x1] %v4871_v0  ;;  %v291_v51 = vld [vmem:[%s4994_s14 + $0x188] sm:$0x7f]  ;;  %v1103_v52 = vld [vmem:[#allocation7 + $0xe0] sm:$0xff]  ;;  %v260_v58 = vld [vmem:[%s4994_s14 + $0x90] sm:$0xff] }
  0x42   : > { %4643 = vmatpush.msra.mxu1 %v1082_v11  ;;  %4644 = vmatpush.msra.mxu2 %v1082_v11  ;;  %224 = vst [vmem:[#allocation2 + $0x2d0] sm:$0x1] %v4871_v0  ;;  %v243_v55 = vld [vmem:[%s4994_s14 + $0x8] sm:$0x7f]  ;;  %v444_v57 = vrot.slane %v291_v51, 7  ;;  %v276_v60 = vld [vmem:[%s4994_s14 + $0x110] sm:$0xff]  ;;  %v397_v62 = vsel %vm370_vm0, %v395_v40, %v396_v54 }
  0x43   : > { %4645 = vmatpush.msra.mxu3 %v1082_v11  ;;  %1131 = vmatpush.msra.mxu0 %v1082_v11  ;;  %225 = vst [vmem:[#allocation2 + $0x300] sm:$0x1] %v4871_v0  ;;  %v372_v59 = vrot.slane %v243_v55, 7  ;;  %v292_v61 = vld [vmem:[%s4994_s14 + $0x190] sm:$0xff]  ;;  %v398_v1 = vrot.slane %v260_v58, 7  ;;  %v422_v4 = vrot.slane %v276_v60, 7 }
  0x44   : > { %4646 = vmatpush.msra.mxu1 %v1081_v12  ;;  %4647 = vmatpush.msra.mxu2 %v1081_v12  ;;  %226 = vst [vmem:[#allocation2 + $0x390] sm:$0x1] %v4871_v0  ;;  %v5106_v2 = vld [vmem:[%s4994_s14 + $0x10] sm:$0xff]  ;;  %v5109_v3 = vsel %vm370_vm0, %v443_v50, %v444_v57  ;;  %v446_v5 = vrot.slane %v292_v61, 7  ;;  %v1118_v6 = vld [vmem:[#allocation7 + $0x158] sm:$0xff]  ;;  %v2035_v8 = vld [vmem:[#allocation7 + $0x260] sm:$0xff] }
  0x45   : > { %4648 = vmatpush.msra.mxu3 %v1081_v12  ;;  %1132 = vmatpush.msra.mxu0 %v1081_v12  ;;  %227 = vst [vmem:[#allocation2 + $0x3c0] sm:$0x1] %v4871_v0  ;;  %v2018_v7 = vld [vmem:[#allocation7 + $0x1d8] sm:$0xff]  ;;  %v5113_v9 = vsel %vm370_vm0, %v371_v53, %v372_v59  ;;  %v5140_v36 = vld [vmem:[%s4994_s14 + $0x20] sm:$0xff]  ;;  %v1116_v41 = vld [vmem:[#allocation7 + $0x148] sm:$0xff] }
  0x46   : > { %4649 = vmatpush.msra.mxu1 %v1080_v13  ;;  %4650 = vmatpush.msra.mxu2 %v1080_v13  ;;  %228 = vst [vmem:[#allocation2 + $0x3f0] sm:$0x1] %v4871_v0  ;;  %v1102_v10 = vld [vmem:[#allocation7 + $0xd8] sm:$0xff]  ;;  %v377_v38 = vrot.slane %v5140_v36, 7  ;;  %v2016_v43 = vld [vmem:[#allocation7 + $0x1c8] sm:$0xff]  ;;  %v2033_v44 = vld [vmem:[#allocation7 + $0x250] sm:$0xff] }
  0x47   : > { %4651 = vmatpush.msra.mxu3 %v1080_v13  ;;  %1133 = vmatpush.msra.mxu0 %v1080_v13  ;;  %229 = vst [vmem:[#allocation2 + $0x420] sm:$0x1] %v4871_v0  ;;  %v261_v11 = vld [vmem:[%s4994_s14 + $0x98] sm:$0x7f]  ;;  %v280_v57 = vld [vmem:[%s4994_s14 + $0x130] sm:$0xff] }
  0x48   : > { %4652 = vmatpush.msra.mxu1 %v1079_v14  ;;  %4653 = vmatpush.msra.mxu2 %v1079_v14  ;;  %230 = vst [vmem:[#allocation2 + $0x450] sm:$0x1] %v4871_v0  ;;  %v277_v12 = vld [vmem:[%s4994_s14 + $0x118] sm:$0x7f]  ;;  %v428_v60 = vrot.slane %v280_v57, 7  ;;  %v296_v61 = vld [vmem:[%s4994_s14 + $0x1b0] sm:$0xff] }
  0x49   : > { %4654 = vmatpush.msra.mxu3 %v1079_v14  ;;  %1134 = vmatpush.msra.mxu0 %v1079_v14  ;;  %231 = vst [vmem:[#allocation2 + $0x480] sm:$0x1] %v4871_v0  ;;  %v374_v14 = vrot.slane %v5106_v2, 7  ;;  %v245_v33 = vld [vmem:[%s4994_s14 + $0x18] sm:$0x7f] }
  0x4a   : > { %4655 = vmatpush.msra.mxu1 %v1078_v15  ;;  %4656 = vmatpush.msra.mxu2 %v1078_v15  ;;  %232 = vst [vmem:[#allocation2 + $0x4b0] sm:$0x1] %v4871_v0  ;;  %v375_v35 = vrot.slane %v245_v33, 7 }
  0x4b   : > { %4657 = vmatpush.msra.mxu3 %v1078_v15  ;;  %1135 = vmatpush.msra.mxu0 %v1078_v15  ;;  %233 = vst [vmem:[#allocation2 + $0x4e0] sm:$0x1] %v4871_v0  ;;  %v399_v15 = vrot.slane %v261_v11, 7 }
  0x4c   : > { %4658 = vmatpush.msra.mxu1 %v1077_v16  ;;  %4659 = vmatpush.msra.mxu2 %v1077_v16  ;;  %234 = vst [vmem:[#allocation2 + $0x510] sm:$0x1] %v4871_v0 }
  0x4d   : > { %4660 = vmatpush.msra.mxu3 %v1077_v16  ;;  %1136 = vmatpush.msra.mxu0 %v1077_v16  ;;  %235 = vst [vmem:[#allocation2 + $0x540] sm:$0x1] %v4871_v0  ;;  %v293_v16 = vld [vmem:[%s4994_s14 + $0x198] sm:$0x7f]  ;;  %v5125_v23 = vsel %vm370_vm0, %v398_v1, %v399_v15  ;;  %v2031_v15 = vld [vmem:[#allocation7 + $0x240] sm:$0xff] }
  0x4e   : > { %4661 = vmatpush.msra.mxu1 %v1076_v17  ;;  %4662 = vmatpush.msra.mxu2 %v1076_v17  ;;  %236 = vst [vmem:[#allocation2 + $0x570] sm:$0x1] %v4871_v0 }
  0x4f   : > { %4663 = vmatpush.msra.mxu3 %v1076_v17  ;;  %1137 = vmatpush.msra.mxu0 %v1076_v17  ;;  %237 = vst [vmem:[#allocation2 + $0x5a0] sm:$0x1] %v4871_v0 }
  0x50   : > { %4664 = vmatpush.msra.mxu1 %v1075_v18  ;;  %4665 = vmatpush.msra.mxu2 %v1075_v18  ;;  %238 = vst [vmem:[#allocation2 + $0x5d0] sm:$0x1] %v4871_v0 }
  0x51   : > { %4666 = vmatpush.msra.mxu3 %v1075_v18  ;;  %1187 = vmatmul.f32.vlgmr.msra.gmra.mxu1 %v931_v19  ;;  %239 = vst [vmem:[#allocation2 + $0x600] sm:$0x1] %v4871_v0  ;;  %v447_v19 = vrot.slane %v293_v16, 7  ;;  %v1098_v16 = vld [vmem:[#allocation7 + $0xb8] sm:$0xff] }
  0x52   : > { %1235 = vmatmul.f32.vlgmr.msra.gmra.mxu2 %v4871_v0  ;;  %1138 = vmatpush.msra.mxu0 %v1075_v18  ;;  %240 = vst [vmem:[#allocation2 + $0x630] sm:$0x1] %v4871_v0  ;;  %v423_v18 = vrot.slane %v277_v12, 7  ;;  %v1114_v12 = vld [vmem:[#allocation7 + $0x138] sm:$0xff] }
  0x53   : > { %1139 = vmatmul.f32.vlgmr.msra.gmra.mxu0 %v4871_v0  ;;  %241 = vst [vmem:[#allocation2 + $0x660] sm:$0x1] %v4871_v0  ;;  %1541 = vmatpush.msrb.mxu2 %v1122_v20 }
  0x54   : > { %723 = vst [vmem:[#allocation2 + $0x5f] sm:$0x1] %v4871_v0  ;;  %2055 = vmatpush.msrb.mxu3 %v2022_v21  ;;  %1332 = vmatpush.msrb.mxu1 %v1106_v22  ;;  %v262_v21 = vld [vmem:[%s4994_s14 + $0xa0] sm:$0xff] }
  0x55   : > { %724 = vst [vmem:[#allocation2 + $0x8f] sm:$0x1] %v4871_v0  ;;  %1542 = vmatpush.msrb.mxu2 %v1121_v26  ;;  %2264 = vmatpush.msrb.mxu0 %v2038_v28  ;;  %v278_v22 = vld [vmem:[%s4994_s14 + $0x120] sm:$0xff]  ;;  %v401_v24 = vrot.slane %v262_v21, 7  ;;  %v5130_v26 = vsel %vm370_vm0, %v422_v4, %v423_v18  ;;  %v5135_v28 = vsel %vm370_vm0, %v446_v5, %v447_v19  ;;  %v281_v18 = vld [vmem:[%s4994_s14 + $0x138] sm:$0x7f] }
  0x56   : > { %725 = vst [vmem:[#allocation2 + $0xbf] sm:$0x1] %v4871_v0  ;;  %2056 = vmatpush.msrb.mxu3 %v2021_v27  ;;  %1333 = vmatpush.msrb.mxu1 %v1105_v29  ;;  %v425_v27 = vrot.slane %v278_v22, 7  ;;  %v1117_v29 = vld [vmem:[#allocation7 + $0x150] sm:$0xff]  ;;  %v297_v19 = vld [vmem:[%s4994_s14 + $0x1b8] sm:$0x7f] }
  0x57   : > { %726 = vst [vmem:[#allocation2 + $0xef] sm:$0x1] %v4871_v0  ;;  %1543 = vmatpush.msrb.mxu2 %v1120_v30  ;;  %2265 = vmatpush.msrb.mxu0 %v2037_v32  ;;  %v2017_v30 = vld [vmem:[#allocation7 + $0x1d0] sm:$0xff] }
  0x58   : > { %727 = vst [vmem:[#allocation2 + $0x11f] sm:$0x1] %v4871_v0  ;;  %2057 = vmatpush.msrb.mxu3 %v2020_v31  ;;  %1334 = vmatpush.msrb.mxu1 %v1104_v34  ;;  %v2034_v31 = vld [vmem:[#allocation7 + $0x258] sm:$0xff]  ;;  %v1101_v34 = vld [vmem:[#allocation7 + $0xd0] sm:$0xff] }
  0x59   : > { %728 = vst [vmem:[#allocation2 + $0x14f] sm:$0x1] %v4871_v0  ;;  %1190 = vmatmul.f32.gmra.mxu1 %v394_v25  ;;  %1544 = vmatpush.msrb.mxu2 %v1119_v46  ;;  %v1100_v46 = vld [vmem:[#allocation7 + $0xc8] sm:$0xff] }
  0x5a   : > { %1238 = vmatmul.f32.gmra.mxu2 %v4871_v0  ;;  %729 = vst [vmem:[#allocation2 + $0x17f] sm:$0x1] %v4871_v0  ;;  %2058 = vmatpush.msrb.mxu3 %v2019_v47  ;;  %v263_v47 = vld [vmem:[%s4994_s14 + $0xa8] sm:$0x7f] }
  0x5b   : > { %1142 = vmatmul.f32.gmra.mxu0 %v4871_v0  ;;  %730 = vst [vmem:[#allocation2 + $0x1af] sm:$0x1] %v4871_v0  ;;  %1335 = vmatpush.msrb.mxu1 %v1103_v52 }
  0x5c   : > { %731 = vst [vmem:[#allocation2 + $0x1df] sm:$0x1] %v4871_v0  ;;  %2266 = vmatpush.msrb.mxu0 %v2036_v48  ;;  %1545 = vmatpush.msrb.mxu2 %v1118_v6  ;;  %v402_v48 = vrot.slane %v263_v47, 7 }
  0x5d   : > { %732 = vst [vmem:[#allocation2 + $0x20f] sm:$0x1] %v4871_v0  ;;  %2059 = vmatpush.msrb.mxu3 %v2018_v7  ;;  %1336 = vmatpush.msrb.mxu1 %v1102_v10  ;;  %v5175_v7 = vld [vmem:[%s4994_s14 + $0x30] sm:$0xff] }
  0x5e   : > { %733 = vst [vmem:[#allocation2 + $0x23f] sm:$0x1] %v4871_v0  ;;  %2267 = vmatpush.msrb.mxu0 %v2035_v8  ;;  %1546 = vmatpush.msrb.mxu2 %v1117_v29  ;;  %v5156_v54 = vsel %vm370_vm0, %v401_v24, %v402_v48  ;;  %v380_v8 = vrot.slane %v5175_v7, 7  ;;  %v1112_v48 = vld [vmem:[#allocation7 + $0x128] sm:$0xff] }
  0x5f   : > { %734 = vst [vmem:[#allocation2 + $0x26f] sm:$0x1] %v4871_v0  ;;  %2060 = vmatpush.msrb.mxu3 %v2017_v30  ;;  %1337 = vmatpush.msrb.mxu1 %v1101_v34 }
  0x60   : > { %735 = vst [vmem:[#allocation2 + $0x29f] sm:$0x1] %v4871_v0  ;;  %2268 = vmatpush.msrb.mxu0 %v2034_v31  ;;  %1547 = vmatpush.msrb.mxu2 %v1116_v41  ;;  %v1097_v41 = vld [vmem:[#allocation7 + $0xb0] sm:$0xff] }
  0x61   : > { %736 = vst [vmem:[#allocation2 + $0x2cf] sm:$0x1] %v4871_v0  ;;  %2061 = vmatpush.msrb.mxu3 %v2016_v43  ;;  %1338 = vmatpush.msrb.mxu1 %v1100_v46 }
  0x62   : > { %737 = vst [vmem:[#allocation2 + $0x2ff] sm:$0x1] %v4871_v0  ;;  %2269 = vmatpush.msrb.mxu0 %v2033_v44  ;;  %v5210_v44 = vld [vmem:[%s4994_s14 + $0x40] sm:$0xff] }
  0x63   : > { %738 = vst [vmem:[#allocation2 + $0x32f] sm:$0x1] %v4871_v0 }
  0x64   : > { %739 = vst [vmem:[#allocation2 + $0x3bf] sm:$0x1] %v4871_v0 }
  0x65   : > { %740 = vst [vmem:[#allocation2 + $0x3ef] sm:$0x1] %v4871_v0 }
  0x66   : > { %741 = vst [vmem:[#allocation2 + $0x41f] sm:$0x1] %v4871_v0 }
  0x67   : > { %742 = vst [vmem:[#allocation2 + $0x44f] sm:$0x1] %v4871_v0 }
  0x68   : > { %743 = vst [vmem:[#allocation2 + $0x47f] sm:$0x1] %v4871_v0 }
  0x69   : > { %744 = vst [vmem:[#allocation2 + $0x4af] sm:$0x1] %v4871_v0 }
  0x6a   : > { %745 = vst [vmem:[#allocation2 + $0x4df] sm:$0x1] %v4871_v0 }
  0x6b   : > { %746 = vst [vmem:[#allocation2 + $0x50f] sm:$0x1] %v4871_v0 }
  0x6c   : > { %747 = vst [vmem:[#allocation2 + $0x53f] sm:$0x1] %v4871_v0 }
  0x6d   : > { %748 = vst [vmem:[#allocation2 + $0x56f] sm:$0x1] %v4871_v0 }
  0x6e   : > { %749 = vst [vmem:[#allocation2 + $0x59f] sm:$0x1] %v4871_v0 }
  0x6f   : > { %750 = vst [vmem:[#allocation2 + $0x5cf] sm:$0x1] %v4871_v0 }
  0x70   : > { %751 = vst [vmem:[#allocation2 + $0x5ff] sm:$0x1] %v4871_v0 }
  0x71   : > { %752 = vst [vmem:[#allocation2 + $0x62f] sm:$0x1] %v4871_v0 }
  0x72   : > { %753 = vst [vmem:[#allocation2 + $0x65f] sm:$0x1] %v4871_v0 }
  0x73   : > { %754 = vst [vmem:[#allocation2 + $0x68f] sm:$0x1] %v4871_v0  ;;  %v421_v0 = vsel %vm370_vm0, %v419_v45, %v420_v56  ;;  %v264_v56 = vld [vmem:[%s4994_s14 + $0xb0] sm:$0xff] }
  0x74   : > { %577 = vst [vmem:[#allocation2 + $0x4e0] sm:$0xfe] %v440_v37  ;;  %v5143_v37 = vsel %vm370_vm0, %v374_v14, %v375_v35  ;;  %v404_v59 = vrot.slane %v264_v56, 7  ;;  %v1113_v35 = vld [vmem:[#allocation7 + $0x130] sm:$0xff] }
  0x75   : > { %546 = vst [vmem:[#allocation2 + $0x198] sm:$0xff] %v394_v25  ;;  %v294_v25 = vld [vmem:[%s4994_s14 + $0x1a0] sm:$0xff] }
  0x76   : > { %578 = vst [vmem:[#allocation2 + $0x4f8] sm:$0xff] %v5094_v49  ;;  %v449_v32 = vrot.slane %v294_v25, 7 }
  0x77   : > { %547 = vst [vmem:[#allocation2 + $0x1b0] sm:$0xfe] %v395_v40 }
  0x78   : > { %563 = vst [vmem:[#allocation2 + $0x390] sm:$0xfe] %v419_v45 }
  0x79   : > { %579 = vst [vmem:[#allocation2 + $0x510] sm:$0xfe] %v443_v50  ;;  %v295_v50 = vld [vmem:[%s4994_s14 + $0x1a8] sm:$0x7f] }
  0x7a   : > { %531 = vst [vmem:[#allocation2 + $0x30] sm:$0xfe] %v371_v53  ;;  %v450_v53 = vrot.slane %v295_v50, 7 }
  0x7b   : > { %v1027_v63 = vld [vmem:[#allocation2 + $0x4e0] sm:$0xff]  ;;  %548 = vst [vmem:[#allocation2 + $0x1c8] sm:$0xff] %v397_v62 }
  0x7c   : > { %1283 = vmatmul.f32.vlgmr.msra.gmra.mxu3 %v1027_v63  ;;  %564 = vst [vmem:[#allocation2 + $0x3a8] sm:$0xff] %v421_v0  ;;  %v5167_v58 = vsel %vm370_vm0, %v449_v32, %v450_v53  ;;  %v1115_v63 = vld [vmem:[#allocation7 + $0x140] sm:$0xff]  ;;  %v1096_v53 = vld [vmem:[#allocation7 + $0xa8] sm:$0xff] }
  0x7d   : > { %580 = vst [vmem:[#allocation2 + $0x528] sm:$0xff] %v5109_v3  ;;  %1548 = vmatpush.msrb.mxu2 %v1115_v63  ;;  %v268_v63 = vld [vmem:[%s4994_s14 + $0xd0] sm:$0xff] }
  0x7e   : > { %v937_v13 = vld [vmem:[#allocation2 + $0x1b0] sm:$0xff]  ;;  %549 = vst [vmem:[#allocation2 + $0x1e0] sm:$0xfe] %v398_v1  ;;  %v2032_v1 = vld [vmem:[#allocation7 + $0x248] sm:$0xff] }
  0x7f   : > { %1193 = vmatmul.f32.gmra.mxu1 %v937_v13  ;;  %v985_v17 = vld [vmem:[#allocation2 + $0x390] sm:$0xff]  ;;  %565 = vst [vmem:[#allocation2 + $0x3c0] sm:$0xfe] %v422_v4  ;;  %v247_v4 = vld [vmem:[%s4994_s14 + $0x28] sm:$0x7f]  ;;  %2270 = vmatpush.msrb.mxu0 %v2032_v1  ;;  %v2014_v13 = vld [vmem:[#allocation7 + $0x1b8] sm:$0xff] }
  0x80   : > { %1241 = vmatmul.f32.gmra.mxu2 %v985_v17  ;;  %581 = vst [vmem:[#allocation2 + $0x540] sm:$0xfe] %v446_v5  ;;  %v1033_v39 = vld [vmem:[#allocation2 + $0x510] sm:$0xff]  ;;  %v1099_v5 = vld [vmem:[#allocation7 + $0xc0] sm:$0xff]  ;;  %v378_v6 = vrot.slane %v247_v4, 7  ;;  %v410_v4 = vrot.slane %v268_v63, 7 }
  0x81   : > { %v5119_v20 = vld [vmem:[#allocation2 + $0x30] sm:$0xff]  ;;  %533 = vst [vmem:[#allocation2 + $0x60] sm:$0xfe] %v374_v14  ;;  %1339 = vmatpush.msrb.mxu1 %v1099_v5  ;;  %1549 = vmatpush.msrb.mxu2 %v1114_v12  ;;  %v265_v17 = vld [vmem:[%s4994_s14 + $0xb8] sm:$0x7f]  ;;  %v2011_v12 = vld [vmem:[#allocation7 + $0x1a0] sm:$0xff] }
  0x82   : > { %1145 = vmatmul.f32.gmra.mxu0 %v5119_v20  ;;  %550 = vst [vmem:[#allocation2 + $0x1f8] sm:$0xff] %v5125_v23  ;;  %v405_v22 = vrot.slane %v265_v17, 7  ;;  %v5245_v17 = vld [vmem:[%s4994_s14 + $0x50] sm:$0xff]  ;;  %v1108_v63 = vld [vmem:[#allocation7 + $0x108] sm:$0xff] }
  0x83   : > { %566 = vst [vmem:[#allocation2 + $0x3d8] sm:$0xff] %v5130_v26  ;;  %2271 = vmatpush.msrb.mxu0 %v2031_v15  ;;  %1340 = vmatpush.msrb.mxu1 %v1098_v16  ;;  %v1095_v15 = vld [vmem:[#allocation7 + $0xa0] sm:$0xff] }
  0x84   : > { %1286 = vmatmul.f32.gmra.mxu3 %v5094_v49  ;;  %582 = vst [vmem:[#allocation2 + $0x558] sm:$0xff] %v5135_v28  ;;  %v279_v49 = vld [vmem:[%s4994_s14 + $0x128] sm:$0x7f]  ;;  %v5191_v25 = vsel %vm370_vm0, %v404_v59, %v405_v22  ;;  %1550 = vmatpush.msrb.mxu2 %v1113_v35  ;;  %v301_v35 = vld [vmem:[%s4994_s14 + $0x1d8] sm:$0x7f] }
  0x85   : > { %551 = vst [vmem:[#allocation2 + $0x210] sm:$0xfe] %v401_v24  ;;  %v943_v40 = vld [vmem:[#allocation2 + $0x1e0] sm:$0xff]  ;;  %v426_v52 = vrot.slane %v279_v49, 7  ;;  %v453_v24 = vrot.slane %v297_v19, 7  ;;  %1341 = vmatpush.msrb.mxu1 %v1097_v41  ;;  %v2012_v49 = vld [vmem:[#allocation7 + $0x1a8] sm:$0xff] }
  0x86   : > { %567 = vst [vmem:[#allocation2 + $0x3f0] sm:$0xfe] %v425_v27  ;;  %v991_v45 = vld [vmem:[#allocation2 + $0x3c0] sm:$0xff]  ;;  %1551 = vmatpush.msrb.mxu2 %v1112_v48 }
  0x87   : > { %1196 = vmatmul.f32.gmra.mxu1 %v397_v62  ;;  %583 = vst [vmem:[#allocation2 + $0x570] sm:$0xfe] %v449_v32  ;;  %v5160_v55 = vsel %vm370_vm0, %v425_v27, %v426_v52  ;;  %v452_v62 = vrot.slane %v296_v61, 7  ;;  %v1039_v10 = vld [vmem:[#allocation2 + $0x540] sm:$0xff]  ;;  %v2029_v52 = vld [vmem:[#allocation7 + $0x230] sm:$0xff] }
  0x88   : > { %1244 = vmatmul.f32.gmra.mxu2 %v421_v0  ;;  %534 = vst [vmem:[#allocation2 + $0x78] sm:$0xff] %v5143_v37  ;;  %v5153_v51 = vld [vmem:[#allocation2 + $0x60] sm:$0xff]  ;;  %1342 = vmatpush.msrb.mxu1 %v1096_v53  ;;  %v2026_v53 = vld [vmem:[#allocation7 + $0x218] sm:$0xff] }
  0x89   : > { %535 = vst [vmem:[#allocation2 + $0x90] sm:$0xfe] %v377_v38  ;;  %v2015_v0 = vld [vmem:[#allocation7 + $0x1c0] sm:$0xff]  ;;  %v5203_v33 = vsel %vm370_vm0, %v452_v62, %v453_v24  ;;  %v2010_v24 = vld [vmem:[#allocation7 + $0x198] sm:$0xff] }
  0x8a   : > { %1148 = vmatmul.f32.gmra.mxu0 %v5113_v9  ;;  %661 = vst [vmem:[#allocation2 + $0x68] sm:$0xff] %v5106_v2  ;;  %2062 = vmatpush.msrb.mxu3 %v2015_v0  ;;  %v282_v27 = vld [vmem:[%s4994_s14 + $0x140] sm:$0xff]  ;;  %v284_v0 = vld [vmem:[%s4994_s14 + $0x150] sm:$0xff] }
  0x8b   : > { %663 = vst [vmem:[#allocation2 + $0x98] sm:$0xff] %v5140_v36  ;;  %v431_v31 = vrot.slane %v282_v27, 7  ;;  %v298_v32 = vld [vmem:[%s4994_s14 + $0x1c0] sm:$0xff]  ;;  %v434_v5 = vrot.slane %v284_v0, 7  ;;  %1343 = vmatpush.msrb.mxu1 %v1095_v15  ;;  %v1094_v27 = vld [vmem:[#allocation7 + $0x98] sm:$0xff]  ;;  %v2008_v0 = vld [vmem:[#allocation7 + $0x188] sm:$0xff] }
  0x8c   : > { %1289 = vmatmul.f32.gmra.mxu3 %v1033_v39  ;;  %552 = vst [vmem:[#allocation2 + $0x228] sm:$0xff] %v5156_v54  ;;  %v949_v11 = vld [vmem:[#allocation2 + $0x210] sm:$0xff]  ;;  %v455_v34 = vrot.slane %v298_v32, 7  ;;  %v2030_v39 = vld [vmem:[#allocation7 + $0x238] sm:$0xff]  ;;  %v286_v41 = vld [vmem:[%s4994_s14 + $0x160] sm:$0xff] }
  0x8d   : > { %568 = vst [vmem:[#allocation2 + $0x408] sm:$0xff] %v5160_v55  ;;  %v997_v14 = vld [vmem:[#allocation2 + $0x3f0] sm:$0xff]  ;;  %2063 = vmatpush.msrb.mxu3 %v2014_v13  ;;  %2272 = vmatpush.msrb.mxu0 %v2030_v39  ;;  %v2028_v13 = vld [vmem:[#allocation7 + $0x228] sm:$0xff] }
  0x8e   : > { %584 = vst [vmem:[#allocation2 + $0x588] sm:$0xff] %v5167_v58  ;;  %v1045_v46 = vld [vmem:[#allocation2 + $0x570] sm:$0xff]  ;;  %1344 = vmatpush.msrb.mxu1 %v1094_v27 }
  0x8f   : > { %1199 = vmatmul.f32.gmra.mxu1 %v943_v40  ;;  %553 = vst [vmem:[#allocation2 + $0x240] sm:$0xfe] %v404_v59  ;;  %v249_v40 = vld [vmem:[%s4994_s14 + $0x38] sm:$0x7f]  ;;  %2273 = vmatpush.msrb.mxu0 %v2029_v52  ;;  %v2009_v52 = vld [vmem:[#allocation7 + $0x190] sm:$0xff] }
  0x90   : > { %1247 = vmatmul.f32.gmra.mxu2 %v991_v45  ;;  %569 = vst [vmem:[#allocation2 + $0x420] sm:$0xfe] %v428_v60  ;;  %v5188_v21 = vld [vmem:[#allocation2 + $0x90] sm:$0xff]  ;;  %v381_v43 = vrot.slane %v249_v40, 7  ;;  %v383_v45 = vrot.slane %v5210_v44, 7  ;;  %v270_v40 = vld [vmem:[%s4994_s14 + $0xe0] sm:$0xff] }
  0x91   : > { %585 = vst [vmem:[#allocation2 + $0x5a0] sm:$0xfe] %v452_v62  ;;  %2274 = vmatpush.msrb.mxu0 %v2028_v13 }
  0x92   : > { %1151 = vmatmul.f32.gmra.mxu0 %v5153_v51  ;;  %665 = vst [vmem:[#allocation2 + $0xc8] sm:$0xff] %v5175_v7 }
  0x93   : > { %537 = vst [vmem:[#allocation2 + $0xc0] sm:$0xfe] %v380_v8 }
  0x94   : > { %1292 = vmatmul.f32.gmra.mxu3 %v5109_v3  ;;  %v5179_v3 = vsel %vm370_vm0, %v377_v38, %v378_v6  ;;  %554 = vst [vmem:[#allocation2 + $0x258] sm:$0xff] %v5191_v25  ;;  %v2013_v38 = vld [vmem:[#allocation7 + $0x1b0] sm:$0xff] }
  0x95   : > { %536 = vst [vmem:[#allocation2 + $0xa8] sm:$0xff] %v5179_v3  ;;  %2064 = vmatpush.msrb.mxu3 %v2013_v38  ;;  %v300_v6 = vld [vmem:[%s4994_s14 + $0x1d0] sm:$0xff]  ;;  %v459_v38 = vrot.slane %v301_v35, 7  ;;  %v3099_v35 = vld [vmem:[#allocation7 + $0x3f8] sm:$0xff] }
  0x96   : > { %586 = vst [vmem:[#allocation2 + $0x5b8] sm:$0xff] %v5203_v33  ;;  %v955_v47 = vld [vmem:[#allocation2 + $0x240] sm:$0xff] }
  0x97   : > { %1202 = vmatmul.f32.gmra.mxu1 %v5125_v23  ;;  %v429_v23 = vrot.slane %v281_v18, 7  ;;  %571 = vst [vmem:[#allocation2 + $0x450] sm:$0xfe] %v431_v31  ;;  %v1003_v50 = vld [vmem:[#allocation2 + $0x420] sm:$0xff]  ;;  %2065 = vmatpush.msrb.mxu3 %v2012_v49  ;;  %v386_v18 = vrot.slane %v5245_v17, 7 }
  0x98   : > { %1250 = vmatmul.f32.gmra.mxu2 %v5130_v26  ;;  %v266_v26 = vld [vmem:[%s4994_s14 + $0xc0] sm:$0xff]  ;;  %587 = vst [vmem:[#allocation2 + $0x5d0] sm:$0xfe] %v455_v34 }
  0x99   : > { %v5198_v29 = vsel %vm370_vm0, %v428_v60, %v429_v23  ;;  %v407_v30 = vrot.slane %v266_v26, 7  ;;  %667 = vst [vmem:[#allocation2 + $0xf8] sm:$0xff] %v5210_v44  ;;  %v299_v60 = vld [vmem:[%s4994_s14 + $0x1c8] sm:$0x7f]  ;;  %2066 = vmatpush.msrb.mxu3 %v2011_v12  ;;  %v1051_v19 = vld [vmem:[#allocation2 + $0x5a0] sm:$0xff]  ;;  %v1110_v23 = vld [vmem:[#allocation7 + $0x118] sm:$0xff] }
  0x9a   : > { %1154 = vmatmul.f32.gmra.mxu0 %v5143_v37  ;;  %570 = vst [vmem:[#allocation2 + $0x438] sm:$0xff] %v5198_v29  ;;  %v5222_v56 = vld [vmem:[#allocation2 + $0xc0] sm:$0xff]  ;;  %v456_v61 = vrot.slane %v299_v60, 7 }
  0x9b   : > { %555 = vst [vmem:[#allocation2 + $0x270] sm:$0xfe] %v407_v30  ;;  %2067 = vmatpush.msrb.mxu3 %v2010_v24  ;;  %v2027_v26 = vld [vmem:[#allocation7 + $0x220] sm:$0xff]  ;;  %v2024_v24 = vld [vmem:[#allocation7 + $0x208] sm:$0xff] }
  0x9c   : > { %1295 = vmatmul.f32.gmra.mxu3 %v1039_v10  ;;  %539 = vst [vmem:[#allocation2 + $0xf0] sm:$0xfe] %v383_v45  ;;  %v458_v10 = vrot.slane %v300_v6, 7  ;;  %2275 = vmatpush.msrb.mxu0 %v2027_v26  ;;  %v271_v6 = vld [vmem:[%s4994_s14 + $0xe8] sm:$0x7f]  ;;  %v1091_v26 = vld [vmem:[#allocation7 + $0x80] sm:$0xff] }
  0x9d   : > { %557 = vst [vmem:[#allocation2 + $0x2a0] sm:$0xfe] %v410_v4  ;;  %2068 = vmatpush.msrb.mxu3 %v2009_v52  ;;  %v414_v12 = vrot.slane %v271_v6, 7 }
  0x9e   : > { %573 = vst [vmem:[#allocation2 + $0x480] sm:$0xfe] %v434_v5  ;;  %v5273_v48 = vsel %vm370_vm0, %v458_v10, %v459_v38  ;;  %2276 = vmatpush.msrb.mxu0 %v2026_v53 }
  0x9f   : > { %1205 = vmatmul.f32.gmra.mxu1 %v949_v11  ;;  %v1111_v11 = vld [vmem:[#allocation7 + $0x120] sm:$0xff]  ;;  %589 = vst [vmem:[#allocation2 + $0x600] sm:$0xfe] %v458_v10  ;;  %2069 = vmatpush.msrb.mxu3 %v2008_v0  ;;  %v287_v10 = vld [vmem:[%s4994_s14 + $0x168] sm:$0x7f]  ;;  %v3098_v0 = vld [vmem:[#allocation7 + $0x3f0] sm:$0xff] }
  0xa0   : > { %1253 = vmatmul.f32.gmra.mxu2 %v997_v14  ;;  %v251_v14 = vld [vmem:[%s4994_s14 + $0x48] sm:$0x7f]  ;;  %669 = vst [vmem:[#allocation2 + $0x128] sm:$0xff] %v5245_v17  ;;  %v438_v13 = vrot.slane %v287_v10, 7  ;;  %v3114_v10 = vld [vmem:[#allocation7 + $0x470] sm:$0xff] }
  0xa1   : > { %1552 = vmatpush.msrb.mxu2 %v1111_v11  ;;  %v384_v16 = vrot.slane %v251_v14, 7  ;;  %541 = vst [vmem:[#allocation2 + $0x120] sm:$0xfe] %v386_v18  ;;  %v303_v14 = vld [vmem:[%s4994_s14 + $0x1e8] sm:$0x7f] }
  0xa2   : > { %1157 = vmatmul.f32.gmra.mxu0 %v5188_v21  ;;  %v961_v22 = vld [vmem:[#allocation2 + $0x270] sm:$0xff]  ;;  %590 = vst [vmem:[#allocation2 + $0x618] sm:$0xff] %v5273_v48  ;;  %v462_v15 = vrot.slane %v303_v14, 7  ;;  %v600_v14 = vld [vmem:[%s4994_s14 + $0x28] sm:$0xff] }
  0xa3   : > { %1553 = vmatpush.msrb.mxu2 %v1110_v23  ;;  %v2007_v23 = vld [vmem:[#allocation7 + $0x180] sm:$0xff]  ;;  %664 = vst [vmem:[#allocation2 + $0xb0] sm:$0xff] %v600_v14 }
  0xa4   : > { %1298 = vmatmul.f32.gmra.mxu3 %v5135_v28  ;;  %v5214_v28 = vsel %vm370_vm0, %v380_v8, %v381_v43  ;;  %v5238_v8 = vsel %vm370_vm0, %v455_v34, %v456_v61  ;;  %v1057_v61 = vld [vmem:[#allocation2 + $0x5d0] sm:$0xff] }
  0xa5   : > { %538 = vst [vmem:[#allocation2 + $0xd8] sm:$0xff] %v5214_v28  ;;  %2070 = vmatpush.msrb.mxu3 %v2007_v23 }
  0xa6   : > { %588 = vst [vmem:[#allocation2 + $0x5e8] sm:$0xff] %v5238_v8 }
  0xa7   : > { %1208 = vmatmul.f32.gmra.mxu1 %v5156_v54  ;;  %v267_v54 = vld [vmem:[%s4994_s14 + $0xc8] sm:$0x7f]  ;;  %3325 = vmatpush.msra.mxu3 %v3099_v35 }
  0xa8   : > { %1256 = vmatmul.f32.gmra.mxu2 %v5160_v55  ;;  %v283_v55 = vld [vmem:[%s4994_s14 + $0x148] sm:$0x7f]  ;;  %v408_v57 = vrot.slane %v267_v54, 7  ;;  %v253_v54 = vld [vmem:[%s4994_s14 + $0x58] sm:$0x7f]  ;;  %v5292_v11 = vld [vmem:[#allocation2 + $0x120] sm:$0xff] }
  0xa9   : > { %v432_v59 = vrot.slane %v283_v55, 7  ;;  %v1093_v55 = vld [vmem:[#allocation7 + $0x90] sm:$0xff]  ;;  %3326 = vmatpush.msra.mxu3 %v3098_v0 }
  0xaa   : > { %1160 = vmatmul.f32.gmra.mxu0 %v5179_v3  ;;  %v5226_v62 = vsel %vm370_vm0, %v407_v30, %v408_v57  ;;  %v285_v30 = vld [vmem:[%s4994_s14 + $0x158] sm:$0x7f]  ;;  %v387_v57 = vrot.slane %v253_v54, 7  ;;  %1345 = vmatpush.msrb.mxu1 %v1093_v55 }
  0xab   : > { %556 = vst [vmem:[#allocation2 + $0x288] sm:$0xff] %v5226_v62  ;;  %v5233_v1 = vsel %vm370_vm0, %v431_v31, %v432_v59  ;;  %v5257_v31 = vld [vmem:[#allocation2 + $0xf0] sm:$0xff]  ;;  %v435_v34 = vrot.slane %v285_v30, 7  ;;  %v5280_v59 = vld [vmem:[%s4994_s14 + $0x60] sm:$0xff]  ;;  %v598_v55 = vld [vmem:[%s4994_s14 + $0x18] sm:$0xff] }
  0xac   : > { %1301 = vmatmul.f32.gmra.mxu3 %v1045_v46  ;;  %572 = vst [vmem:[#allocation2 + $0x468] sm:$0xff] %v5233_v1  ;;  %v437_v46 = vrot.slane %v286_v41, 7  ;;  %v389_v60 = vrot.slane %v5280_v59, 7  ;;  %v1063_v30 = vld [vmem:[#allocation2 + $0x600] sm:$0xff]  ;;  %v3115_v41 = vld [vmem:[#allocation7 + $0x478] sm:$0xff] }
  0xad   : > { %v5268_v43 = vsel %vm370_vm0, %v434_v5, %v435_v34  ;;  %671 = vst [vmem:[#allocation2 + $0x158] sm:$0xff] %v5280_v59  ;;  %v1092_v5 = vld [vmem:[#allocation7 + $0x88] sm:$0xff]  ;;  %v3083_v34 = vld [vmem:[#allocation7 + $0x378] sm:$0xff] }
  0xae   : > { %574 = vst [vmem:[#allocation2 + $0x498] sm:$0xff] %v5268_v43  ;;  %1346 = vmatpush.msrb.mxu1 %v1092_v5  ;;  %v2053_v5 = vld [vmem:[#allocation7 + $0x2f0] sm:$0xff] }
  0xaf   : > { %1211 = vmatmul.f32.gmra.mxu1 %v955_v47  ;;  %v302_v47 = vld [vmem:[%s4994_s14 + $0x1e0] sm:$0xff]  ;;  %575 = vst [vmem:[#allocation2 + $0x4b0] sm:$0xfe] %v437_v46 }
  0xb0   : > { %1259 = vmatmul.f32.gmra.mxu2 %v1003_v50  ;;  %v461_v49 = vrot.slane %v302_v47, 7  ;;  %v1109_v50 = vld [vmem:[#allocation7 + $0x110] sm:$0xff]  ;;  %543 = vst [vmem:[#allocation2 + $0x150] sm:$0xfe] %v389_v60  ;;  %1347 = vmatpush.msrb.mxu1 %v1091_v26 }
  0xb1   : > { %1554 = vmatpush.msrb.mxu2 %v1109_v50  ;;  %v756_v50 = vld [vmem:[%s4994_s14 + $0x9] sm:$0x7f]  ;;  %662 = vst [vmem:[#allocation2 + $0x80] sm:$0xff] %v598_v55 }
  0xb2   : > { %1163 = vmatmul.f32.gmra.mxu0 %v5222_v56  ;;  %591 = vst [vmem:[#allocation2 + $0x630] sm:$0xfe] %v461_v49 }
  0xb3   : > { %1555 = vmatpush.msrb.mxu2 %v1108_v63  ;;  %820 = vst [vmem:[#allocation2 + $0x58] sm:$0x7f] %v756_v50  ;;  %v3082_v63 = vld [vmem:[#allocation7 + $0x370] sm:$0xff]  ;;  %v604_v50 = vld [vmem:[%s4994_s14 + $0x48] sm:$0xff] }
  0xb4   : > { %1304 = vmatmul.f32.gmra.mxu3 %v5167_v58  ;;  %v5249_v58 = vsel %vm370_vm0, %v383_v45, %v384_v16  ;;  %v413_v45 = vrot.slane %v270_v40, 7  ;;  %v2054_v40 = vld [vmem:[#allocation7 + $0x2f8] sm:$0xff]  ;;  %668 = vst [vmem:[#allocation2 + $0x110] sm:$0xff] %v604_v50 }
  0xb5   : > { %540 = vst [vmem:[#allocation2 + $0x108] sm:$0xff] %v5249_v58  ;;  %2473 = vmatpush.msra.mxu1 %v2054_v40  ;;  %v2052_v40 = vld [vmem:[#allocation7 + $0x2e8] sm:$0xff] }
  0xb6   : > { %559 = vst [vmem:[#allocation2 + $0x2d0] sm:$0xfe] %v413_v45  ;;  %v415_v16 = vsel %vm370_vm0, %v413_v45, %v414_v12  ;;  %v1021_v38 = vld [vmem:[#allocation2 + $0x4b0] sm:$0xff] }
  0xb7   : > { %1214 = vmatmul.f32.gmra.mxu1 %v5191_v25  ;;  %v1009_v25 = vld [vmem:[#allocation2 + $0x450] sm:$0xff]  ;;  %560 = vst [vmem:[#allocation2 + $0x2e8] sm:$0xff] %v415_v16 }
  0xb8   : > { %1262 = vmatmul.f32.gmra.mxu2 %v5198_v29  ;;  %v269_v29 = vld [vmem:[%s4994_s14 + $0xd8] sm:$0x7f]  ;;  %2474 = vmatpush.msra.mxu1 %v2053_v5 }
  0xb9   : > { %v411_v32 = vrot.slane %v269_v29, 7  ;;  %v1069_v47 = vld [vmem:[#allocation2 + $0x630] sm:$0xff] }
  0xba   : > { %1166 = vmatmul.f32.gmra.mxu0 %v5214_v28  ;;  %v894_v12 = vld [vmem:[#allocation2 + $0x58] sm:$0xff]  ;;  %2475 = vmatpush.msra.mxu1 %v2052_v40 }
  0xbb   : > { %v5261_v39 = vsel %vm370_vm0, %v410_v4, %v411_v32  ;;  %v2025_v4 = vld [vmem:[#allocation7 + $0x210] sm:$0xff]  ;;  %v2023_v32 = vld [vmem:[#allocation7 + $0x200] sm:$0xff] }
  0xbc   : > { %1307 = vmatmul.f32.gmra.mxu3 %v1051_v19  ;;  %558 = vst [vmem:[#allocation2 + $0x2b8] sm:$0xff] %v5261_v39  ;;  %2277 = vmatpush.msrb.mxu0 %v2025_v4  ;;  %v463_v19 = vsel %vm370_vm0, %v461_v49, %v462_v15  ;;  %v759_v15 = vld [vmem:[%s4994_s14 + $0x21] sm:$0xff] }
  0xbd   : > { %592 = vst [vmem:[#allocation2 + $0x648] sm:$0xff] %v463_v19 }
  0xbe   : > { %2278 = vmatpush.msrb.mxu0 %v2024_v24  ;;  %823 = vst [vmem:[#allocation2 + $0xa0] sm:$0xff] %v759_v15 }
  0xbf   : > { %1217 = vmatmul.f32.gmra.mxu1 %v961_v22  ;;  %v1107_v22 = vld [vmem:[#allocation7 + $0x100] sm:$0xff] }
  0xc0   : > { %1265 = vmatmul.f32.gmra.mxu2 %v1009_v25  ;;  %v255_v25 = vld [vmem:[%s4994_s14 + $0x68] sm:$0x7f]  ;;  %2279 = vmatpush.msrb.mxu0 %v2023_v32 }
  0xc1   : > { %1556 = vmatpush.msrb.mxu2 %v1107_v22  ;;  %v390_v27 = vrot.slane %v255_v25, 7  ;;  %v3081_v32 = vld [vmem:[#allocation7 + $0x368] sm:$0xff] }
  0xc2   : > { %1169 = vmatmul.f32.gmra.mxu0 %v5257_v31 }
  0xc3   : > { %v5304_v29 = vsel %vm370_vm0, %v389_v60, %v390_v27  ;;  %3116 = vmatpush.msra.mxu2 %v3083_v34  ;;  %3534 = vmatpush.msra.mxu0 %v3115_v41  ;;  %v602_v27 = vld [vmem:[%s4994_s14 + $0x38] sm:$0xff]  ;;  %v3097_v34 = vld [vmem:[#allocation7 + $0x3e8] sm:$0xff] }
  0xc4   : > { %1310 = vmatmul.f32.gmra.mxu3 %v5203_v33  ;;  %v5284_v33 = vsel %vm370_vm0, %v386_v18, %v387_v57  ;;  %v439_v18 = vsel %vm370_vm0, %v437_v46, %v438_v13  ;;  %544 = vst [vmem:[#allocation2 + $0x168] sm:$0xff] %v5304_v29  ;;  %v755_v46 = vld [vmem:[%s4994_s14 + $0x1] sm:$0xff]  ;;  %v757_v57 = vld [vmem:[%s4994_s14 + $0x11] sm:$0xff] }
  0xc5   : > { %542 = vst [vmem:[#allocation2 + $0x138] sm:$0xff] %v5284_v33  ;;  %3117 = vmatpush.msra.mxu2 %v3082_v63  ;;  %3535 = vmatpush.msra.mxu0 %v3114_v10 }
  0xc6   : > { %576 = vst [vmem:[#allocation2 + $0x4c8] sm:$0xff] %v439_v18  ;;  %3327 = vmatpush.msra.mxu3 %v3097_v34  ;;  %v2051_v34 = vld [vmem:[#allocation7 + $0x2e0] sm:$0xff] }
  0xc7   : > { %1220 = vmatmul.f32.gmra.mxu1 %v5226_v62  ;;  %v967_v62 = vld [vmem:[#allocation2 + $0x2a0] sm:$0xff]  ;;  %819 = vst [vmem:[#allocation2 + $0x40] sm:$0xff] %v755_v46  ;;  %3118 = vmatpush.msra.mxu2 %v3081_v32 }
  0xc8   : > { %1268 = vmatmul.f32.gmra.mxu2 %v5233_v1  ;;  %v1015_v1 = vld [vmem:[#allocation2 + $0x480] sm:$0xff]  ;;  %821 = vst [vmem:[#allocation2 + $0x70] sm:$0xff] %v757_v57  ;;  %2476 = vmatpush.msra.mxu1 %v2051_v34  ;;  %v609_v34 = vld [vmem:[%s4994_s14 + $0x70] sm:$0xff] }
  0xc9   : > { %666 = vst [vmem:[#allocation2 + $0xe0] sm:$0xff] %v602_v27 }
  0xca   : > { %1172 = vmatmul.f32.gmra.mxu0 %v5249_v58  ;;  %673 = vst [vmem:[#allocation2 + $0x188] sm:$0xff] %v609_v34 }
  0xcc   : > { %1313 = vmatmul.f32.gmra.mxu3 %v1057_v61  ;;  %v758_v61 = vld [vmem:[%s4994_s14 + $0x19] sm:$0x7f] }
  0xcd   : > { %822 = vst [vmem:[#allocation2 + $0x88] sm:$0x7f] %v758_v61  ;;  %v764_v61 = vld [vmem:[%s4994_s14 + $0x49] sm:$0x7f] }
  0xce   : > { %v5313_v45 = vpop.f32.mrf.mxu1  ;;  %828 = vst [vmem:[#allocation2 + $0x118] sm:$0x7f] %v764_v61 }
  0xcf   : > { %1223 = vmatmul.f32.gmra.mxu1 %v967_v62  ;;  %7099 = vst [vmem:[#allocation13_spill] sm:$0xff] %v5313_v45  ;;  %v1889_v45 = vld [vmem:[#allocation2 + $0x288] sm:$0xff] }
  0xd0   : > { %1271 = vmatmul.f32.gmra.mxu2 %v1015_v1  ;;  %v5317_v49 = vpop.f32.mrf.mxu0 }
  0xd2   : > { %1175 = vmatmul.f32.gmra.mxu0 %v5292_v11 }
  0xd4   : > { %1316 = vmatmul.f32.gmra.mxu3 %v5238_v8  ;;  %v973_v8 = vld [vmem:[#allocation2 + $0x2d0] sm:$0xff] }
  0xd5   : > { %v5323_v52 = vpop.f32.mrf.mxu2 }
  0xd6   : > { %7100 = vst [vmem:[#allocation14_spill] sm:$0xff] %v5323_v52  ;;  %v5326_v53 = vpop.f32.mrf.mxu1  ;;  %v778_v52 = vld [vmem:[%s4994_s14 + $0xb9] sm:$0x7f] }
  0xd7   : > { %1226 = vmatmul.f32.gmra.mxu1 %v5261_v39  ;;  %v5308_v39 = vld [vmem:[#allocation2 + $0x150] sm:$0xff]  ;;  %7101 = vst [vmem:[#allocation15_spill] sm:$0xff] %v5326_v53  ;;  %v2047_v53 = vld [vmem:[#allocation7 + $0x2c0] sm:$0xff] }
  0xd8   : > { %1274 = vmatmul.f32.gmra.mxu2 %v5268_v43  ;;  %v596_v43 = vld [vmem:[%s4994_s14 + $0x8] sm:$0xff]  ;;  %v5329_v54 = vpop.f32.mrf.mxu0  ;;  %842 = vst [vmem:[#allocation2 + $0x268] sm:$0x7f] %v778_v52 }
  0xda   : > { %1178 = vmatmul.f32.gmra.mxu0 %v5284_v33 }
  0xdc   : > { %1319 = vmatmul.f32.gmra.mxu3 %v1063_v30 }
  0xdd   : > { %v5335_v60 = vpop.f32.mrf.mxu2 }
  0xde   : > { %7102 = vst [vmem:[#allocation16_spill] sm:$0xff] %v5335_v60 }
  0xdf   : > { %1229 = vmatmul.f32.gmra.mxu1 %v973_v8  ;;  %v762_v8 = vld [vmem:[%s4994_s14 + $0x39] sm:$0x7f] }
  0xe0   : > { %1277 = vmatmul.f32.gmra.mxu2 %v1021_v38  ;;  %826 = vst [vmem:[#allocation2 + $0xe8] sm:$0x7f] %v762_v8  ;;  %v3096_v8 = vld [vmem:[#allocation7 + $0x3e0] sm:$0xff] }
  0xe1   : > { %3328 = vmatpush.msra.mxu3 %v3096_v8 }
  0xe2   : > { %1181 = vmatmul.f32.gmra.mxu0 %v5308_v39 }
  0xe4   : > { %1322 = vmatmul.f32.gmra.mxu3 %v5273_v48  ;;  %v5320_v48 = vld [vmem:[#allocation2] sm:$0xff] }
  0xe7   : > { %1232 = vmatmul.f32.gmra.mxu1 %v415_v16 }
  0xe8   : > { %1280 = vmatmul.f32.gmra.mxu2 %v439_v18  ;;  %v760_v18 = vld [vmem:[%s4994_s14 + $0x29] sm:$0x7f] }
  0xe9   : > { %824 = vst [vmem:[#allocation2 + $0xb8] sm:$0x7f] %v760_v18 }
  0xea   : > { %1184 = vmatmul.f32.gmra.mxu0 %v5304_v29 }
  0xec   : > { %1325 = vmatmul.f32.gmra.mxu3 %v1069_v47 }
  0xef   : > { %1348 = vmatmul.f32.vlgmr.msrb.gmra.mxu1 %v5320_v48 }
  0xf0   : > { %1557 = vmatmul.f32.vlgmr.msrb.gmra.mxu2 %v5320_v48 }
  0xf2   : > { %2280 = vmatmul.f32.vlgmr.msrb.gmra.mxu0 %v5088_v42 }
  0xf4   : > { %1328 = vmatmul.f32.gmra.mxu3 %v463_v19 }
  0xf7   : > { %1351 = vmatmul.f32.gmra.mxu1 %v5320_v48 }
  0xf8   : > { %1560 = vmatmul.f32.gmra.mxu2 %v5320_v48 }
  0xfa   : > { %2283 = vmatmul.f32.gmra.mxu0 %v596_v43 }
  0xfc   : > { %2071 = vmatmul.f32.vlgmr.msrb.gmra.mxu3 %v5119_v20  ;;  %v5339_v62 = vpop.f32.mrf.mxu1 }
  0xfd   : > { %7103 = vst [vmem:[#allocation17_spill] sm:$0xff] %v5339_v62  ;;  %v5595_v62 = vld [vmem:[%s4994_s14 + $0xe0] sm:$0xff] }
  0xfe   : > { %687 = vst [vmem:[#allocation2 + $0x2d8] sm:$0xff] %v5595_v62 }
  0xff   : > { %v5341_v1 = vpop.f32.mrf.mxu3  ;;  %1354 = vmatmul.f32.gmra.mxu1 %v5088_v42  ;;  %v5344_v4 = vpop.f32.mrf.mxu0 }
 0x100   : > { %7104 = vst [vmem:[#allocation18_spill] sm:$0xff] %v5341_v1  ;;  %1563 = vmatmul.f32.gmra.mxu2 %v755_v46  ;;  %v906_v46 = vld [vmem:[#allocation2 + $0xb8] sm:$0xff] }
 0x102   : > { %2286 = vmatmul.f32.gmra.mxu0 %v5106_v2 }
 0x103   : > { %v5347_v20 = vpop.f32.mrf.mxu2 }
 0x104   : > { %7105 = vst [vmem:[#allocation19_spill] sm:$0xff] %v5347_v20  ;;  %2074 = vmatmul.f32.gmra.mxu3 %v5113_v9  ;;  %v5350_v6 = vpop.f32.mrf.mxu1 }
 0x105   : > { %7106 = vst [vmem:[#allocation20_spill] sm:$0xff] %v5350_v6 }
 0x107   : > { %v5352_v13 = vpop.f32.mrf.mxu3  ;;  %1357 = vmatmul.f32.gmra.mxu1 %v596_v43  ;;  %v5354_v42 = vpop.f32.mrf.mxu0  ;;  %v3113_v43 = vld [vmem:[#allocation7 + $0x468] sm:$0xff] }
 0x108   : > { %7107 = vst [vmem:[#allocation21_spill] sm:$0xff] %v5352_v13  ;;  %1566 = vmatmul.f32.gmra.mxu2 %v894_v12  ;;  %3536 = vmatpush.msra.mxu0 %v3113_v43  ;;  %v3112_v43 = vld [vmem:[#allocation7 + $0x460] sm:$0xff] }
 0x10a   : > { %2289 = vmatmul.f32.gmra.mxu0 %v598_v55 }
 0x10b   : > { %v5358_v16 = vpop.f32.mrf.mxu2  ;;  %3537 = vmatpush.msra.mxu0 %v3112_v43 }
 0x10c   : > { %7108 = vst [vmem:[#allocation22_spill] sm:$0xff] %v5358_v16  ;;  %2077 = vmatmul.f32.gmra.mxu3 %v5153_v51  ;;  %v5362_v9 = vpop.f32.mrf.mxu1  ;;  %v900_v51 = vld [vmem:[#allocation2 + $0x88] sm:$0xff] }
 0x10d   : > { %7109 = vst [vmem:[#allocation23_spill] sm:$0xff] %v5362_v9 }
 0x10f   : > { %v5364_v19 = vpop.f32.mrf.mxu3  ;;  %1360 = vmatmul.f32.gmra.mxu1 %v5106_v2  ;;  %v5367_v22 = vpop.f32.mrf.mxu0  ;;  %v761_v2 = vld [vmem:[%s4994_s14 + $0x31] sm:$0xff] }
 0x110   : > { %7110 = vst [vmem:[#allocation24_spill] sm:$0xff] %v5364_v19  ;;  %1569 = vmatmul.f32.gmra.mxu2 %v757_v57 }
 0x111   : > { %825 = vst [vmem:[#allocation2 + $0xd0] sm:$0xff] %v761_v2 }
 0x112   : > { %2292 = vmatmul.f32.gmra.mxu0 %v5140_v36 }
 0x113   : > { %v5370_v23 = vpop.f32.mrf.mxu2 }
 0x114   : > { %7111 = vst [vmem:[#allocation25_spill] sm:$0xff] %v5370_v23  ;;  %2080 = vmatmul.f32.gmra.mxu3 %v5143_v37  ;;  %v5373_v24 = vpop.f32.mrf.mxu1 }
 0x115   : > { %7112 = vst [vmem:[#allocation26_spill] sm:$0xff] %v5373_v24  ;;  %v782_v24 = vld [vmem:[%s4994_s14 + $0xd9] sm:$0x7f] }
 0x116   : > { %846 = vst [vmem:[#allocation2 + $0x2c8] sm:$0x7f] %v782_v24 }
 0x117   : > { %v5375_v25 = vpop.f32.mrf.mxu3  ;;  %1363 = vmatmul.f32.gmra.mxu1 %v598_v55  ;;  %v5377_v26 = vpop.f32.mrf.mxu0  ;;  %v763_v55 = vld [vmem:[%s4994_s14 + $0x41] sm:$0xff] }
 0x118   : > { %7113 = vst [vmem:[#allocation27_spill] sm:$0xff] %v5375_v25  ;;  %1572 = vmatmul.f32.gmra.mxu2 %v900_v51  ;;  %v766_v51 = vld [vmem:[%s4994_s14 + $0x59] sm:$0x7f]  ;;  %v772_v25 = vld [vmem:[%s4994_s14 + $0x89] sm:$0x7f] }
 0x119   : > { %827 = vst [vmem:[#allocation2 + $0x100] sm:$0xff] %v763_v55 }
 0x11a   : > { %2295 = vmatmul.f32.gmra.mxu0 %v600_v14  ;;  %830 = vst [vmem:[#allocation2 + $0x148] sm:$0x7f] %v766_v51 }
 0x11b   : > { %v5381_v30 = vpop.f32.mrf.mxu2  ;;  %836 = vst [vmem:[#allocation2 + $0x1d8] sm:$0x7f] %v772_v25 }
 0x11c   : > { %7114 = vst [vmem:[#allocation28_spill] sm:$0xff] %v5381_v30  ;;  %2083 = vmatmul.f32.gmra.mxu3 %v5188_v21  ;;  %v5385_v37 = vpop.f32.mrf.mxu1 }
 0x11d   : > { %7115 = vst [vmem:[#allocation29_spill] sm:$0xff] %v5385_v37  ;;  %v781_v37 = vld [vmem:[%s4994_s14 + $0xd1] sm:$0xff] }
 0x11e   : > { %845 = vst [vmem:[#allocation2 + $0x2b0] sm:$0xff] %v781_v37 }
 0x11f   : > { %v5387_v35 = vpop.f32.mrf.mxu3  ;;  %1366 = vmatmul.f32.gmra.mxu1 %v5140_v36  ;;  %v5390_v38 = vpop.f32.mrf.mxu0 }
 0x120   : > { %7116 = vst [vmem:[#allocation30_spill] sm:$0xff] %v5387_v35  ;;  %1575 = vmatmul.f32.gmra.mxu2 %v759_v15  ;;  %v606_v15 = vld [vmem:[%s4994_s14 + $0x58] sm:$0xff]  ;;  %v771_v35 = vld [vmem:[%s4994_s14 + $0x81] sm:$0xff] }
 0x121   : > { %670 = vst [vmem:[#allocation2 + $0x140] sm:$0xff] %v606_v15 }
 0x122   : > { %2298 = vmatmul.f32.gmra.mxu0 %v5175_v7  ;;  %835 = vst [vmem:[#allocation2 + $0x1c0] sm:$0xff] %v771_v35 }
 0x123   : > { %v5393_v21 = vpop.f32.mrf.mxu2 }
 0x124   : > { %7117 = vst [vmem:[#allocation31_spill] sm:$0xff] %v5393_v21  ;;  %2086 = vmatmul.f32.gmra.mxu3 %v5179_v3  ;;  %v5396_v41 = vpop.f32.mrf.mxu1  ;;  %v776_v21 = vld [vmem:[%s4994_s14 + $0xa9] sm:$0x7f] }
 0x125   : > { %7118 = vst [vmem:[#allocation32_spill] sm:$0xff] %v5396_v41 }
 0x126   : > { %840 = vst [vmem:[#allocation2 + $0x238] sm:$0x7f] %v776_v21 }
 0x127   : > { %v5398_v47 = vpop.f32.mrf.mxu3  ;;  %1369 = vmatmul.f32.gmra.mxu1 %v600_v14  ;;  %v5400_v36 = vpop.f32.mrf.mxu0 }
 0x128   : > { %7119 = vst [vmem:[#allocation33_spill] sm:$0xff] %v5398_v47  ;;  %1578 = vmatmul.f32.gmra.mxu2 %v906_v46  ;;  %v918_v46 = vld [vmem:[#allocation2 + $0x118] sm:$0xff] }
 0x129   : > { %v2050_v47 = vld [vmem:[#allocation7 + $0x2d8] sm:$0xff] }
 0x12a   : > { %2301 = vmatmul.f32.gmra.mxu0 %v602_v27  ;;  %2477 = vmatpush.msra.mxu1 %v2050_v47  ;;  %v1856_v47 = vld [vmem:[#allocation2 + $0x180] sm:$0xff] }
 0x12b   : > { %v5404_v57 = vpop.f32.mrf.mxu2 }
 0x12c   : > { %7120 = vst [vmem:[#allocation34_spill] sm:$0xff] %v5404_v57  ;;  %2089 = vmatmul.f32.gmra.mxu3 %v5222_v56  ;;  %v5408_v3 = vpop.f32.mrf.mxu1  ;;  %v912_v56 = vld [vmem:[#allocation2 + $0xe8] sm:$0xff] }
 0x12d   : > { %7121 = vst [vmem:[#allocation35_spill] sm:$0xff] %v5408_v3  ;;  %v775_v57 = vld [vmem:[%s4994_s14 + $0xa1] sm:$0xff] }
 0x12e   : > { %839 = vst [vmem:[#allocation2 + $0x220] sm:$0xff] %v775_v57 }
 0x12f   : > { %v5410_v63 = vpop.f32.mrf.mxu3  ;;  %1372 = vmatmul.f32.gmra.mxu1 %v5175_v7  ;;  %v5413_v0 = vpop.f32.mrf.mxu0  ;;  %v765_v7 = vld [vmem:[%s4994_s14 + $0x51] sm:$0xff] }
 0x130   : > { %7122 = vst [vmem:[#allocation36_spill] sm:$0xff] %v5410_v63  ;;  %1581 = vmatmul.f32.gmra.mxu2 %v761_v2  ;;  %v3080_v2 = vld [vmem:[#allocation7 + $0x360] sm:$0xff]  ;;  %v3095_v63 = vld [vmem:[#allocation7 + $0x3d8] sm:$0xff] }
 0x131   : > { %829 = vst [vmem:[#allocation2 + $0x130] sm:$0xff] %v765_v7  ;;  %3119 = vmatpush.msra.mxu2 %v3080_v2  ;;  %3329 = vmatpush.msra.mxu3 %v3095_v63 }
 0x132   : > { %2304 = vmatmul.f32.gmra.mxu0 %v5210_v44 }
 0x133   : > { %v5416_v5 = vpop.f32.mrf.mxu2 }
 0x134   : > { %7123 = vst [vmem:[#allocation37_spill] sm:$0xff] %v5416_v5  ;;  %2092 = vmatmul.f32.gmra.mxu3 %v5214_v28  ;;  %v5419_v10 = vpop.f32.mrf.mxu1  ;;  %v1865_v5 = vld [vmem:[#allocation2 + $0x1c8] sm:$0xff] }
 0x135   : > { %7124 = vst [vmem:[#allocation38_spill] sm:$0xff] %v5419_v10  ;;  %v1883_v10 = vld [vmem:[#allocation2 + $0x258] sm:$0xff] }
 0x137   : > { %v5421_v12 = vpop.f32.mrf.mxu3  ;;  %1375 = vmatmul.f32.gmra.mxu1 %v602_v27  ;;  %v5423_v14 = vpop.f32.mrf.mxu0 }
 0x138   : > { %7125 = vst [vmem:[#allocation39_spill] sm:$0xff] %v5421_v12  ;;  %1584 = vmatmul.f32.gmra.mxu2 %v912_v56  ;;  %v767_v56 = vld [vmem:[%s4994_s14 + $0x61] sm:$0xff]  ;;  %v3079_v12 = vld [vmem:[#allocation7 + $0x358] sm:$0xff] }
 0x139   : > { %831 = vst [vmem:[#allocation2 + $0x160] sm:$0xff] %v767_v56  ;;  %3120 = vmatpush.msra.mxu2 %v3079_v12  ;;  %v3111_v12 = vld [vmem:[#allocation7 + $0x458] sm:$0xff] }
 0x13a   : > { %2307 = vmatmul.f32.gmra.mxu0 %v604_v50 }
 0x13b   : > { %v5427_v18 = vpop.f32.mrf.mxu2  ;;  %3538 = vmatpush.msra.mxu0 %v3111_v12 }
 0x13c   : > { %7126 = vst [vmem:[#allocation40_spill] sm:$0xff] %v5427_v18  ;;  %2095 = vmatmul.f32.gmra.mxu3 %v5257_v31  ;;  %v5431_v28 = vpop.f32.mrf.mxu1  ;;  %v2049_v18 = vld [vmem:[#allocation7 + $0x2d0] sm:$0xff] }
 0x13d   : > { %7127 = vst [vmem:[#allocation41_spill] sm:$0xff] %v5431_v28  ;;  %2478 = vmatpush.msra.mxu1 %v2049_v18  ;;  %v1868_v18 = vld [vmem:[#allocation2 + $0x1e0] sm:$0xff]  ;;  %v780_v28 = vld [vmem:[%s4994_s14 + $0xc9] sm:$0x7f] }
 0x13e   : > { %844 = vst [vmem:[#allocation2 + $0x298] sm:$0x7f] %v780_v28  ;;  %v960_v28 = vld [vmem:[#allocation2 + $0x268] sm:$0xff] }
 0x13f   : > { %v5433_v27 = vpop.f32.mrf.mxu3  ;;  %1378 = vmatmul.f32.gmra.mxu1 %v5210_v44  ;;  %v5436_v32 = vpop.f32.mrf.mxu0 }
 0x140   : > { %7128 = vst [vmem:[#allocation42_spill] sm:$0xff] %v5433_v27  ;;  %1587 = vmatmul.f32.gmra.mxu2 %v763_v55  ;;  %v608_v55 = vld [vmem:[%s4994_s14 + $0x68] sm:$0xff]  ;;  %v770_v27 = vld [vmem:[%s4994_s14 + $0x79] sm:$0x7f] }
 0x141   : > { %672 = vst [vmem:[#allocation2 + $0x170] sm:$0xff] %v608_v55 }
 0x142   : > { %2310 = vmatmul.f32.gmra.mxu0 %v5245_v17  ;;  %834 = vst [vmem:[#allocation2 + $0x1a8] sm:$0x7f] %v770_v27 }
 0x143   : > { %v5439_v31 = vpop.f32.mrf.mxu2 }
 0x144   : > { %7129 = vst [vmem:[#allocation43_spill] sm:$0xff] %v5439_v31  ;;  %2098 = vmatmul.f32.gmra.mxu3 %v5249_v58  ;;  %v5442_v40 = vpop.f32.mrf.mxu1  ;;  %v768_v58 = vld [vmem:[%s4994_s14 + $0x69] sm:$0x7f]  ;;  %v615_v31 = vld [vmem:[%s4994_s14 + $0xa0] sm:$0xff] }
 0x145   : > { %7130 = vst [vmem:[#allocation44_spill] sm:$0xff] %v5442_v40  ;;  %v779_v40 = vld [vmem:[%s4994_s14 + $0xc1] sm:$0xff] }
 0x146   : > { %832 = vst [vmem:[#allocation2 + $0x178] sm:$0x7f] %v768_v58 }
 0x147   : > { %v5444_v61 = vpop.f32.mrf.mxu3  ;;  %1381 = vmatmul.f32.gmra.mxu1 %v604_v50  ;;  %v5446_v44 = vpop.f32.mrf.mxu0  ;;  %679 = vst [vmem:[#allocation2 + $0x218] sm:$0xff] %v615_v31 }
 0x148   : > { %7131 = vst [vmem:[#allocation45_spill] sm:$0xff] %v5444_v61  ;;  %1590 = vmatmul.f32.gmra.mxu2 %v918_v46  ;;  %v924_v46 = vld [vmem:[#allocation2 + $0x148] sm:$0xff] }
 0x149   : > { %7132 = vst [vmem:[#allocation46_spill] sm:$0xff] %v5446_v44 }
 0x14a   : > { %2313 = vmatmul.f32.gmra.mxu0 %v606_v15  ;;  %843 = vst [vmem:[#allocation2 + $0x280] sm:$0xff] %v779_v40 }
 0x14b   : > { %v5450_v51 = vpop.f32.mrf.mxu2 }
 0x14c   : > { %7133 = vst [vmem:[#allocation47_spill] sm:$0xff] %v5450_v51  ;;  %2101 = vmatmul.f32.gmra.mxu3 %v5292_v11  ;;  %v5454_v2 = vpop.f32.mrf.mxu1  ;;  %v3094_v51 = vld [vmem:[#allocation7 + $0x3d0] sm:$0xff] }
 0x14d   : > { %7134 = vst [vmem:[#allocation48_spill] sm:$0xff] %v5454_v2  ;;  %v930_v27 = vld [vmem:[#allocation2 + $0x178] sm:$0xff]  ;;  %3330 = vmatpush.msra.mxu3 %v3094_v51  ;;  %v3110_v51 = vld [vmem:[#allocation7 + $0x450] sm:$0xff]  ;;  %v1877_v2 = vld [vmem:[#allocation2 + $0x228] sm:$0xff] }
 0x14e   : > { %3539 = vmatpush.msra.mxu0 %v3110_v51 }
 0x14f   : > { %v5456_v8 = vpop.f32.mrf.mxu3  ;;  %1384 = vmatmul.f32.gmra.mxu1 %v5245_v17  ;;  %v5459_v50 = vpop.f32.mrf.mxu0 }
 0x150   : > { %7135 = vst [vmem:[#allocation49_spill] sm:$0xff] %v5456_v8  ;;  %1593 = vmatmul.f32.gmra.mxu2 %v765_v7  ;;  %v610_v8 = vld [vmem:[%s4994_s14 + $0x78] sm:$0xff] }
 0x151   : > { %7136 = vst [vmem:[#allocation50_spill] sm:$0xff] %v5459_v50  ;;  %v769_v7 = vld [vmem:[%s4994_s14 + $0x71] sm:$0xff]  ;;  %v784_v50 = vld [vmem:[%s4994_s14 + $0xe9] sm:$0x7f] }
 0x152   : > { %2316 = vmatmul.f32.gmra.mxu0 %v5280_v59  ;;  %674 = vst [vmem:[#allocation2 + $0x1a0] sm:$0xff] %v610_v8 }
 0x153   : > { %v5463_v43 = vpop.f32.mrf.mxu2  ;;  %833 = vst [vmem:[#allocation2 + $0x190] sm:$0xff] %v769_v7 }
 0x154   : > { %7137 = vst [vmem:[#allocation51_spill] sm:$0xff] %v5463_v43  ;;  %2104 = vmatmul.f32.gmra.mxu3 %v5284_v33  ;;  %v5466_v11 = vpop.f32.mrf.mxu1  ;;  %v3078_v43 = vld [vmem:[#allocation7 + $0x350] sm:$0xff] }
 0x155   : > { %7138 = vst [vmem:[#allocation52_spill] sm:$0xff] %v5466_v11  ;;  %3121 = vmatpush.msra.mxu2 %v3078_v43  ;;  %v942_v43 = vld [vmem:[#allocation2 + $0x1d8] sm:$0xff]  ;;  %v2048_v11 = vld [vmem:[#allocation7 + $0x2c8] sm:$0xff] }
 0x156   : > { %2479 = vmatpush.msra.mxu1 %v2048_v11  ;;  %v1880_v11 = vld [vmem:[#allocation2 + $0x240] sm:$0xff]  ;;  %848 = vst [vmem:[#allocation2 + $0x2f8] sm:$0x7f] %v784_v50  ;;  %v972_v50 = vld [vmem:[#allocation2 + $0x2c8] sm:$0xff] }
 0x157   : > { %v5468_v58 = vpop.f32.mrf.mxu3  ;;  %1387 = vmatmul.f32.gmra.mxu1 %v606_v15  ;;  %v5470_v17 = vpop.f32.mrf.mxu0 }
 0x158   : > { %7139 = vst [vmem:[#allocation53_spill] sm:$0xff] %v5468_v58  ;;  %1596 = vmatmul.f32.gmra.mxu2 %v924_v46  ;;  %v611_v58 = vld [vmem:[%s4994_s14 + $0x80] sm:$0xff]  ;;  %2480 = vmatpush.msra.mxu1 %v2047_v53 }
 0x159   : > { %7140 = vst [vmem:[#allocation54_spill] sm:$0xff] %v5470_v17  ;;  %v783_v17 = vld [vmem:[%s4994_s14 + $0xe1] sm:$0xff] }
 0x15a   : > { %2319 = vmatmul.f32.gmra.mxu0 %v608_v55  ;;  %675 = vst [vmem:[#allocation2 + $0x1b8] sm:$0xff] %v611_v58 }
 0x15b   : > { %v5474_v61 = vpop.f32.mrf.mxu2  ;;  %847 = vst [vmem:[#allocation2 + $0x2e0] sm:$0xff] %v783_v17 }
 0x15c   : > { %7141 = vst [vmem:[#allocation55_spill] sm:$0xff] %v5474_v61  ;;  %2107 = vmatmul.f32.gmra.mxu3 %v5308_v39  ;;  %v5478_v33 = vpop.f32.mrf.mxu1  ;;  %v774_v61 = vld [vmem:[%s4994_s14 + $0x99] sm:$0x7f] }
 0x15d   : > { %7142 = vst [vmem:[#allocation56_spill] sm:$0xff] %v5478_v33  ;;  %v3093_v33 = vld [vmem:[#allocation7 + $0x3c8] sm:$0xff] }
 0x15e   : > { %838 = vst [vmem:[#allocation2 + $0x208] sm:$0x7f] %v774_v61  ;;  %3331 = vmatpush.msra.mxu3 %v3093_v33  ;;  %v3109_v33 = vld [vmem:[#allocation7 + $0x448] sm:$0xff] }
 0x15f   : > { %v5480_v15 = vpop.f32.mrf.mxu3  ;;  %1390 = vmatmul.f32.gmra.mxu1 %v5280_v59  ;;  %v5483_v46 = vpop.f32.mrf.mxu0  ;;  %3540 = vmatpush.msra.mxu0 %v3109_v33 }
 0x160   : > { %7143 = vst [vmem:[#allocation57_spill] sm:$0xff] %v5480_v15  ;;  %1599 = vmatmul.f32.gmra.mxu2 %v767_v56  ;;  %v612_v15 = vld [vmem:[%s4994_s14 + $0x88] sm:$0xff] }
 0x161   : > { %7144 = vst [vmem:[#allocation58_spill] sm:$0xff] %v5483_v46  ;;  %v1892_v46 = vld [vmem:[#allocation2 + $0x2a0] sm:$0xff] }
 0x162   : > { %2322 = vmatmul.f32.gmra.mxu0 %v609_v34  ;;  %676 = vst [vmem:[#allocation2 + $0x1d0] sm:$0xff] %v612_v15 }
 0x163   : > { %v5486_v39 = vpop.f32.mrf.mxu2 }
 0x164   : > { %7145 = vst [vmem:[#allocation59_spill] sm:$0xff] %v5486_v39  ;;  %2110 = vmatmul.f32.gmra.mxu3 %v5304_v29  ;;  %v5489_v63 = vpop.f32.mrf.mxu1 }
 0x165   : > { %7146 = vst [vmem:[#allocation60_spill] sm:$0xff] %v5489_v63  ;;  %v948_v16 = vld [vmem:[#allocation2 + $0x208] sm:$0xff] }
 0x166   : > { %v3077_v63 = vld [vmem:[#allocation7 + $0x348] sm:$0xff] }
 0x167   : > { %v5491_v59 = vpop.f32.mrf.mxu3  ;;  %1393 = vmatmul.f32.gmra.mxu1 %v608_v55  ;;  %v5493_v56 = vpop.f32.mrf.mxu0  ;;  %3122 = vmatpush.msra.mxu2 %v3077_v63 }
 0x168   : > { %7147 = vst [vmem:[#allocation61_spill] sm:$0xff] %v5491_v59  ;;  %1602 = vmatmul.f32.gmra.mxu2 %v930_v27  ;;  %v613_v27 = vld [vmem:[%s4994_s14 + $0x90] sm:$0xff]  ;;  %v1859_v59 = vld [vmem:[#allocation2 + $0x198] sm:$0xff] }
 0x169   : > { %7148 = vst [vmem:[#allocation62_spill] sm:$0xff] %v5493_v56  ;;  %v624_v56 = vld [vmem:[%s4994_s14 + $0xe8] sm:$0xff] }
 0x16a   : > { %2325 = vmatmul.f32.gmra.mxu0 %v610_v8  ;;  %677 = vst [vmem:[#allocation2 + $0x1e8] sm:$0xff] %v613_v27 }
 0x16b   : > { %v5497_v29 = vpop.f32.mrf.mxu2  ;;  %688 = vst [vmem:[#allocation2 + $0x2f0] sm:$0xff] %v624_v56 }
 0x16c   : > { %7149 = vst [vmem:[#allocation63_spill] sm:$0xff] %v5497_v29  ;;  %2113 = vmatmul.f32.gmra.mxu3 %v1856_v47  ;;  %v5500_v19 = vpop.f32.mrf.mxu1  ;;  %v936_v47 = vld [vmem:[#allocation2 + $0x1a8] sm:$0xff] }
 0x16f   : > { %v5502_v12 = vpop.f32.mrf.mxu3  ;;  %1396 = vmatmul.f32.gmra.mxu1 %v609_v34  ;;  %v2281_v55 = vpop.f32.mrf.mxu0  ;;  %v614_v34 = vld [vmem:[%s4994_s14 + $0x98] sm:$0xff] }
 0x170   : > { %7150 = vst [vmem:[#allocation64_spill] sm:$0xff] %v5502_v12  ;;  %1605 = vmatmul.f32.gmra.mxu2 %v769_v7  ;;  %v1862_v12 = vld [vmem:[#allocation2 + $0x1b0] sm:$0xff] }
 0x171   : > { %678 = vst [vmem:[#allocation2 + $0x200] sm:$0xff] %v614_v34  ;;  %v773_v7 = vld [vmem:[%s4994_s14 + $0x91] sm:$0xff] }
 0x172   : > { %2328 = vmatmul.f32.gmra.mxu0 %v611_v58  ;;  %837 = vst [vmem:[#allocation2 + $0x1f0] sm:$0xff] %v773_v7 }
 0x173   : > { %v5505_v13 = vpop.f32.mrf.mxu2 }
 0x174   : > { %2116 = vmatmul.f32.gmra.mxu3 %v1859_v59  ;;  %v5507_v1 = vpop.f32.mrf.mxu1 }
 0x177   : > { %v5509_v29 = vpop.f32.mrf.mxu3  ;;  %1399 = vmatmul.f32.gmra.mxu1 %v610_v8  ;;  %v2284_v25 = vpop.f32.mrf.mxu0 }
 0x178   : > { %7151 = vst [vmem:[#allocation65_spill] sm:$0xff] %v5509_v29  ;;  %1608 = vmatmul.f32.gmra.mxu2 %v936_v47 }
 0x17a   : > { %2331 = vmatmul.f32.gmra.mxu0 %v612_v15 }
 0x17b   : > { %v5513_v39 = vpop.f32.mrf.mxu2 }
 0x17c   : > { %2119 = vmatmul.f32.gmra.mxu3 %v1862_v12  ;;  %v5516_v59 = vpop.f32.mrf.mxu1 }
 0x17f   : > { %v2072_v8 = vpop.f32.mrf.mxu3  ;;  %1402 = vmatmul.f32.gmra.mxu1 %v611_v58  ;;  %v2287_v47 = vpop.f32.mrf.mxu0 }
 0x180   : > { %v5518_v29 = vadd.f32 %v2281_v55, %v2072_v8  ;;  %1611 = vmatmul.f32.gmra.mxu2 %v771_v35  ;;  %v616_v8 = vld [vmem:[%s4994_s14 + $0xa8] sm:$0xff] }
 0x181   : > { %680 = vst [vmem:[#allocation2 + $0x230] sm:$0xff] %v616_v8 }
 0x182   : > { %2334 = vmatmul.f32.gmra.mxu0 %v613_v27 }
 0x183   : > { %v5521_v12 = vpop.f32.mrf.mxu2 }
 0x184   : > { %2122 = vmatmul.f32.gmra.mxu3 %v1865_v5  ;;  %v5523_v61 = vpop.f32.mrf.mxu1 }
 0x187   : > { %v2075_v58 = vpop.f32.mrf.mxu3  ;;  %1405 = vmatmul.f32.gmra.mxu1 %v612_v15  ;;  %v2290_v35 = vpop.f32.mrf.mxu0 }
 0x188   : > { %v5525_v55 = vadd.f32 %v2284_v25, %v2075_v58  ;;  %1614 = vmatmul.f32.gmra.mxu2 %v942_v43  ;;  %v617_v43 = vld [vmem:[%s4994_s14 + $0xb0] sm:$0xff]  ;;  %v1871_v58 = vld [vmem:[#allocation2 + $0x1f8] sm:$0xff] }
 0x189   : > { %681 = vst [vmem:[#allocation2 + $0x248] sm:$0xff] %v617_v43 }
 0x18a   : > { %2337 = vmatmul.f32.gmra.mxu0 %v614_v34 }
 0x18b   : > { %v5529_v5 = vpop.f32.mrf.mxu2 }
 0x18c   : > { %2125 = vmatmul.f32.gmra.mxu3 %v1868_v18  ;;  %v5532_v30 = vpop.f32.mrf.mxu1 }
 0x18f   : > { %v2078_v51 = vpop.f32.mrf.mxu3  ;;  %1408 = vmatmul.f32.gmra.mxu1 %v613_v27  ;;  %v2293_v15 = vpop.f32.mrf.mxu0 }
 0x190   : > { %v5534_v25 = vadd.f32 %v2287_v47, %v2078_v51  ;;  %1617 = vmatmul.f32.gmra.mxu2 %v773_v7  ;;  %v618_v47 = vld [vmem:[%s4994_s14 + $0xb8] sm:$0xff]  ;;  %v1874_v7 = vld [vmem:[#allocation2 + $0x210] sm:$0xff] }
 0x191   : > { %682 = vst [vmem:[#allocation2 + $0x260] sm:$0xff] %v618_v47  ;;  %v777_v51 = vld [vmem:[%s4994_s14 + $0xb1] sm:$0xff] }
 0x192   : > { %2340 = vmatmul.f32.gmra.mxu0 %v615_v31  ;;  %841 = vst [vmem:[#allocation2 + $0x250] sm:$0xff] %v777_v51 }
 0x193   : > { %v5537_v23 = vpop.f32.mrf.mxu2 }
 0x194   : > { %2128 = vmatmul.f32.gmra.mxu3 %v1871_v58  ;;  %v5539_v18 = vpop.f32.mrf.mxu1 }
 0x197   : > { %v2081_v21 = vpop.f32.mrf.mxu3  ;;  %1411 = vmatmul.f32.gmra.mxu1 %v614_v34  ;;  %v2296_v27 = vpop.f32.mrf.mxu0 }
 0x198   : > { %v5541_v20 = vadd.f32 %v2290_v35, %v2081_v21  ;;  %1620 = vmatmul.f32.gmra.mxu2 %v948_v16  ;;  %v619_v21 = vld [vmem:[%s4994_s14 + $0xc0] sm:$0xff] }
 0x199   : > { %683 = vst [vmem:[#allocation2 + $0x278] sm:$0xff] %v619_v21 }
 0x19a   : > { %2343 = vmatmul.f32.gmra.mxu0 %v616_v8 }
 0x19b   : > { %v5545_v60 = vpop.f32.mrf.mxu2 }
 0x19c   : > { %2131 = vmatmul.f32.gmra.mxu3 %v1874_v7  ;;  %v5548_v58 = vpop.f32.mrf.mxu1 }
 0x19f   : > { %v2084_v34 = vpop.f32.mrf.mxu3  ;;  %1414 = vmatmul.f32.gmra.mxu1 %v615_v31  ;;  %v2299_v16 = vpop.f32.mrf.mxu0  ;;  %v954_v31 = vld [vmem:[#allocation2 + $0x238] sm:$0xff] }
 0x1a0   : > { %v5550_v35 = vadd.f32 %v2293_v15, %v2084_v34  ;;  %1623 = vmatmul.f32.gmra.mxu2 %v775_v57  ;;  %v5560_v34 = vld [vmem:[%s4994_s14 + $0xc8] sm:$0xff] }
 0x1a1   : > { %684 = vst [vmem:[#allocation2 + $0x290] sm:$0xff] %v5560_v34 }
 0x1a2   : > { %2346 = vmatmul.f32.gmra.mxu0 %v617_v43 }
 0x1a3   : > { %v5553_v7 = vpop.f32.mrf.mxu2 }
 0x1a4   : > { %2134 = vmatmul.f32.gmra.mxu3 %v1877_v2  ;;  %v5555_v52 = vpop.f32.mrf.mxu1 }
 0x1a7   : > { %v2087_v63 = vpop.f32.mrf.mxu3  ;;  %1417 = vmatmul.f32.gmra.mxu1 %v616_v8  ;;  %v2302_v57 = vpop.f32.mrf.mxu0 }
 0x1a8   : > { %v5557_v15 = vadd.f32 %v2296_v27, %v2087_v63  ;;  %1626 = vmatmul.f32.gmra.mxu2 %v954_v31  ;;  %v5572_v63 = vld [vmem:[%s4994_s14 + $0xd0] sm:$0xff] }
 0x1a9   : > { %685 = vst [vmem:[#allocation2 + $0x2a8] sm:$0xff] %v5572_v63 }
 0x1aa   : > { %2349 = vmatmul.f32.gmra.mxu0 %v618_v47 }
 0x1ab   : > { %v5564_v2 = vpop.f32.mrf.mxu2 }
 0x1ac   : > { %2137 = vmatmul.f32.gmra.mxu3 %v1880_v11  ;;  %v5567_v33 = vpop.f32.mrf.mxu1 }
 0x1af   : > { %v2090_v8 = vpop.f32.mrf.mxu3  ;;  %1420 = vmatmul.f32.gmra.mxu1 %v617_v43  ;;  %v2305_v27 = vpop.f32.mrf.mxu0 }
 0x1b0   : > { %v5569_v31 = vadd.f32 %v2299_v16, %v2090_v8  ;;  %1629 = vmatmul.f32.gmra.mxu2 %v777_v51  ;;  %v5582_v51 = vld [vmem:[%s4994_s14 + $0xd8] sm:$0xff]  ;;  %v1886_v8 = vld [vmem:[#allocation2 + $0x270] sm:$0xff] }
 0x1b1   : > { %686 = vst [vmem:[#allocation2 + $0x2c0] sm:$0xff] %v5582_v51 }
 0x1b2   : > { %2352 = vmatmul.f32.gmra.mxu0 %v619_v21 }
 0x1b3   : > { %v5575_v3 = vpop.f32.mrf.mxu2 }
 0x1b4   : > { %2140 = vmatmul.f32.gmra.mxu3 %v1883_v10  ;;  %v5577_v11 = vpop.f32.mrf.mxu1 }
 0x1b7   : > { %v2093_v43 = vpop.f32.mrf.mxu3  ;;  %1423 = vmatmul.f32.gmra.mxu1 %v618_v47  ;;  %v2308_v41 = vpop.f32.mrf.mxu0  ;;  %v3076_v47 = vld [vmem:[#allocation7 + $0x340] sm:$0xff] }
 0x1b8   : > { %v5579_v16 = vadd.f32 %v2302_v57, %v2093_v43  ;;  %1632 = vmatmul.f32.gmra.mxu2 %v960_v28  ;;  %v3092_v57 = vld [vmem:[#allocation7 + $0x3c0] sm:$0xff] }
 0x1b9   : > { %3123 = vmatpush.msra.mxu2 %v3076_v47  ;;  %3332 = vmatpush.msra.mxu3 %v3092_v57  ;;  %v966_v47 = vld [vmem:[#allocation2 + $0x298] sm:$0xff] }
 0x1ba   : > { %2355 = vmatmul.f32.gmra.mxu0 %v5560_v34 }
 0x1bb   : > { %v5587_v10 = vpop.f32.mrf.mxu2 }
 0x1bc   : > { %2143 = vmatmul.f32.gmra.mxu3 %v1886_v8  ;;  %v5590_v9 = vpop.f32.mrf.mxu1  ;;  %v5599_v8 = vld [vmem:[%s4994_s14 + $0xf0] sm:$0xff] }
 0x1bd   : > { %v416_v24 = vrot.slane %v5599_v8, 7  ;;  %689 = vst [vmem:[#allocation2 + $0x308] sm:$0xff] %v5599_v8 }
 0x1bf   : > { %v2096_v28 = vpop.f32.mrf.mxu3  ;;  %1426 = vmatmul.f32.gmra.mxu1 %v619_v21  ;;  %v2311_v43 = vpop.f32.mrf.mxu0  ;;  %561 = vst [vmem:[#allocation2 + $0x300] sm:$0xfe] %v416_v24 }
 0x1c0   : > { %v5592_v6 = vadd.f32 %v2305_v27, %v2096_v28  ;;  %1635 = vmatmul.f32.gmra.mxu2 %v779_v40  ;;  %v3108_v27 = vld [vmem:[#allocation7 + $0x440] sm:$0xff] }
 0x1c1   : > { %3541 = vmatpush.msra.mxu0 %v3108_v27 }
 0x1c2   : > { %2358 = vmatmul.f32.gmra.mxu0 %v5572_v63 }
 0x1c3   : > { %v5604_v21 = vpop.f32.mrf.mxu2 }
 0x1c4   : > { %7152 = vst [vmem:[#allocation66_spill] sm:$0xff] %v5604_v21  ;;  %2146 = vmatmul.f32.gmra.mxu3 %v1889_v45  ;;  %v5606_v40 = vpop.f32.mrf.mxu1 }
 0x1c5   : > { %7153 = vst [vmem:[#allocation67_spill] sm:$0xff] %v5606_v40  ;;  %v1895_v40 = vld [vmem:[#allocation2 + $0x2b8] sm:$0xff] }
 0x1c7   : > { %v2099_v53 = vpop.f32.mrf.mxu3  ;;  %1429 = vmatmul.f32.gmra.mxu1 %v5560_v34  ;;  %v2314_v57 = vpop.f32.mrf.mxu0 }
 0x1c8   : > { %v5609_v28 = vadd.f32 %v2308_v41, %v2099_v53  ;;  %1638 = vmatmul.f32.gmra.mxu2 %v966_v47  ;;  %v273_v53 = vld [vmem:[%s4994_s14 + $0xf8] sm:$0x7f] }
 0x1c9   : > { %v417_v44 = vrot.slane %v273_v53, 7  ;;  %v1898_v53 = vld [vmem:[#allocation2 + $0x2d0] sm:$0xff] }
 0x1ca   : > { %2361 = vmatmul.f32.gmra.mxu0 %v5582_v51 }
 0x1cb   : > { %v5614_v45 = vpop.f32.mrf.mxu2 }
 0x1cc   : > { %7154 = vst [vmem:[#allocation68_spill] sm:$0xff] %v5614_v45  ;;  %2149 = vmatmul.f32.gmra.mxu3 %v1892_v46  ;;  %v5617_v27 = vpop.f32.mrf.mxu1  ;;  %v418_v46 = vsel %vm370_vm0, %v416_v24, %v417_v44  ;;  %v3075_v24 = vld [vmem:[#allocation7 + $0x338] sm:$0xff] }
 0x1cd   : > { %7155 = vst [vmem:[#allocation69_spill] sm:$0xff] %v5617_v27  ;;  %3124 = vmatpush.msra.mxu2 %v3075_v24 }
 0x1ce   : > { %562 = vst [vmem:[#allocation2 + $0x318] sm:$0xff] %v418_v46 }
 0x1cf   : > { %v2102_v34 = vpop.f32.mrf.mxu3  ;;  %1432 = vmatmul.f32.gmra.mxu1 %v5572_v63  ;;  %v2317_v41 = vpop.f32.mrf.mxu0 }
 0x1d0   : > { %v5620_v47 = vadd.f32 %v2311_v43, %v2102_v34  ;;  %1641 = vmatmul.f32.gmra.mxu2 %v781_v37  ;;  %v626_v34 = vld [vmem:[%s4994_s14 + $0xf8] sm:$0xff] }
 0x1d1   : > { %690 = vst [vmem:[#allocation2 + $0x320] sm:$0xff] %v626_v34 }
 0x1d2   : > { %2364 = vmatmul.f32.gmra.mxu0 %v5595_v62 }
 0x1d3   : > { %v5624_v21 = vpop.f32.mrf.mxu2 }
 0x1d4   : > { %7156 = vst [vmem:[#allocation70_spill] sm:$0xff] %v5624_v21  ;;  %2152 = vmatmul.f32.gmra.mxu3 %v1895_v40  ;;  %v5627_v27 = vpop.f32.mrf.mxu1  ;;  %v3091_v40 = vld [vmem:[#allocation7 + $0x3b8] sm:$0xff] }
 0x1d5   : > { %7157 = vst [vmem:[#allocation71_spill] sm:$0xff] %v5627_v27  ;;  %3333 = vmatpush.msra.mxu3 %v3091_v40  ;;  %v3107_v40 = vld [vmem:[#allocation7 + $0x438] sm:$0xff] }
 0x1d6   : > { %3542 = vmatpush.msra.mxu0 %v3107_v40 }
 0x1d7   : > { %v2105_v63 = vpop.f32.mrf.mxu3  ;;  %1435 = vmatmul.f32.gmra.mxu1 %v5582_v51  ;;  %v2320_v43 = vpop.f32.mrf.mxu0 }
 0x1d8   : > { %v5630_v37 = vadd.f32 %v2314_v57, %v2105_v63  ;;  %1644 = vmatmul.f32.gmra.mxu2 %v972_v50  ;;  %v627_v50 = vld [vmem:[%s4994_s14 + $0x100] sm:$0xff]  ;;  %v2046_v63 = vld [vmem:[#allocation7 + $0x2b8] sm:$0xff] }
 0x1d9   : > { %2481 = vmatpush.msra.mxu1 %v2046_v63  ;;  %v1904_v63 = vld [vmem:[#allocation2 + $0x300] sm:$0xff] }
 0x1da   : > { %7158 = vst [vmem:[#allocation72_spill] sm:$0xff] %v5630_v37  ;;  %2367 = vmatmul.f32.gmra.mxu0 %v624_v56  ;;  %v1901_v37 = vld [vmem:[#allocation2 + $0x2e8] sm:$0xff] }
 0x1db   : > { %v5633_v21 = vpop.f32.mrf.mxu2 }
 0x1dc   : > { %7159 = vst [vmem:[#allocation73_spill] sm:$0xff] %v5633_v21  ;;  %2155 = vmatmul.f32.gmra.mxu3 %v1898_v53  ;;  %v5635_v44 = vpop.f32.mrf.mxu1  ;;  %v787_v21 = vld [vmem:[%s4994_s14 + $0x101] sm:$0xff] }
 0x1dd   : > { %7160 = vst [vmem:[#allocation74_spill] sm:$0xff] %v5635_v44  ;;  %v628_v44 = vld [vmem:[%s4994_s14 + $0x108] sm:$0xff] }
 0x1de   : > { %851 = vst [vmem:[#allocation2 + $0x3a0] sm:$0xff] %v787_v21 }
 0x1df   : > { %v2108_v27 = vpop.f32.mrf.mxu3  ;;  %1438 = vmatmul.f32.gmra.mxu1 %v5595_v62  ;;  %v2323_v51 = vpop.f32.mrf.mxu0  ;;  %v978_v62 = vld [vmem:[#allocation2 + $0x2f8] sm:$0xff] }
 0x1e0   : > { %v5638_v57 = vadd.f32 %v2317_v41, %v2108_v27  ;;  %1647 = vmatmul.f32.gmra.mxu2 %v783_v17 }
 0x1e2   : > { %7161 = vst [vmem:[#allocation75_spill] sm:$0xff] %v5638_v57  ;;  %2370 = vmatmul.f32.gmra.mxu0 %v5599_v8  ;;  %v1913_v57 = vld [vmem:[#allocation2 + $0x3a8] sm:$0xff] }
 0x1e3   : > { %v5642_v53 = vpop.f32.mrf.mxu2 }
 0x1e4   : > { %7162 = vst [vmem:[#allocation76_spill] sm:$0xff] %v5642_v53  ;;  %2158 = vmatmul.f32.gmra.mxu3 %v1901_v37  ;;  %v5644_v24 = vpop.f32.mrf.mxu1  ;;  %v788_v37 = vld [vmem:[%s4994_s14 + $0x109] sm:$0x7f]  ;;  %v3090_v53 = vld [vmem:[#allocation7 + $0x3b0] sm:$0xff] }
 0x1e5   : > { %7163 = vst [vmem:[#allocation77_spill] sm:$0xff] %v5644_v24  ;;  %3334 = vmatpush.msra.mxu3 %v3090_v53  ;;  %v3106_v53 = vld [vmem:[#allocation7 + $0x430] sm:$0xff] }
 0x1e6   : > { %852 = vst [vmem:[#allocation2 + $0x3b8] sm:$0x7f] %v788_v37  ;;  %3543 = vmatpush.msra.mxu0 %v3106_v53 }
 0x1e7   : > { %v2111_v27 = vpop.f32.mrf.mxu3  ;;  %1441 = vmatmul.f32.gmra.mxu1 %v624_v56  ;;  %v2326_v17 = vpop.f32.mrf.mxu0 }
 0x1e8   : > { %v5646_v41 = vadd.f32 %v2320_v43, %v2111_v27  ;;  %1650 = vmatmul.f32.gmra.mxu2 %v978_v62  ;;  %v629_v62 = vld [vmem:[%s4994_s14 + $0x110] sm:$0xff] }
 0x1e9   : > { %693 = vst [vmem:[#allocation2 + $0x3c8] sm:$0xff] %v629_v62 }
 0x1ea   : > { %7164 = vst [vmem:[#allocation78_spill] sm:$0xff] %v5646_v41  ;;  %2373 = vmatmul.f32.gmra.mxu0 %v626_v34  ;;  %v2045_v41 = vld [vmem:[#allocation7 + $0x2b0] sm:$0xff] }
 0x1eb   : > { %v5650_v8 = vpop.f32.mrf.mxu2  ;;  %2482 = vmatpush.msra.mxu1 %v2045_v41  ;;  %v1916_v41 = vld [vmem:[#allocation2 + $0x3c0] sm:$0xff] }
 0x1ec   : > { %7165 = vst [vmem:[#allocation79_spill] sm:$0xff] %v5650_v8  ;;  %2161 = vmatmul.f32.gmra.mxu3 %v1904_v63  ;;  %v5653_v24 = vpop.f32.mrf.mxu1  ;;  %v789_v8 = vld [vmem:[%s4994_s14 + $0x111] sm:$0xff] }
 0x1ed   : > { %7166 = vst [vmem:[#allocation80_spill] sm:$0xff] %v5653_v24 }
 0x1ee   : > { %853 = vst [vmem:[#allocation2 + $0x3d0] sm:$0xff] %v789_v8 }
 0x1ef   : > { %v2114_v40 = vpop.f32.mrf.mxu3  ;;  %1444 = vmatmul.f32.gmra.mxu1 %v5320_v48  ;;  %v2329_v56 = vpop.f32.mrf.mxu0 }
 0x1f0   : > { %v5656_v43 = vadd.f32 %v2323_v51, %v2114_v40  ;;  %1653 = vmatmul.f32.gmra.mxu2 %v5320_v48  ;;  %v630_v51 = vld [vmem:[%s4994_s14 + $0x118] sm:$0xff]  ;;  %v1910_v40 = vld [vmem:[#allocation2 + $0x390] sm:$0xff] }
 0x1f1   : > { %694 = vst [vmem:[#allocation2 + $0x3e0] sm:$0xff] %v630_v51 }
 0x1f2   : > { %7167 = vst [vmem:[#allocation81_spill] sm:$0xff] %v5656_v43  ;;  %2376 = vmatmul.f32.gmra.mxu0 %v627_v50 }
 0x1f3   : > { %v5660_v34 = vpop.f32.mrf.mxu2 }
 0x1f4   : > { %7168 = vst [vmem:[#allocation82_spill] sm:$0xff] %v5660_v34  ;;  %2164 = vmatmul.f32.gmra.mxu3 %v418_v46  ;;  %v5662_v27 = vpop.f32.mrf.mxu1  ;;  %v790_v46 = vld [vmem:[%s4994_s14 + $0x119] sm:$0x7f]  ;;  %v3074_v34 = vld [vmem:[#allocation7 + $0x330] sm:$0xff] }
 0x1f5   : > { %7169 = vst [vmem:[#allocation83_spill] sm:$0xff] %v5662_v27  ;;  %3125 = vmatpush.msra.mxu2 %v3074_v34 }
 0x1f6   : > { %854 = vst [vmem:[#allocation2 + $0x3e8] sm:$0x7f] %v790_v46 }
 0x1f7   : > { %v2117_v63 = vpop.f32.mrf.mxu3  ;;  %1447 = vmatmul.f32.gmra.mxu1 %v5320_v48  ;;  %v2332_v37 = vpop.f32.mrf.mxu0 }
 0x1f8   : > { %v5665_v24 = vadd.f32 %v2326_v17, %v2117_v63  ;;  %1656 = vmatmul.f32.gmra.mxu2 %v5320_v48 }
 0x1fa   : > { %7170 = vst [vmem:[#allocation84_spill] sm:$0xff] %v5665_v24  ;;  %2379 = vmatmul.f32.gmra.mxu0 %v628_v44  ;;  %v631_v24 = vld [vmem:[%s4994_s14 + $0x120] sm:$0xff] }
 0x1fb   : > { %v5670_v43 = vpop.f32.mrf.mxu2  ;;  %695 = vst [vmem:[#allocation2 + $0x3f8] sm:$0xff] %v631_v24 }
 0x1fc   : > { %7171 = vst [vmem:[#allocation85_spill] sm:$0xff] %v5670_v43  ;;  %2167 = vmatmul.f32.gmra.mxu3 %v1910_v40  ;;  %v5673_v27 = vpop.f32.mrf.mxu1  ;;  %v3089_v43 = vld [vmem:[#allocation7 + $0x3a8] sm:$0xff] }
 0x1fd   : > { %7172 = vst [vmem:[#allocation86_spill] sm:$0xff] %v5673_v27  ;;  %v791_v27 = vld [vmem:[%s4994_s14 + $0x121] sm:$0xff]  ;;  %3335 = vmatpush.msra.mxu3 %v3089_v43 }
 0x1fe   : > { %855 = vst [vmem:[#allocation2 + $0x400] sm:$0xff] %v791_v27  ;;  %v3105_v43 = vld [vmem:[#allocation7 + $0x428] sm:$0xff] }
 0x1ff   : > { %v2120_v17 = vpop.f32.mrf.mxu3  ;;  %1450 = vmatmul.f32.gmra.mxu1 %v627_v50  ;;  %v2335_v48 = vpop.f32.mrf.mxu0  ;;  %v990_v50 = vld [vmem:[#allocation2 + $0x3b8] sm:$0xff]  ;;  %3544 = vmatpush.msra.mxu0 %v3105_v43 }
 0x200   : > { %v5675_v63 = vadd.f32 %v2329_v56, %v2120_v17  ;;  %1659 = vmatmul.f32.gmra.mxu2 %v787_v21  ;;  %v632_v17 = vld [vmem:[%s4994_s14 + $0x128] sm:$0xff] }
 0x201   : > { %696 = vst [vmem:[#allocation2 + $0x410] sm:$0xff] %v632_v17 }
 0x202   : > { %7173 = vst [vmem:[#allocation87_spill] sm:$0xff] %v5675_v63  ;;  %2382 = vmatmul.f32.gmra.mxu0 %v629_v62  ;;  %v1925_v63 = vld [vmem:[#allocation2 + $0x408] sm:$0xff] }
 0x203   : > { %v5678_v40 = vpop.f32.mrf.mxu2 }
 0x204   : > { %7174 = vst [vmem:[#allocation88_spill] sm:$0xff] %v5678_v40  ;;  %2170 = vmatmul.f32.gmra.mxu3 %v1913_v57  ;;  %v5680_v46 = vpop.f32.mrf.mxu1 }
 0x205   : > { %7175 = vst [vmem:[#allocation89_spill] sm:$0xff] %v5680_v46  ;;  %v792_v46 = vld [vmem:[%s4994_s14 + $0x129] sm:$0x7f] }
 0x206   : > { %856 = vst [vmem:[#allocation2 + $0x418] sm:$0x7f] %v792_v46 }
 0x207   : > { %v2123_v56 = vpop.f32.mrf.mxu3  ;;  %1453 = vmatmul.f32.gmra.mxu1 %v628_v44  ;;  %v2338_v21 = vpop.f32.mrf.mxu0 }
 0x208   : > { %v5682_v34 = vadd.f32 %v2332_v37, %v2123_v56  ;;  %1662 = vmatmul.f32.gmra.mxu2 %v990_v50  ;;  %v633_v50 = vld [vmem:[%s4994_s14 + $0x130] sm:$0xff]  ;;  %v1919_v56 = vld [vmem:[#allocation2 + $0x3d8] sm:$0xff] }
 0x209   : > { %697 = vst [vmem:[#allocation2 + $0x428] sm:$0xff] %v633_v50 }
 0x20a   : > { %7176 = vst [vmem:[#allocation90_spill] sm:$0xff] %v5682_v34  ;;  %2385 = vmatmul.f32.gmra.mxu0 %v630_v51 }
 0x20b   : > { %v5686_v57 = vpop.f32.mrf.mxu2 }
 0x20c   : > { %7177 = vst [vmem:[#allocation91_spill] sm:$0xff] %v5686_v57  ;;  %2173 = vmatmul.f32.gmra.mxu3 %v1916_v41  ;;  %v5689_v40 = vpop.f32.mrf.mxu1 }
 0x20d   : > { %7178 = vst [vmem:[#allocation92_spill] sm:$0xff] %v5689_v40  ;;  %v996_v40 = vld [vmem:[#allocation2 + $0x3e8] sm:$0xff] }
 0x20f   : > { %v2126_v53 = vpop.f32.mrf.mxu3  ;;  %1456 = vmatmul.f32.gmra.mxu1 %v629_v62  ;;  %v2341_v44 = vpop.f32.mrf.mxu0 }
 0x210   : > { %v5691_v37 = vadd.f32 %v2335_v48, %v2126_v53  ;;  %1665 = vmatmul.f32.gmra.mxu2 %v789_v8  ;;  %v634_v48 = vld [vmem:[%s4994_s14 + $0x138] sm:$0xff]  ;;  %v1922_v8 = vld [vmem:[#allocation2 + $0x3f0] sm:$0xff] }
 0x211   : > { %698 = vst [vmem:[#allocation2 + $0x440] sm:$0xff] %v634_v48  ;;  %v793_v53 = vld [vmem:[%s4994_s14 + $0x131] sm:$0xff] }
 0x212   : > { %7179 = vst [vmem:[#allocation93_spill] sm:$0xff] %v5691_v37  ;;  %2388 = vmatmul.f32.gmra.mxu0 %v631_v24 }
 0x213   : > { %v5694_v34 = vpop.f32.mrf.mxu2  ;;  %857 = vst [vmem:[#allocation2 + $0x430] sm:$0xff] %v793_v53 }
 0x214   : > { %7180 = vst [vmem:[#allocation94_spill] sm:$0xff] %v5694_v34  ;;  %2176 = vmatmul.f32.gmra.mxu3 %v1919_v56  ;;  %v5696_v41 = vpop.f32.mrf.mxu1  ;;  %v794_v34 = vld [vmem:[%s4994_s14 + $0x139] sm:$0x7f] }
 0x215   : > { %7181 = vst [vmem:[#allocation95_spill] sm:$0xff] %v5696_v41  ;;  %v3073_v41 = vld [vmem:[#allocation7 + $0x328] sm:$0xff] }
 0x216   : > { %858 = vst [vmem:[#allocation2 + $0x448] sm:$0x7f] %v794_v34  ;;  %3126 = vmatpush.msra.mxu2 %v3073_v41 }
 0x217   : > { %v2129_v46 = vpop.f32.mrf.mxu3  ;;  %1459 = vmatmul.f32.gmra.mxu1 %v630_v51  ;;  %v2344_v62 = vpop.f32.mrf.mxu0 }
 0x218   : > { %v5698_v57 = vadd.f32 %v2338_v21, %v2129_v46  ;;  %1668 = vmatmul.f32.gmra.mxu2 %v996_v40  ;;  %v635_v46 = vld [vmem:[%s4994_s14 + $0x140] sm:$0xff] }
 0x219   : > { %699 = vst [vmem:[#allocation2 + $0x458] sm:$0xff] %v635_v46 }
 0x21a   : > { %7182 = vst [vmem:[#allocation96_spill] sm:$0xff] %v5698_v57  ;;  %2391 = vmatmul.f32.gmra.mxu0 %v632_v17  ;;  %v2044_v57 = vld [vmem:[#allocation7 + $0x2a8] sm:$0xff] }
 0x21b   : > { %v5702_v37 = vpop.f32.mrf.mxu2  ;;  %2483 = vmatpush.msra.mxu1 %v2044_v57  ;;  %v1928_v57 = vld [vmem:[#allocation2 + $0x420] sm:$0xff] }
 0x21c   : > { %7183 = vst [vmem:[#allocation97_spill] sm:$0xff] %v5702_v37  ;;  %2179 = vmatmul.f32.gmra.mxu3 %v1922_v8  ;;  %v5705_v56 = vpop.f32.mrf.mxu1  ;;  %v3088_v37 = vld [vmem:[#allocation7 + $0x3a0] sm:$0xff] }
 0x21d   : > { %7184 = vst [vmem:[#allocation98_spill] sm:$0xff] %v5705_v56  ;;  %v795_v56 = vld [vmem:[%s4994_s14 + $0x141] sm:$0xff]  ;;  %3336 = vmatpush.msra.mxu3 %v3088_v37 }
 0x21e   : > { %859 = vst [vmem:[#allocation2 + $0x460] sm:$0xff] %v795_v56  ;;  %v3104_v37 = vld [vmem:[#allocation7 + $0x420] sm:$0xff] }
 0x21f   : > { %v2132_v51 = vpop.f32.mrf.mxu3  ;;  %1462 = vmatmul.f32.gmra.mxu1 %v631_v24  ;;  %v2347_v40 = vpop.f32.mrf.mxu0  ;;  %v1002_v24 = vld [vmem:[#allocation2 + $0x418] sm:$0xff]  ;;  %3545 = vmatpush.msra.mxu0 %v3104_v37 }
 0x220   : > { %v5707_v21 = vadd.f32 %v2341_v44, %v2132_v51  ;;  %1671 = vmatmul.f32.gmra.mxu2 %v791_v27  ;;  %v636_v51 = vld [vmem:[%s4994_s14 + $0x148] sm:$0xff] }
 0x221   : > { %700 = vst [vmem:[#allocation2 + $0x470] sm:$0xff] %v636_v51 }
 0x222   : > { %7185 = vst [vmem:[#allocation99_spill] sm:$0xff] %v5707_v21  ;;  %2394 = vmatmul.f32.gmra.mxu0 %v633_v50  ;;  %v1937_v21 = vld [vmem:[#allocation2 + $0x468] sm:$0xff] }
 0x223   : > { %v5710_v8 = vpop.f32.mrf.mxu2 }
 0x224   : > { %7186 = vst [vmem:[#allocation100_spill] sm:$0xff] %v5710_v8  ;;  %2182 = vmatmul.f32.gmra.mxu3 %v1925_v63  ;;  %v5712_v34 = vpop.f32.mrf.mxu1 }
 0x225   : > { %7187 = vst [vmem:[#allocation101_spill] sm:$0xff] %v5712_v34  ;;  %v796_v34 = vld [vmem:[%s4994_s14 + $0x149] sm:$0x7f] }
 0x226   : > { %860 = vst [vmem:[#allocation2 + $0x478] sm:$0x7f] %v796_v34 }
 0x227   : > { %v2135_v44 = vpop.f32.mrf.mxu3  ;;  %1465 = vmatmul.f32.gmra.mxu1 %v632_v17  ;;  %v2350_v27 = vpop.f32.mrf.mxu0 }
 0x228   : > { %v5714_v41 = vadd.f32 %v2344_v62, %v2135_v44  ;;  %1674 = vmatmul.f32.gmra.mxu2 %v1002_v24  ;;  %v637_v24 = vld [vmem:[%s4994_s14 + $0x150] sm:$0xff]  ;;  %v1931_v44 = vld [vmem:[#allocation2 + $0x438] sm:$0xff] }
 0x229   : > { %701 = vst [vmem:[#allocation2 + $0x488] sm:$0xff] %v637_v24 }
 0x22a   : > { %7188 = vst [vmem:[#allocation102_spill] sm:$0xff] %v5714_v41  ;;  %2397 = vmatmul.f32.gmra.mxu0 %v634_v48 }
 0x22b   : > { %v5718_v63 = vpop.f32.mrf.mxu2 }
 0x22c   : > { %7189 = vst [vmem:[#allocation103_spill] sm:$0xff] %v5718_v63  ;;  %2185 = vmatmul.f32.gmra.mxu3 %v1928_v57  ;;  %v5721_v8 = vpop.f32.mrf.mxu1 }
 0x22d   : > { %7190 = vst [vmem:[#allocation104_spill] sm:$0xff] %v5721_v8  ;;  %v1008_v8 = vld [vmem:[#allocation2 + $0x448] sm:$0xff] }
 0x22f   : > { %v2138_v43 = vpop.f32.mrf.mxu3  ;;  %1468 = vmatmul.f32.gmra.mxu1 %v633_v50  ;;  %v2353_v17 = vpop.f32.mrf.mxu0 }
 0x230   : > { %v5723_v62 = vadd.f32 %v2347_v40, %v2138_v43  ;;  %1677 = vmatmul.f32.gmra.mxu2 %v793_v53  ;;  %v638_v40 = vld [vmem:[%s4994_s14 + $0x158] sm:$0xff]  ;;  %v1934_v53 = vld [vmem:[#allocation2 + $0x450] sm:$0xff] }
 0x231   : > { %702 = vst [vmem:[#allocation2 + $0x4a0] sm:$0xff] %v638_v40  ;;  %v797_v43 = vld [vmem:[%s4994_s14 + $0x151] sm:$0xff] }
 0x232   : > { %7191 = vst [vmem:[#allocation105_spill] sm:$0xff] %v5723_v62  ;;  %2400 = vmatmul.f32.gmra.mxu0 %v635_v46 }
 0x233   : > { %v5726_v41 = vpop.f32.mrf.mxu2  ;;  %861 = vst [vmem:[#allocation2 + $0x490] sm:$0xff] %v797_v43 }
 0x234   : > { %7192 = vst [vmem:[#allocation106_spill] sm:$0xff] %v5726_v41  ;;  %2188 = vmatmul.f32.gmra.mxu3 %v1931_v44  ;;  %v5728_v57 = vpop.f32.mrf.mxu1  ;;  %v798_v41 = vld [vmem:[%s4994_s14 + $0x159] sm:$0x7f] }
 0x235   : > { %7193 = vst [vmem:[#allocation107_spill] sm:$0xff] %v5728_v57  ;;  %v3072_v57 = vld [vmem:[#allocation7 + $0x320] sm:$0xff] }
 0x236   : > { %862 = vst [vmem:[#allocation2 + $0x4a8] sm:$0x7f] %v798_v41  ;;  %3127 = vmatpush.msra.mxu2 %v3072_v57 }
 0x237   : > { %v2141_v34 = vpop.f32.mrf.mxu3  ;;  %1471 = vmatmul.f32.gmra.mxu1 %v634_v48  ;;  %v2356_v50 = vpop.f32.mrf.mxu0 }
 0x238   : > { %v5730_v63 = vadd.f32 %v2350_v27, %v2141_v34  ;;  %1680 = vmatmul.f32.gmra.mxu2 %v1008_v8  ;;  %v639_v34 = vld [vmem:[%s4994_s14 + $0x160] sm:$0xff] }
 0x239   : > { %703 = vst [vmem:[#allocation2 + $0x4b8] sm:$0xff] %v639_v34 }
 0x23a   : > { %7194 = vst [vmem:[#allocation108_spill] sm:$0xff] %v5730_v63  ;;  %2403 = vmatmul.f32.gmra.mxu0 %v636_v51  ;;  %v2043_v63 = vld [vmem:[#allocation7 + $0x2a0] sm:$0xff] }
 0x23b   : > { %v5734_v62 = vpop.f32.mrf.mxu2  ;;  %2484 = vmatpush.msra.mxu1 %v2043_v63  ;;  %v1940_v63 = vld [vmem:[#allocation2 + $0x480] sm:$0xff] }
 0x23c   : > { %7195 = vst [vmem:[#allocation109_spill] sm:$0xff] %v5734_v62  ;;  %2191 = vmatmul.f32.gmra.mxu3 %v1934_v53  ;;  %v5737_v44 = vpop.f32.mrf.mxu1  ;;  %v3087_v62 = vld [vmem:[#allocation7 + $0x398] sm:$0xff] }
 0x23d   : > { %7196 = vst [vmem:[#allocation110_spill] sm:$0xff] %v5737_v44  ;;  %v799_v44 = vld [vmem:[%s4994_s14 + $0x161] sm:$0xff]  ;;  %3337 = vmatpush.msra.mxu3 %v3087_v62  ;;  %v3103_v62 = vld [vmem:[#allocation7 + $0x418] sm:$0xff] }
 0x23e   : > { %863 = vst [vmem:[#allocation2 + $0x4c0] sm:$0xff] %v799_v44  ;;  %3546 = vmatpush.msra.mxu0 %v3103_v62 }
 0x23f   : > { %v2144_v48 = vpop.f32.mrf.mxu3  ;;  %1474 = vmatmul.f32.gmra.mxu1 %v635_v46  ;;  %v2359_v8 = vpop.f32.mrf.mxu0  ;;  %v1014_v46 = vld [vmem:[#allocation2 + $0x478] sm:$0xff] }
 0x240   : > { %v5739_v27 = vadd.f32 %v2353_v17, %v2144_v48  ;;  %1683 = vmatmul.f32.gmra.mxu2 %v795_v56  ;;  %v640_v48 = vld [vmem:[%s4994_s14 + $0x168] sm:$0xff] }
 0x241   : > { %704 = vst [vmem:[#allocation2 + $0x4d0] sm:$0xff] %v640_v48 }
 0x242   : > { %7197 = vst [vmem:[#allocation111_spill] sm:$0xff] %v5739_v27  ;;  %2406 = vmatmul.f32.gmra.mxu0 %v637_v24  ;;  %v1949_v27 = vld [vmem:[#allocation2 + $0x4c8] sm:$0xff] }
 0x243   : > { %v5742_v53 = vpop.f32.mrf.mxu2 }
 0x244   : > { %7198 = vst [vmem:[#allocation112_spill] sm:$0xff] %v5742_v53  ;;  %2194 = vmatmul.f32.gmra.mxu3 %v1937_v21  ;;  %v5744_v41 = vpop.f32.mrf.mxu1 }
 0x245   : > { %7199 = vst [vmem:[#allocation113_spill] sm:$0xff] %v5744_v41  ;;  %v800_v41 = vld [vmem:[%s4994_s14 + $0x169] sm:$0x7f] }
 0x246   : > { %864 = vst [vmem:[#allocation2 + $0x4d8] sm:$0x7f] %v800_v41 }
 0x247   : > { %v2147_v17 = vpop.f32.mrf.mxu3  ;;  %1477 = vmatmul.f32.gmra.mxu1 %v636_v51  ;;  %v2362_v56 = vpop.f32.mrf.mxu0 }
 0x248   : > { %v5746_v57 = vadd.f32 %v2356_v50, %v2147_v17  ;;  %1686 = vmatmul.f32.gmra.mxu2 %v1014_v46  ;;  %v641_v46 = vld [vmem:[%s4994_s14 + $0x170] sm:$0xff]  ;;  %v1943_v17 = vld [vmem:[#allocation2 + $0x498] sm:$0xff] }
 0x249   : > { %705 = vst [vmem:[#allocation2 + $0x4e8] sm:$0xff] %v641_v46 }
 0x24a   : > { %7200 = vst [vmem:[#allocation114_spill] sm:$0xff] %v5746_v57  ;;  %2409 = vmatmul.f32.gmra.mxu0 %v638_v40 }
 0x24b   : > { %v5750_v21 = vpop.f32.mrf.mxu2 }
 0x24c   : > { %7201 = vst [vmem:[#allocation115_spill] sm:$0xff] %v5750_v21  ;;  %2197 = vmatmul.f32.gmra.mxu3 %v1940_v63  ;;  %v5753_v53 = vpop.f32.mrf.mxu1 }
 0x24d   : > { %7202 = vst [vmem:[#allocation116_spill] sm:$0xff] %v5753_v53  ;;  %v1020_v53 = vld [vmem:[#allocation2 + $0x4a8] sm:$0xff] }
 0x24f   : > { %v2150_v37 = vpop.f32.mrf.mxu3  ;;  %1480 = vmatmul.f32.gmra.mxu1 %v637_v24  ;;  %v2365_v51 = vpop.f32.mrf.mxu0 }
 0x250   : > { %v5755_v50 = vadd.f32 %v2359_v8, %v2150_v37  ;;  %1689 = vmatmul.f32.gmra.mxu2 %v797_v43  ;;  %v642_v8 = vld [vmem:[%s4994_s14 + $0x178] sm:$0xff]  ;;  %v1946_v43 = vld [vmem:[#allocation2 + $0x4b0] sm:$0xff] }
 0x251   : > { %706 = vst [vmem:[#allocation2 + $0x500] sm:$0xff] %v642_v8  ;;  %v801_v37 = vld [vmem:[%s4994_s14 + $0x171] sm:$0xff] }
 0x252   : > { %7203 = vst [vmem:[#allocation117_spill] sm:$0xff] %v5755_v50  ;;  %2412 = vmatmul.f32.gmra.mxu0 %v639_v34 }
 0x253   : > { %v5758_v57 = vpop.f32.mrf.mxu2  ;;  %865 = vst [vmem:[#allocation2 + $0x4f0] sm:$0xff] %v801_v37 }
 0x254   : > { %7204 = vst [vmem:[#allocation118_spill] sm:$0xff] %v5758_v57  ;;  %2200 = vmatmul.f32.gmra.mxu3 %v1943_v17  ;;  %v5760_v63 = vpop.f32.mrf.mxu1  ;;  %v802_v57 = vld [vmem:[%s4994_s14 + $0x179] sm:$0x7f] }
 0x255   : > { %7205 = vst [vmem:[#allocation119_spill] sm:$0xff] %v5760_v63  ;;  %v3071_v63 = vld [vmem:[#allocation7 + $0x318] sm:$0xff] }
 0x256   : > { %866 = vst [vmem:[#allocation2 + $0x508] sm:$0x7f] %v802_v57  ;;  %3128 = vmatpush.msra.mxu2 %v3071_v63 }
 0x257   : > { %v2153_v41 = vpop.f32.mrf.mxu3  ;;  %1483 = vmatmul.f32.gmra.mxu1 %v638_v40  ;;  %v2368_v24 = vpop.f32.mrf.mxu0 }
 0x258   : > { %v5762_v21 = vadd.f32 %v2362_v56, %v2153_v41  ;;  %1692 = vmatmul.f32.gmra.mxu2 %v1020_v53  ;;  %v643_v41 = vld [vmem:[%s4994_s14 + $0x180] sm:$0xff] }
 0x259   : > { %707 = vst [vmem:[#allocation2 + $0x518] sm:$0xff] %v643_v41 }
 0x25a   : > { %7206 = vst [vmem:[#allocation120_spill] sm:$0xff] %v5762_v21  ;;  %2415 = vmatmul.f32.gmra.mxu0 %v640_v48  ;;  %v2042_v21 = vld [vmem:[#allocation7 + $0x298] sm:$0xff] }
 0x25b   : > { %v5766_v50 = vpop.f32.mrf.mxu2  ;;  %2485 = vmatpush.msra.mxu1 %v2042_v21  ;;  %v1952_v21 = vld [vmem:[#allocation2 + $0x4e0] sm:$0xff] }
 0x25c   : > { %7207 = vst [vmem:[#allocation121_spill] sm:$0xff] %v5766_v50  ;;  %2203 = vmatmul.f32.gmra.mxu3 %v1946_v43  ;;  %v5769_v17 = vpop.f32.mrf.mxu1  ;;  %v3086_v50 = vld [vmem:[#allocation7 + $0x390] sm:$0xff] }
 0x25d   : > { %7208 = vst [vmem:[#allocation122_spill] sm:$0xff] %v5769_v17  ;;  %v803_v17 = vld [vmem:[%s4994_s14 + $0x181] sm:$0xff]  ;;  %3338 = vmatpush.msra.mxu3 %v3086_v50  ;;  %v3102_v50 = vld [vmem:[#allocation7 + $0x410] sm:$0xff] }
 0x25e   : > { %867 = vst [vmem:[#allocation2 + $0x520] sm:$0xff] %v803_v17  ;;  %3547 = vmatpush.msra.mxu0 %v3102_v50 }
 0x25f   : > { %v2156_v40 = vpop.f32.mrf.mxu3  ;;  %1486 = vmatmul.f32.gmra.mxu1 %v639_v34  ;;  %v2371_v53 = vpop.f32.mrf.mxu0  ;;  %v1026_v34 = vld [vmem:[#allocation2 + $0x4d8] sm:$0xff] }
 0x260   : > { %v5771_v56 = vadd.f32 %v2365_v51, %v2156_v40  ;;  %1695 = vmatmul.f32.gmra.mxu2 %v799_v44  ;;  %v644_v40 = vld [vmem:[%s4994_s14 + $0x188] sm:$0xff] }
 0x261   : > { %708 = vst [vmem:[#allocation2 + $0x530] sm:$0xff] %v644_v40 }
 0x262   : > { %7209 = vst [vmem:[#allocation123_spill] sm:$0xff] %v5771_v56  ;;  %2418 = vmatmul.f32.gmra.mxu0 %v641_v46  ;;  %v1961_v56 = vld [vmem:[#allocation2 + $0x528] sm:$0xff] }
 0x263   : > { %v5774_v43 = vpop.f32.mrf.mxu2 }
 0x264   : > { %7210 = vst [vmem:[#allocation124_spill] sm:$0xff] %v5774_v43  ;;  %2206 = vmatmul.f32.gmra.mxu3 %v1949_v27  ;;  %v5776_v57 = vpop.f32.mrf.mxu1 }
 0x265   : > { %7211 = vst [vmem:[#allocation125_spill] sm:$0xff] %v5776_v57  ;;  %v804_v57 = vld [vmem:[%s4994_s14 + $0x189] sm:$0x7f] }
 0x266   : > { %868 = vst [vmem:[#allocation2 + $0x538] sm:$0x7f] %v804_v57 }
 0x267   : > { %v2159_v51 = vpop.f32.mrf.mxu3  ;;  %1489 = vmatmul.f32.gmra.mxu1 %v640_v48  ;;  %v2374_v44 = vpop.f32.mrf.mxu0 }
 0x268   : > { %v5778_v63 = vadd.f32 %v2368_v24, %v2159_v51  ;;  %1698 = vmatmul.f32.gmra.mxu2 %v1026_v34  ;;  %v645_v34 = vld [vmem:[%s4994_s14 + $0x190] sm:$0xff]  ;;  %v1955_v51 = vld [vmem:[#allocation2 + $0x4f8] sm:$0xff] }
 0x269   : > { %709 = vst [vmem:[#allocation2 + $0x548] sm:$0xff] %v645_v34 }
 0x26a   : > { %7212 = vst [vmem:[#allocation126_spill] sm:$0xff] %v5778_v63  ;;  %2421 = vmatmul.f32.gmra.mxu0 %v642_v8 }
 0x26b   : > { %v5782_v27 = vpop.f32.mrf.mxu2 }
 0x26c   : > { %7213 = vst [vmem:[#allocation127_spill] sm:$0xff] %v5782_v27  ;;  %2209 = vmatmul.f32.gmra.mxu3 %v1952_v21  ;;  %v5785_v43 = vpop.f32.mrf.mxu1 }
 0x26d   : > { %7214 = vst [vmem:[#allocation128_spill] sm:$0xff] %v5785_v43  ;;  %v1032_v43 = vld [vmem:[#allocation2 + $0x508] sm:$0xff] }
 0x26f   : > { %v2162_v62 = vpop.f32.mrf.mxu3  ;;  %1492 = vmatmul.f32.gmra.mxu1 %v641_v46  ;;  %v2377_v48 = vpop.f32.mrf.mxu0 }
 0x270   : > { %v5787_v24 = vadd.f32 %v2371_v53, %v2162_v62  ;;  %1701 = vmatmul.f32.gmra.mxu2 %v801_v37  ;;  %v646_v53 = vld [vmem:[%s4994_s14 + $0x198] sm:$0xff]  ;;  %v1958_v37 = vld [vmem:[#allocation2 + $0x510] sm:$0xff] }
 0x271   : > { %710 = vst [vmem:[#allocation2 + $0x560] sm:$0xff] %v646_v53  ;;  %v805_v62 = vld [vmem:[%s4994_s14 + $0x191] sm:$0xff] }
 0x272   : > { %7215 = vst [vmem:[#allocation129_spill] sm:$0xff] %v5787_v24  ;;  %2424 = vmatmul.f32.gmra.mxu0 %v643_v41 }
 0x273   : > { %v5790_v63 = vpop.f32.mrf.mxu2  ;;  %869 = vst [vmem:[#allocation2 + $0x550] sm:$0xff] %v805_v62 }
 0x274   : > { %7216 = vst [vmem:[#allocation130_spill] sm:$0xff] %v5790_v63  ;;  %2212 = vmatmul.f32.gmra.mxu3 %v1955_v51  ;;  %v5792_v21 = vpop.f32.mrf.mxu1  ;;  %v806_v63 = vld [vmem:[%s4994_s14 + $0x199] sm:$0x7f] }
 0x275   : > { %7217 = vst [vmem:[#allocation131_spill] sm:$0xff] %v5792_v21  ;;  %v3070_v21 = vld [vmem:[#allocation7 + $0x310] sm:$0xff] }
 0x276   : > { %870 = vst [vmem:[#allocation2 + $0x568] sm:$0x7f] %v806_v63  ;;  %3129 = vmatpush.msra.mxu2 %v3070_v21 }
 0x277   : > { %v2165_v57 = vpop.f32.mrf.mxu3  ;;  %1495 = vmatmul.f32.gmra.mxu1 %v642_v8  ;;  %v2380_v46 = vpop.f32.mrf.mxu0 }
 0x278   : > { %v5794_v27 = vadd.f32 %v2374_v44, %v2165_v57  ;;  %1704 = vmatmul.f32.gmra.mxu2 %v1032_v43  ;;  %v647_v57 = vld [vmem:[%s4994_s14 + $0x1a0] sm:$0xff] }
 0x279   : > { %711 = vst [vmem:[#allocation2 + $0x578] sm:$0xff] %v647_v57 }
 0x27a   : > { %7218 = vst [vmem:[#allocation132_spill] sm:$0xff] %v5794_v27  ;;  %2427 = vmatmul.f32.gmra.mxu0 %v644_v40  ;;  %v2041_v27 = vld [vmem:[#allocation7 + $0x290] sm:$0xff] }
 0x27b   : > { %v5798_v24 = vpop.f32.mrf.mxu2  ;;  %2486 = vmatpush.msra.mxu1 %v2041_v27  ;;  %v1964_v27 = vld [vmem:[#allocation2 + $0x540] sm:$0xff] }
 0x27c   : > { %7219 = vst [vmem:[#allocation133_spill] sm:$0xff] %v5798_v24  ;;  %2215 = vmatmul.f32.gmra.mxu3 %v1958_v37  ;;  %v5801_v51 = vpop.f32.mrf.mxu1  ;;  %v3085_v24 = vld [vmem:[#allocation7 + $0x388] sm:$0xff] }
 0x27d   : > { %7220 = vst [vmem:[#allocation134_spill] sm:$0xff] %v5801_v51  ;;  %v807_v51 = vld [vmem:[%s4994_s14 + $0x1a1] sm:$0xff]  ;;  %3339 = vmatpush.msra.mxu3 %v3085_v24 }
 0x27e   : > { %871 = vst [vmem:[#allocation2 + $0x580] sm:$0xff] %v807_v51  ;;  %v3101_v24 = vld [vmem:[#allocation7 + $0x408] sm:$0xff] }
 0x27f   : > { %v2168_v8 = vpop.f32.mrf.mxu3  ;;  %1498 = vmatmul.f32.gmra.mxu1 %v643_v41  ;;  %v2383_v43 = vpop.f32.mrf.mxu0  ;;  %v1038_v41 = vld [vmem:[#allocation2 + $0x538] sm:$0xff]  ;;  %3548 = vmatpush.msra.mxu0 %v3101_v24 }
 0x280   : > { %v5803_v44 = vadd.f32 %v2377_v48, %v2168_v8  ;;  %1707 = vmatmul.f32.gmra.mxu2 %v803_v17  ;;  %v648_v8 = vld [vmem:[%s4994_s14 + $0x1a8] sm:$0xff] }
 0x281   : > { %712 = vst [vmem:[#allocation2 + $0x590] sm:$0xff] %v648_v8 }
 0x282   : > { %7221 = vst [vmem:[#allocation135_spill] sm:$0xff] %v5803_v44  ;;  %2430 = vmatmul.f32.gmra.mxu0 %v645_v34  ;;  %v1973_v44 = vld [vmem:[#allocation2 + $0x588] sm:$0xff] }
 0x283   : > { %v5806_v37 = vpop.f32.mrf.mxu2 }
 0x284   : > { %7222 = vst [vmem:[#allocation136_spill] sm:$0xff] %v5806_v37  ;;  %2218 = vmatmul.f32.gmra.mxu3 %v1961_v56  ;;  %v5808_v63 = vpop.f32.mrf.mxu1 }
 0x285   : > { %7223 = vst [vmem:[#allocation137_spill] sm:$0xff] %v5808_v63  ;;  %v808_v63 = vld [vmem:[%s4994_s14 + $0x1a9] sm:$0x7f] }
 0x286   : > { %872 = vst [vmem:[#allocation2 + $0x598] sm:$0x7f] %v808_v63 }
 0x287   : > { %v2171_v48 = vpop.f32.mrf.mxu3  ;;  %1501 = vmatmul.f32.gmra.mxu1 %v644_v40  ;;  %v2386_v17 = vpop.f32.mrf.mxu0 }
 0x288   : > { %v5810_v21 = vadd.f32 %v2380_v46, %v2171_v48  ;;  %1710 = vmatmul.f32.gmra.mxu2 %v1038_v41  ;;  %v649_v41 = vld [vmem:[%s4994_s14 + $0x1b0] sm:$0xff]  ;;  %v1967_v48 = vld [vmem:[#allocation2 + $0x558] sm:$0xff] }
 0x289   : > { %713 = vst [vmem:[#allocation2 + $0x5a8] sm:$0xff] %v649_v41 }
 0x28a   : > { %7224 = vst [vmem:[#allocation138_spill] sm:$0xff] %v5810_v21  ;;  %2433 = vmatmul.f32.gmra.mxu0 %v646_v53 }
 0x28b   : > { %v5814_v56 = vpop.f32.mrf.mxu2 }
 0x28c   : > { %7225 = vst [vmem:[#allocation139_spill] sm:$0xff] %v5814_v56  ;;  %2221 = vmatmul.f32.gmra.mxu3 %v1964_v27  ;;  %v5817_v37 = vpop.f32.mrf.mxu1 }
 0x28d   : > { %7226 = vst [vmem:[#allocation140_spill] sm:$0xff] %v5817_v37  ;;  %v1044_v37 = vld [vmem:[#allocation2 + $0x568] sm:$0xff] }
 0x28f   : > { %v2174_v50 = vpop.f32.mrf.mxu3  ;;  %1504 = vmatmul.f32.gmra.mxu1 %v645_v34  ;;  %v2389_v40 = vpop.f32.mrf.mxu0 }
 0x290   : > { %v5819_v46 = vadd.f32 %v2383_v43, %v2174_v50  ;;  %1713 = vmatmul.f32.gmra.mxu2 %v805_v62  ;;  %v650_v43 = vld [vmem:[%s4994_s14 + $0x1b8] sm:$0xff]  ;;  %v1970_v62 = vld [vmem:[#allocation2 + $0x570] sm:$0xff] }
 0x291   : > { %714 = vst [vmem:[#allocation2 + $0x5c0] sm:$0xff] %v650_v43  ;;  %v809_v50 = vld [vmem:[%s4994_s14 + $0x1b1] sm:$0xff] }
 0x292   : > { %7227 = vst [vmem:[#allocation141_spill] sm:$0xff] %v5819_v46  ;;  %2436 = vmatmul.f32.gmra.mxu0 %v647_v57 }
 0x293   : > { %v5822_v21 = vpop.f32.mrf.mxu2  ;;  %873 = vst [vmem:[#allocation2 + $0x5b0] sm:$0xff] %v809_v50 }
 0x294   : > { %7228 = vst [vmem:[#allocation142_spill] sm:$0xff] %v5822_v21  ;;  %2224 = vmatmul.f32.gmra.mxu3 %v1967_v48  ;;  %v5824_v27 = vpop.f32.mrf.mxu1  ;;  %v810_v21 = vld [vmem:[%s4994_s14 + $0x1b9] sm:$0x7f] }
 0x295   : > { %7229 = vst [vmem:[#allocation143_spill] sm:$0xff] %v5824_v27  ;;  %v3069_v27 = vld [vmem:[#allocation7 + $0x308] sm:$0xff] }
 0x296   : > { %874 = vst [vmem:[#allocation2 + $0x5c8] sm:$0x7f] %v810_v21  ;;  %3130 = vmatpush.msra.mxu2 %v3069_v27 }
 0x297   : > { %v2177_v63 = vpop.f32.mrf.mxu3  ;;  %1507 = vmatmul.f32.gmra.mxu1 %v646_v53  ;;  %v2392_v34 = vpop.f32.mrf.mxu0 }
 0x298   : > { %v5826_v56 = vadd.f32 %v2386_v17, %v2177_v63  ;;  %1716 = vmatmul.f32.gmra.mxu2 %v1044_v37  ;;  %v651_v63 = vld [vmem:[%s4994_s14 + $0x1c0] sm:$0xff] }
 0x299   : > { %715 = vst [vmem:[#allocation2 + $0x5d8] sm:$0xff] %v651_v63 }
 0x29a   : > { %7230 = vst [vmem:[#allocation144_spill] sm:$0xff] %v5826_v56  ;;  %2439 = vmatmul.f32.gmra.mxu0 %v648_v8  ;;  %v2040_v56 = vld [vmem:[#allocation7 + $0x288] sm:$0xff] }
 0x29b   : > { %v5830_v46 = vpop.f32.mrf.mxu2  ;;  %2487 = vmatpush.msra.mxu1 %v2040_v56  ;;  %v1976_v56 = vld [vmem:[#allocation2 + $0x5a0] sm:$0xff] }
 0x29c   : > { %7231 = vst [vmem:[#allocation145_spill] sm:$0xff] %v5830_v46  ;;  %2227 = vmatmul.f32.gmra.mxu3 %v1970_v62  ;;  %v5833_v48 = vpop.f32.mrf.mxu1  ;;  %v812_v46 = vld [vmem:[%s4994_s14 + $0x1c9] sm:$0x7f] }
 0x29d   : > { %7232 = vst [vmem:[#allocation146_spill] sm:$0xff] %v5833_v48  ;;  %v2039_v48 = vld [vmem:[#allocation7 + $0x280] sm:$0xff] }
 0x29e   : > { %876 = vst [vmem:[#allocation2 + $0x5f8] sm:$0x7f] %v812_v46  ;;  %v1056_v46 = vld [vmem:[#allocation2 + $0x5c8] sm:$0xff]  ;;  %2488 = vmatpush.msra.mxu1 %v2039_v48 }
 0x29f   : > { %v2180_v53 = vpop.f32.mrf.mxu3  ;;  %1510 = vmatmul.f32.gmra.mxu1 %v647_v57  ;;  %v2395_v37 = vpop.f32.mrf.mxu0  ;;  %v1050_v57 = vld [vmem:[#allocation2 + $0x598] sm:$0xff] }
 0x2a0   : > { %v5835_v17 = vadd.f32 %v2389_v40, %v2180_v53  ;;  %1719 = vmatmul.f32.gmra.mxu2 %v807_v51  ;;  %v5845_v53 = vld [vmem:[%s4994_s14 + $0x1c8] sm:$0xff] }
 0x2a1   : > { %716 = vst [vmem:[#allocation2 + $0x5f0] sm:$0xff] %v5845_v53 }
 0x2a2   : > { %7233 = vst [vmem:[#allocation147_spill] sm:$0xff] %v5835_v17  ;;  %2442 = vmatmul.f32.gmra.mxu0 %v649_v41  ;;  %v1985_v17 = vld [vmem:[#allocation2 + $0x5e8] sm:$0xff] }
 0x2a3   : > { %v5838_v62 = vpop.f32.mrf.mxu2 }
 0x2a4   : > { %7234 = vst [vmem:[#allocation148_spill] sm:$0xff] %v5838_v62  ;;  %2230 = vmatmul.f32.gmra.mxu3 %v1973_v44  ;;  %v5840_v21 = vpop.f32.mrf.mxu1  ;;  %v811_v62 = vld [vmem:[%s4994_s14 + $0x1c1] sm:$0xff] }
 0x2a5   : > { %7235 = vst [vmem:[#allocation149_spill] sm:$0xff] %v5840_v21  ;;  %v655_v21 = vld [vmem:[%s4994_s14 + $0x1e0] sm:$0xff] }
 0x2a6   : > { %875 = vst [vmem:[#allocation2 + $0x5e0] sm:$0xff] %v811_v62 }
 0x2a7   : > { %v2183_v40 = vpop.f32.mrf.mxu3  ;;  %1513 = vmatmul.f32.gmra.mxu1 %v648_v8  ;;  %v2398_v51 = vpop.f32.mrf.mxu0  ;;  %719 = vst [vmem:[#allocation2 + $0x638] sm:$0xff] %v655_v21 }
 0x2a8   : > { %v5842_v27 = vadd.f32 %v2392_v34, %v2183_v40  ;;  %1722 = vmatmul.f32.gmra.mxu2 %v1050_v57  ;;  %v5857_v40 = vld [vmem:[%s4994_s14 + $0x1d0] sm:$0xff] }
 0x2a9   : > { %717 = vst [vmem:[#allocation2 + $0x608] sm:$0xff] %v5857_v40 }
 0x2aa   : > { %7236 = vst [vmem:[#allocation150_spill] sm:$0xff] %v5842_v27  ;;  %2445 = vmatmul.f32.gmra.mxu0 %v650_v43  ;;  %v1979_v27 = vld [vmem:[#allocation2 + $0x5b8] sm:$0xff] }
 0x2ab   : > { %v5849_v44 = vpop.f32.mrf.mxu2 }
 0x2ac   : > { %7237 = vst [vmem:[#allocation151_spill] sm:$0xff] %v5849_v44  ;;  %2233 = vmatmul.f32.gmra.mxu3 %v1976_v56  ;;  %v5852_v24 = vpop.f32.mrf.mxu1 }
 0x2ad   : > { %7238 = vst [vmem:[#allocation152_spill] sm:$0xff] %v5852_v24 }
 0x2af   : > { %v2186_v8 = vpop.f32.mrf.mxu3  ;;  %1516 = vmatmul.f32.gmra.mxu1 %v649_v41  ;;  %v2401_v34 = vpop.f32.mrf.mxu0 }
 0x2b0   : > { %v5854_v57 = vadd.f32 %v2395_v37, %v2186_v8  ;;  %1725 = vmatmul.f32.gmra.mxu2 %v809_v50  ;;  %v5867_v50 = vld [vmem:[%s4994_s14 + $0x1d8] sm:$0xff]  ;;  %v1982_v8 = vld [vmem:[#allocation2 + $0x5d0] sm:$0xff] }
 0x2b1   : > { %718 = vst [vmem:[#allocation2 + $0x620] sm:$0xff] %v5867_v50 }
 0x2b2   : > { %7239 = vst [vmem:[#allocation153_spill] sm:$0xff] %v5854_v57  ;;  %2448 = vmatmul.f32.gmra.mxu0 %v651_v63  ;;  %v813_v57 = vld [vmem:[%s4994_s14 + $0x1d1] sm:$0xff] }
 0x2b3   : > { %v5860_v44 = vpop.f32.mrf.mxu2  ;;  %877 = vst [vmem:[#allocation2 + $0x610] sm:$0xff] %v813_v57 }
 0x2b4   : > { %7240 = vst [vmem:[#allocation154_spill] sm:$0xff] %v5860_v44  ;;  %2236 = vmatmul.f32.gmra.mxu3 %v1979_v27  ;;  %v5862_v56 = vpop.f32.mrf.mxu1 }
 0x2b5   : > { %7241 = vst [vmem:[#allocation155_spill] sm:$0xff] %v5862_v56  ;;  %v814_v56 = vld [vmem:[%s4994_s14 + $0x1d9] sm:$0x7f] }
 0x2b6   : > { %878 = vst [vmem:[#allocation2 + $0x628] sm:$0x7f] %v814_v56 }
 0x2b7   : > { %v2189_v41 = vpop.f32.mrf.mxu3  ;;  %1519 = vmatmul.f32.gmra.mxu1 %v650_v43  ;;  %v2404_v24 = vpop.f32.mrf.mxu0  ;;  %v3068_v43 = vld [vmem:[#allocation7 + $0x300] sm:$0xff] }
 0x2b8   : > { %v5864_v37 = vadd.f32 %v2398_v51, %v2189_v41  ;;  %1728 = vmatmul.f32.gmra.mxu2 %v1056_v46  ;;  %v3084_v51 = vld [vmem:[#allocation7 + $0x380] sm:$0xff] }
 0x2b9   : > { %3131 = vmatpush.msra.mxu2 %v3068_v43  ;;  %3340 = vmatpush.msra.mxu3 %v3084_v51 }
 0x2ba   : > { %7242 = vst [vmem:[#allocation156_spill] sm:$0xff] %v5864_v37  ;;  %2451 = vmatmul.f32.gmra.mxu0 %v5845_v53 }
 0x2bb   : > { %v5872_v27 = vpop.f32.mrf.mxu2 }
 0x2bc   : > { %7243 = vst [vmem:[#allocation157_spill] sm:$0xff] %v5872_v27  ;;  %2239 = vmatmul.f32.gmra.mxu3 %v1982_v8  ;;  %v5875_v44 = vpop.f32.mrf.mxu1  ;;  %v304_v8 = vld [vmem:[%s4994_s14 + $0x1f0] sm:$0xff]  ;;  %v1988_v27 = vld [vmem:[#allocation2 + $0x600] sm:$0xff] }
 0x2bd   : > { %7244 = vst [vmem:[#allocation158_spill] sm:$0xff] %v5875_v44  ;;  %v464_v44 = vrot.slane %v304_v8, 7 }
 0x2be   : > { %721 = vst [vmem:[#allocation2 + $0x668] sm:$0xff] %v304_v8 }
 0x2bf   : > { %v2192_v46 = vpop.f32.mrf.mxu3  ;;  %1522 = vmatmul.f32.gmra.mxu1 %v651_v63  ;;  %v2407_v41 = vpop.f32.mrf.mxu0  ;;  %593 = vst [vmem:[#allocation2 + $0x660] sm:$0xfe] %v464_v44 }
 0x2c0   : > { %v5877_v37 = vadd.f32 %v2401_v34, %v2192_v46  ;;  %1731 = vmatmul.f32.gmra.mxu2 %v811_v62  ;;  %v3100_v34 = vld [vmem:[#allocation7 + $0x400] sm:$0xff]  ;;  %v1062_v62 = vld [vmem:[#allocation2 + $0x5f8] sm:$0xff]  ;;  %v656_v46 = vld [vmem:[%s4994_s14 + $0x1e8] sm:$0xff] }
 0x2c1   : > { %3549 = vmatpush.msra.mxu0 %v3100_v34  ;;  %720 = vst [vmem:[#allocation2 + $0x650] sm:$0xff] %v656_v46 }
 0x2c2   : > { %7245 = vst [vmem:[#allocation159_spill] sm:$0xff] %v5877_v37  ;;  %2454 = vmatmul.f32.gmra.mxu0 %v5857_v40 }
 0x2c3   : > { %v5882_v56 = vpop.f32.mrf.mxu2 }
 0x2c4   : > { %7246 = vst [vmem:[#allocation160_spill] sm:$0xff] %v5882_v56  ;;  %2242 = vmatmul.f32.gmra.mxu3 %v1985_v17  ;;  %v5884_v63 = vpop.f32.mrf.mxu1  ;;  %v815_v56 = vld [vmem:[%s4994_s14 + $0x1e1] sm:$0xff] }
 0x2c5   : > { %7247 = vst [vmem:[#allocation161_spill] sm:$0xff] %v5884_v63  ;;  %v816_v63 = vld [vmem:[%s4994_s14 + $0x1e9] sm:$0x7f] }
 0x2c6   : > { %879 = vst [vmem:[#allocation2 + $0x640] sm:$0xff] %v815_v56 }
 0x2c7   : > { %v2195_v43 = vpop.f32.mrf.mxu3  ;;  %1525 = vmatmul.f32.gmra.mxu1 %v5845_v53  ;;  %v2410_v48 = vpop.f32.mrf.mxu0  ;;  %880 = vst [vmem:[#allocation2 + $0x658] sm:$0x7f] %v816_v63  ;;  %v1068_v63 = vld [vmem:[#allocation2 + $0x628] sm:$0xff] }
 0x2c8   : > { %v5887_v51 = vadd.f32 %v2404_v24, %v2195_v43  ;;  %1734 = vmatmul.f32.gmra.mxu2 %v1062_v62  ;;  %v305_v43 = vld [vmem:[%s4994_s14 + $0x1f8] sm:$0x7f] }
 0x2c9   : > { %v465_v37 = vrot.slane %v305_v43, 7 }
 0x2ca   : > { %7248 = vst [vmem:[#allocation162_spill] sm:$0xff] %v5887_v51  ;;  %2457 = vmatmul.f32.gmra.mxu0 %v5867_v50  ;;  %v1991_v51 = vld [vmem:[#allocation2 + $0x618] sm:$0xff] }
 0x2cb   : > { %v5892_v17 = vpop.f32.mrf.mxu2 }
 0x2cc   : > { %7249 = vst [vmem:[#allocation163_spill] sm:$0xff] %v5892_v17  ;;  %2245 = vmatmul.f32.gmra.mxu3 %v1988_v27  ;;  %v5895_v34 = vpop.f32.mrf.mxu1  ;;  %v466_v17 = vsel %vm370_vm0, %v464_v44, %v465_v37 }
 0x2cd   : > { %7250 = vst [vmem:[#allocation164_spill] sm:$0xff] %v5895_v34 }
 0x2ce   : > { %594 = vst [vmem:[#allocation2 + $0x678] sm:$0xff] %v466_v17 }
 0x2cf   : > { %v2198_v53 = vpop.f32.mrf.mxu3  ;;  %1528 = vmatmul.f32.gmra.mxu1 %v5857_v40  ;;  %v2413_v24 = vpop.f32.mrf.mxu0 }
 0x2d0   : > { %v5898_v62 = vadd.f32 %v2407_v41, %v2198_v53  ;;  %1737 = vmatmul.f32.gmra.mxu2 %v813_v57  ;;  %v658_v57 = vld [vmem:[%s4994_s14 + $0x1f8] sm:$0xff]  ;;  %v1994_v53 = vld [vmem:[#allocation2 + $0x630] sm:$0xff] }
 0x2d1   : > { %722 = vst [vmem:[#allocation2 + $0x680] sm:$0xff] %v658_v57 }
 0x2d2   : > { %2460 = vmatmul.f32.gmra.mxu0 %v655_v21 }
 0x2d3   : > { %v5901_v45 = vpop.f32.mrf.mxu2 }
 0x2d4   : > { %7251 = vst [vmem:[#allocation165_spill] sm:$0xff] %v5901_v45  ;;  %2248 = vmatmul.f32.gmra.mxu3 %v1991_v51  ;;  %v5904_v27 = vpop.f32.mrf.mxu1 }
 0x2d5   : > { %7252 = vst [vmem:[#allocation166_spill] sm:$0xff] %v5904_v27 }
 0x2d7   : > { %v2201_v34 = vpop.f32.mrf.mxu3  ;;  %1531 = vmatmul.f32.gmra.mxu1 %v5867_v50  ;;  %v2416_v40 = vpop.f32.mrf.mxu0  ;;  %v1997_v50 = vld [vmem:[#allocation2 + $0x648] sm:$0xff] }
 0x2d8   : > { %v5907_v41 = vadd.f32 %v2410_v48, %v2201_v34  ;;  %1740 = vmatmul.f32.gmra.mxu2 %v1068_v63  ;;  %v1074_v63 = vld [vmem:[#allocation2 + $0x658] sm:$0xff] }
 0x2da   : > { %7253 = vst [vmem:[#allocation167_spill] sm:$0xff] %v5907_v41  ;;  %2463 = vmatmul.f32.gmra.mxu0 %v656_v46 }
 0x2db   : > { %v5910_v43 = vpop.f32.mrf.mxu2 }
 0x2dc   : > { %7254 = vst [vmem:[#allocation168_spill] sm:$0xff] %v5910_v43  ;;  %2251 = vmatmul.f32.gmra.mxu3 %v1994_v53  ;;  %v5912_v44 = vpop.f32.mrf.mxu1 }
 0x2dd   : > { %7255 = vst [vmem:[#allocation169_spill] sm:$0xff] %v5912_v44  ;;  %v2000_v44 = vld [vmem:[#allocation2 + $0x660] sm:$0xff] }
 0x2df   : > { %v2204_v37 = vpop.f32.mrf.mxu3  ;;  %1534 = vmatmul.f32.gmra.mxu1 %v655_v21  ;;  %v2419_v51 = vpop.f32.mrf.mxu0 }
 0x2e0   : > { %v5914_v27 = vadd.f32 %v2413_v24, %v2204_v37  ;;  %1743 = vmatmul.f32.gmra.mxu2 %v815_v56  ;;  %v2875_v24 = vld [vmem:[#allocation2 + $0x60] sm:$0xff] }
 0x2e2   : > { %7256 = vst [vmem:[#allocation170_spill] sm:$0xff] %v5914_v27  ;;  %2466 = vmatmul.f32.gmra.mxu0 %v304_v8  ;;  %v1816_v8 = vld [vmem:[#allocation2 + $0x40] sm:$0xff] }
 0x2e3   : > { %v5916_v48 = vpop.f32.mrf.mxu2 }
 0x2e4   : > { %7257 = vst [vmem:[#allocation171_spill] sm:$0xff] %v5916_v48  ;;  %2254 = vmatmul.f32.gmra.mxu3 %v1997_v50  ;;  %v5918_v34 = vpop.f32.mrf.mxu1 }
 0x2e5   : > { %7258 = vst [vmem:[#allocation172_spill] sm:$0xff] %v5918_v34  ;;  %v2877_v34 = vld [vmem:[#allocation2 + $0x70] sm:$0xff] }
 0x2e7   : > { %v2207_v45 = vpop.f32.mrf.mxu3  ;;  %1537 = vmatmul.f32.gmra.mxu1 %v656_v46  ;;  %v2422_v43 = vpop.f32.mrf.mxu0 }
 0x2e8   : > { %v5920_v53 = vadd.f32 %v2416_v40, %v2207_v45  ;;  %1746 = vmatmul.f32.gmra.mxu2 %v1074_v63  ;;  %v1819_v40 = vld [vmem:[#allocation2 + $0x58] sm:$0xff] }
 0x2ea   : > { %7259 = vst [vmem:[#allocation173_spill] sm:$0xff] %v5920_v53  ;;  %2469 = vmatmul.f32.gmra.mxu0 %v658_v57  ;;  %v2878_v57 = vld [vmem:[#allocation2 + $0x78] sm:$0xff] }
 0x2eb   : > { %v5922_v21 = vpop.f32.mrf.mxu2 }
 0x2ec   : > { %7260 = vst [vmem:[#allocation174_spill] sm:$0xff] %v5922_v21  ;;  %2257 = vmatmul.f32.gmra.mxu3 %v2000_v44  ;;  %v5924_v56 = vpop.f32.mrf.mxu1 }
 0x2ed   : > { %7261 = vst [vmem:[#allocation175_spill] sm:$0xff] %v5924_v56  ;;  %v2880_v56 = vld [vmem:[#allocation2 + $0x88] sm:$0xff] }
 0x2ef   : > { %v2210_v37 = vpop.f32.mrf.mxu3  ;;  %2489 = vmatmul.f32.vlgmr.msra.gmra.mxu1 %v1816_v8  ;;  %v2425_v50 = vpop.f32.mrf.mxu0  ;;  %v2876_v8 = vld [vmem:[#allocation2 + $0x68] sm:$0xff] }
 0x2f0   : > { %v5926_v48 = vadd.f32 %v2419_v51, %v2210_v37  ;;  %3132 = vmatmul.f32.vlgmr.msra.gmra.mxu2 %v2875_v24  ;;  %v2881_v37 = vld [vmem:[#allocation2 + $0x90] sm:$0xff] }
 0x2f2   : > { %7262 = vst [vmem:[#allocation176_spill] sm:$0xff] %v5926_v48  ;;  %3550 = vmatmul.f32.vlgmr.msra.gmra.mxu0 %v2877_v34 }
 0x2f3   : > { %v5928_v45 = vpop.f32.mrf.mxu2 }
 0x2f4   : > { %7263 = vst [vmem:[#allocation177_spill] sm:$0xff] %v5928_v45  ;;  %2260 = vmatmul.f32.gmra.mxu3 %v466_v17  ;;  %v5930_v46 = vpop.f32.mrf.mxu1  ;;  %v2883_v45 = vld [vmem:[#allocation2 + $0xa0] sm:$0xff] }
 0x2f5   : > { %7264 = vst [vmem:[#allocation178_spill] sm:$0xff] %v5930_v46 }
 0x2f7   : > { %v2213_v44 = vpop.f32.mrf.mxu3  ;;  %2492 = vmatmul.f32.gmra.mxu1 %v1819_v40  ;;  %v2428_v63 = vpop.f32.mrf.mxu0  ;;  %v2879_v40 = vld [vmem:[#allocation2 + $0x80] sm:$0xff] }
 0x2f8   : > { %v5932_v21 = vadd.f32 %v2422_v43, %v2213_v44  ;;  %3135 = vmatmul.f32.gmra.mxu2 %v2878_v57  ;;  %v2884_v44 = vld [vmem:[#allocation2 + $0xa8] sm:$0xff] }
 0x2fa   : > { %7265 = vst [vmem:[#allocation179_spill] sm:$0xff] %v5932_v21  ;;  %3553 = vmatmul.f32.gmra.mxu0 %v2880_v56 }
 0x2fb   : > { %v5934_v51 = vpop.f32.mrf.mxu2 }
 0x2fc   : > { %7266 = vst [vmem:[#allocation180_spill] sm:$0xff] %v5934_v51  ;;  %3341 = vmatmul.f32.vlgmr.msra.gmra.mxu3 %v2876_v8  ;;  %v5936_v24 = vpop.f32.mrf.mxu1 }
 0x2fd   : > { %7267 = vst [vmem:[#allocation181_spill] sm:$0xff] %v5936_v24  ;;  %v2886_v24 = vld [vmem:[#allocation2 + $0xb8] sm:$0xff] }
 0x2ff   : > { %v2216_v17 = vpop.f32.mrf.mxu3  ;;  %2495 = vmatmul.f32.gmra.mxu1 %v2877_v34  ;;  %v2431_v46 = vpop.f32.mrf.mxu0  ;;  %v2882_v34 = vld [vmem:[#allocation2 + $0x98] sm:$0xff] }
 0x300   : > { %v5938_v48 = vadd.f32 %v2425_v50, %v2216_v17  ;;  %3138 = vmatmul.f32.gmra.mxu2 %v2881_v37  ;;  %v2887_v17 = vld [vmem:[#allocation2 + $0xc0] sm:$0xff] }
 0x302   : > { %7268 = vst [vmem:[#allocation182_spill] sm:$0xff] %v5938_v48  ;;  %3556 = vmatmul.f32.gmra.mxu0 %v2883_v45 }
 0x303   : > { %v5940_v43 = vpop.f32.mrf.mxu2 }
 0x304   : > { %7269 = vst [vmem:[#allocation183_spill] sm:$0xff] %v5940_v43  ;;  %3344 = vmatmul.f32.gmra.mxu3 %v2879_v40  ;;  %v5942_v57 = vpop.f32.mrf.mxu1 }
 0x305   : > { %7270 = vst [vmem:[#allocation184_spill] sm:$0xff] %v5942_v57  ;;  %v2889_v57 = vld [vmem:[#allocation2 + $0xd0] sm:$0xff] }
 0x307   : > { %v2219_v51 = vpop.f32.mrf.mxu3  ;;  %2498 = vmatmul.f32.gmra.mxu1 %v2880_v56  ;;  %v2434_v8 = vpop.f32.mrf.mxu0  ;;  %v2885_v56 = vld [vmem:[#allocation2 + $0xb0] sm:$0xff] }
 0x308   : > { %v5944_v21 = vadd.f32 %v2428_v63, %v2219_v51  ;;  %3141 = vmatmul.f32.gmra.mxu2 %v2884_v44  ;;  %v2890_v44 = vld [vmem:[#allocation2 + $0xd8] sm:$0xff] }
 0x30a   : > { %7271 = vst [vmem:[#allocation185_spill] sm:$0xff] %v5944_v21  ;;  %3559 = vmatmul.f32.gmra.mxu0 %v2886_v24 }
 0x30b   : > { %v5946_v50 = vpop.f32.mrf.mxu2 }
 0x30c   : > { %7272 = vst [vmem:[#allocation186_spill] sm:$0xff] %v5946_v50  ;;  %3347 = vmatmul.f32.gmra.mxu3 %v2882_v34  ;;  %v5948_v37 = vpop.f32.mrf.mxu1 }
 0x30d   : > { %7273 = vst [vmem:[#allocation187_spill] sm:$0xff] %v5948_v37  ;;  %v2892_v37 = vld [vmem:[#allocation2 + $0xe8] sm:$0xff] }
 0x30f   : > { %v2222_v43 = vpop.f32.mrf.mxu3  ;;  %2501 = vmatmul.f32.gmra.mxu1 %v2883_v45  ;;  %v2437_v40 = vpop.f32.mrf.mxu0  ;;  %v2888_v45 = vld [vmem:[#allocation2 + $0xc8] sm:$0xff] }
 0x310   : > { %v5950_v48 = vadd.f32 %v2431_v46, %v2222_v43  ;;  %3144 = vmatmul.f32.gmra.mxu2 %v2887_v17  ;;  %v2893_v17 = vld [vmem:[#allocation2 + $0xf0] sm:$0xff] }
 0x312   : > { %7274 = vst [vmem:[#allocation188_spill] sm:$0xff] %v5950_v48  ;;  %3562 = vmatmul.f32.gmra.mxu0 %v2889_v57 }
 0x313   : > { %v5952_v63 = vpop.f32.mrf.mxu2 }
 0x314   : > { %7275 = vst [vmem:[#allocation189_spill] sm:$0xff] %v5952_v63  ;;  %3350 = vmatmul.f32.gmra.mxu3 %v2885_v56  ;;  %v5954_v51 = vpop.f32.mrf.mxu1 }
 0x315   : > { %7276 = vst [vmem:[#allocation190_spill] sm:$0xff] %v5954_v51  ;;  %v2895_v51 = vld [vmem:[#allocation2 + $0x100] sm:$0xff] }
 0x317   : > { %v2225_v50 = vpop.f32.mrf.mxu3  ;;  %2504 = vmatmul.f32.gmra.mxu1 %v2886_v24  ;;  %v2440_v34 = vpop.f32.mrf.mxu0  ;;  %v2891_v24 = vld [vmem:[#allocation2 + $0xe0] sm:$0xff] }
 0x318   : > { %v5956_v21 = vadd.f32 %v2434_v8, %v2225_v50  ;;  %3147 = vmatmul.f32.gmra.mxu2 %v2890_v44  ;;  %v2896_v44 = vld [vmem:[#allocation2 + $0x108] sm:$0xff] }
 0x31a   : > { %7277 = vst [vmem:[#allocation191_spill] sm:$0xff] %v5956_v21  ;;  %3565 = vmatmul.f32.gmra.mxu0 %v2892_v37 }
 0x31b   : > { %v5958_v46 = vpop.f32.mrf.mxu2 }
 0x31c   : > { %7278 = vst [vmem:[#allocation192_spill] sm:$0xff] %v5958_v46  ;;  %3353 = vmatmul.f32.gmra.mxu3 %v2888_v45  ;;  %v5960_v43 = vpop.f32.mrf.mxu1 }
 0x31d   : > { %7279 = vst [vmem:[#allocation193_spill] sm:$0xff] %v5960_v43  ;;  %v2898_v43 = vld [vmem:[#allocation2 + $0x118] sm:$0xff] }
 0x31f   : > { %v2228_v63 = vpop.f32.mrf.mxu3  ;;  %2507 = vmatmul.f32.gmra.mxu1 %v2889_v57  ;;  %v2443_v56 = vpop.f32.mrf.mxu0  ;;  %v2894_v57 = vld [vmem:[#allocation2 + $0xf8] sm:$0xff] }
 0x320   : > { %v5962_v48 = vadd.f32 %v2437_v40, %v2228_v63  ;;  %3150 = vmatmul.f32.gmra.mxu2 %v2893_v17  ;;  %v2899_v17 = vld [vmem:[#allocation2 + $0x120] sm:$0xff] }
 0x322   : > { %7280 = vst [vmem:[#allocation194_spill] sm:$0xff] %v5962_v48  ;;  %3568 = vmatmul.f32.gmra.mxu0 %v2895_v51 }
 0x323   : > { %v5964_v8 = vpop.f32.mrf.mxu2 }
 0x324   : > { %7281 = vst [vmem:[#allocation195_spill] sm:$0xff] %v5964_v8  ;;  %3356 = vmatmul.f32.gmra.mxu3 %v2891_v24  ;;  %v5966_v50 = vpop.f32.mrf.mxu1 }
 0x325   : > { %7282 = vst [vmem:[#allocation196_spill] sm:$0xff] %v5966_v50  ;;  %v2901_v50 = vld [vmem:[#allocation2 + $0x130] sm:$0xff] }
 0x327   : > { %v2231_v46 = vpop.f32.mrf.mxu3  ;;  %2510 = vmatmul.f32.gmra.mxu1 %v2892_v37  ;;  %v2446_v45 = vpop.f32.mrf.mxu0  ;;  %v2897_v37 = vld [vmem:[#allocation2 + $0x110] sm:$0xff] }
 0x328   : > { %v5968_v21 = vadd.f32 %v2440_v34, %v2231_v46  ;;  %3153 = vmatmul.f32.gmra.mxu2 %v2896_v44  ;;  %v2902_v44 = vld [vmem:[#allocation2 + $0x138] sm:$0xff] }
 0x32a   : > { %7283 = vst [vmem:[#allocation197_spill] sm:$0xff] %v5968_v21  ;;  %3571 = vmatmul.f32.gmra.mxu0 %v2898_v43 }
 0x32b   : > { %v5970_v40 = vpop.f32.mrf.mxu2 }
 0x32c   : > { %7284 = vst [vmem:[#allocation198_spill] sm:$0xff] %v5970_v40  ;;  %3359 = vmatmul.f32.gmra.mxu3 %v2894_v57  ;;  %v5972_v63 = vpop.f32.mrf.mxu1 }
 0x32d   : > { %7285 = vst [vmem:[#allocation199_spill] sm:$0xff] %v5972_v63  ;;  %v2904_v63 = vld [vmem:[#allocation2 + $0x148] sm:$0xff] }
 0x32f   : > { %v2234_v8 = vpop.f32.mrf.mxu3  ;;  %2513 = vmatmul.f32.gmra.mxu1 %v2895_v51  ;;  %v2449_v24 = vpop.f32.mrf.mxu0  ;;  %v2900_v51 = vld [vmem:[#allocation2 + $0x128] sm:$0xff] }
 0x330   : > { %v5974_v48 = vadd.f32 %v2443_v56, %v2234_v8  ;;  %3156 = vmatmul.f32.gmra.mxu2 %v2899_v17  ;;  %v2905_v17 = vld [vmem:[#allocation2 + $0x150] sm:$0xff] }
 0x332   : > { %7286 = vst [vmem:[#allocation200_spill] sm:$0xff] %v5974_v48  ;;  %3574 = vmatmul.f32.gmra.mxu0 %v2901_v50 }
 0x333   : > { %v5976_v34 = vpop.f32.mrf.mxu2 }
 0x334   : > { %7287 = vst [vmem:[#allocation201_spill] sm:$0xff] %v5976_v34  ;;  %3362 = vmatmul.f32.gmra.mxu3 %v2897_v37  ;;  %v5978_v46 = vpop.f32.mrf.mxu1 }
 0x335   : > { %7288 = vst [vmem:[#allocation202_spill] sm:$0xff] %v5978_v46  ;;  %v2907_v46 = vld [vmem:[#allocation2 + $0x160] sm:$0xff] }
 0x337   : > { %v2237_v40 = vpop.f32.mrf.mxu3  ;;  %2516 = vmatmul.f32.gmra.mxu1 %v2898_v43  ;;  %v2452_v57 = vpop.f32.mrf.mxu0  ;;  %v2903_v43 = vld [vmem:[#allocation2 + $0x140] sm:$0xff] }
 0x338   : > { %v5980_v21 = vadd.f32 %v2446_v45, %v2237_v40  ;;  %3159 = vmatmul.f32.gmra.mxu2 %v2902_v44  ;;  %v2908_v44 = vld [vmem:[#allocation2 + $0x168] sm:$0xff] }
 0x33a   : > { %7289 = vst [vmem:[#allocation203_spill] sm:$0xff] %v5980_v21  ;;  %3577 = vmatmul.f32.gmra.mxu0 %v2904_v63 }
 0x33b   : > { %v5982_v56 = vpop.f32.mrf.mxu2 }
 0x33c   : > { %7290 = vst [vmem:[#allocation204_spill] sm:$0xff] %v5982_v56  ;;  %3365 = vmatmul.f32.gmra.mxu3 %v2900_v51  ;;  %v5984_v8 = vpop.f32.mrf.mxu1 }
 0x33d   : > { %7291 = vst [vmem:[#allocation205_spill] sm:$0xff] %v5984_v8  ;;  %v2910_v8 = vld [vmem:[#allocation2 + $0x178] sm:$0xff] }
 0x33f   : > { %v2240_v34 = vpop.f32.mrf.mxu3  ;;  %2519 = vmatmul.f32.gmra.mxu1 %v2901_v50  ;;  %v2455_v37 = vpop.f32.mrf.mxu0  ;;  %v2906_v50 = vld [vmem:[#allocation2 + $0x158] sm:$0xff] }
 0x340   : > { %v5986_v48 = vadd.f32 %v2449_v24, %v2240_v34  ;;  %3162 = vmatmul.f32.gmra.mxu2 %v2905_v17  ;;  %v2911_v17 = vld [vmem:[#allocation2 + $0x180] sm:$0xff] }
 0x342   : > { %7292 = vst [vmem:[#allocation206_spill] sm:$0xff] %v5986_v48  ;;  %3580 = vmatmul.f32.gmra.mxu0 %v2907_v46 }
 0x343   : > { %v5988_v45 = vpop.f32.mrf.mxu2 }
 0x344   : > { %7293 = vst [vmem:[#allocation207_spill] sm:$0xff] %v5988_v45  ;;  %3368 = vmatmul.f32.gmra.mxu3 %v2903_v43  ;;  %v5990_v40 = vpop.f32.mrf.mxu1 }
 0x345   : > { %7294 = vst [vmem:[#allocation208_spill] sm:$0xff] %v5990_v40  ;;  %v2913_v40 = vld [vmem:[#allocation2 + $0x190] sm:$0xff] }
 0x347   : > { %v2243_v56 = vpop.f32.mrf.mxu3  ;;  %2522 = vmatmul.f32.gmra.mxu1 %v2904_v63  ;;  %v2458_v51 = vpop.f32.mrf.mxu0  ;;  %v2909_v63 = vld [vmem:[#allocation2 + $0x170] sm:$0xff] }
 0x348   : > { %v5992_v21 = vadd.f32 %v2452_v57, %v2243_v56  ;;  %3165 = vmatmul.f32.gmra.mxu2 %v2908_v44  ;;  %v2914_v44 = vld [vmem:[#allocation2 + $0x198] sm:$0xff] }
 0x34a   : > { %7295 = vst [vmem:[#allocation209_spill] sm:$0xff] %v5992_v21  ;;  %3583 = vmatmul.f32.gmra.mxu0 %v2910_v8 }
 0x34b   : > { %v5994_v24 = vpop.f32.mrf.mxu2 }
 0x34c   : > { %7296 = vst [vmem:[#allocation210_spill] sm:$0xff] %v5994_v24  ;;  %3371 = vmatmul.f32.gmra.mxu3 %v2906_v50  ;;  %v5996_v34 = vpop.f32.mrf.mxu1 }
 0x34d   : > { %7297 = vst [vmem:[#allocation211_spill] sm:$0xff] %v5996_v34  ;;  %v2916_v34 = vld [vmem:[#allocation2 + $0x1a8] sm:$0xff] }
 0x34f   : > { %v2246_v45 = vpop.f32.mrf.mxu3  ;;  %2525 = vmatmul.f32.gmra.mxu1 %v2907_v46  ;;  %v2461_v43 = vpop.f32.mrf.mxu0  ;;  %v2912_v46 = vld [vmem:[#allocation2 + $0x188] sm:$0xff] }
 0x350   : > { %v5998_v48 = vadd.f32 %v2455_v37, %v2246_v45  ;;  %3168 = vmatmul.f32.gmra.mxu2 %v2911_v17  ;;  %v2917_v17 = vld [vmem:[#allocation2 + $0x1b0] sm:$0xff] }
 0x352   : > { %7298 = vst [vmem:[#allocation212_spill] sm:$0xff] %v5998_v48  ;;  %3586 = vmatmul.f32.gmra.mxu0 %v2913_v40 }
 0x353   : > { %v6000_v57 = vpop.f32.mrf.mxu2 }
 0x354   : > { %7299 = vst [vmem:[#allocation213_spill] sm:$0xff] %v6000_v57  ;;  %3374 = vmatmul.f32.gmra.mxu3 %v2909_v63  ;;  %v6002_v56 = vpop.f32.mrf.mxu1 }
 0x355   : > { %7300 = vst [vmem:[#allocation214_spill] sm:$0xff] %v6002_v56  ;;  %v2919_v56 = vld [vmem:[#allocation2 + $0x1c0] sm:$0xff] }
 0x357   : > { %v2249_v24 = vpop.f32.mrf.mxu3  ;;  %2528 = vmatmul.f32.gmra.mxu1 %v2910_v8  ;;  %v2464_v50 = vpop.f32.mrf.mxu0  ;;  %v2915_v8 = vld [vmem:[#allocation2 + $0x1a0] sm:$0xff] }
 0x358   : > { %v6004_v21 = vadd.f32 %v2458_v51, %v2249_v24  ;;  %3171 = vmatmul.f32.gmra.mxu2 %v2914_v44  ;;  %v2920_v44 = vld [vmem:[#allocation2 + $0x1c8] sm:$0xff] }
 0x35a   : > { %7301 = vst [vmem:[#allocation215_spill] sm:$0xff] %v6004_v21  ;;  %3589 = vmatmul.f32.gmra.mxu0 %v2916_v34 }
 0x35b   : > { %v6006_v37 = vpop.f32.mrf.mxu2 }
 0x35c   : > { %7302 = vst [vmem:[#allocation216_spill] sm:$0xff] %v6006_v37  ;;  %3377 = vmatmul.f32.gmra.mxu3 %v2912_v46  ;;  %v6008_v45 = vpop.f32.mrf.mxu1 }
 0x35d   : > { %7303 = vst [vmem:[#allocation217_spill] sm:$0xff] %v6008_v45  ;;  %v2922_v45 = vld [vmem:[#allocation2 + $0x1d8] sm:$0xff] }
 0x35f   : > { %v2252_v57 = vpop.f32.mrf.mxu3  ;;  %2531 = vmatmul.f32.gmra.mxu1 %v2913_v40  ;;  %v2467_v63 = vpop.f32.mrf.mxu0  ;;  %v2918_v40 = vld [vmem:[#allocation2 + $0x1b8] sm:$0xff] }
 0x360   : > { %v6010_v48 = vadd.f32 %v2461_v43, %v2252_v57  ;;  %3174 = vmatmul.f32.gmra.mxu2 %v2917_v17  ;;  %v1350_v43 = vadd.f32 %v5500_v19, %v5317_v49  ;;  %v1353_v49 = vadd.f32 %v5507_v1, %v5329_v54  ;;  %v1356_v54 = vadd.f32 %v5516_v59, %v5344_v4 }
 0x361   : > { %v1359_v4 = vadd.f32 %v5523_v61, %v5354_v42  ;;  %v1362_v42 = vadd.f32 %v5532_v30, %v5367_v22  ;;  %v1365_v22 = vadd.f32 %v5539_v18, %v5377_v26  ;;  %v1368_v26 = vadd.f32 %v5548_v58, %v5390_v38 }
 0x362   : > { %7304 = vst [vmem:[#allocation218_spill] sm:$0xff] %v6010_v48  ;;  %3592 = vmatmul.f32.gmra.mxu0 %v2919_v56  ;;  %v1371_v38 = vadd.f32 %v5555_v52, %v5400_v36  ;;  %v1374_v36 = vadd.f32 %v5567_v33, %v5413_v0  ;;  %v1377_v0 = vadd.f32 %v5577_v11, %v5423_v14 }
 0x363   : > { %v6012_v51 = vpop.f32.mrf.mxu2  ;;  %v1380_v14 = vadd.f32 %v5590_v9, %v5436_v32  ;;  %v2951_v9 = vld [vmem:[#allocation2 + $0x2c0] sm:$0xff] }
 0x364   : > { %7305 = vst [vmem:[#allocation219_spill] sm:$0xff] %v6012_v51  ;;  %3380 = vmatmul.f32.gmra.mxu3 %v2915_v8  ;;  %v6014_v24 = vpop.f32.mrf.mxu1  ;;  %v1559_v8 = vadd.f32 %v5505_v13, %v1350_v43  ;;  %v2923_v51 = vld [vmem:[#allocation2 + $0x1e0] sm:$0xff]  ;;  %v1562_v13 = vadd.f32 %v5513_v39, %v1353_v49  ;;  %v2926_v43 = vld [vmem:[#allocation2 + $0x1f8] sm:$0xff]  ;;  %v1565_v39 = vadd.f32 %v5521_v12, %v1356_v54 }
 0x365   : > { %7306 = vst [vmem:[#allocation220_spill] sm:$0xff] %v6014_v24 }
 0x367   : > { %v2255_v37 = vpop.f32.mrf.mxu3  ;;  %2534 = vmatmul.f32.gmra.mxu1 %v2916_v34  ;;  %v2470_v46 = vpop.f32.mrf.mxu0 }
 0x368   : > { %v6016_v21 = vadd.f32 %v2464_v50, %v2255_v37  ;;  %3177 = vmatmul.f32.gmra.mxu2 %v2920_v44  ;;  %v2925_v37 = vld [vmem:[#allocation2 + $0x1f0] sm:$0xff] }
 0x36a   : > { %7307 = vst [vmem:[#allocation221_spill] sm:$0xff] %v6016_v21  ;;  %3595 = vmatmul.f32.gmra.mxu0 %v2922_v45  ;;  %v2921_v21 = vld [vmem:[#allocation2 + $0x1d0] sm:$0xff] }
 0x36b   : > { %v6020_v57 = vpop.f32.mrf.mxu2 }
 0x36c   : > { %7308 = vst [vmem:[#allocation222_spill] sm:$0xff] %v6020_v57  ;;  %3383 = vmatmul.f32.gmra.mxu3 %v2918_v40  ;;  %v2490_v17 = vpop.f32.mrf.mxu1 }
 0x36d   : > { %v2491_v24 = vadd.f32 %v2490_v17, %v5518_v29 }
 0x36f   : > { %v2258_v34 = vpop.f32.mrf.mxu3  ;;  %v2746_v48 = vadd.f32 %v2491_v24, %v1559_v8  ;;  %2537 = vmatmul.f32.gmra.mxu1 %v2919_v56  ;;  %v3551_v50 = vpop.f32.mrf.mxu0 }
 0x370   : > { %v6024_v44 = vadd.f32 %v2467_v63, %v2258_v34  ;;  %3180 = vmatmul.f32.gmra.mxu2 %v2923_v51  ;;  %v2928_v63 = vld [vmem:[#allocation2 + $0x208] sm:$0xff]  ;;  %v2929_v34 = vld [vmem:[#allocation2 + $0x210] sm:$0xff] }
 0x371   : > { %v2924_v51 = vld [vmem:[#allocation2 + $0x1e8] sm:$0xff] }
 0x372   : > { %7309 = vst [vmem:[#allocation223_spill] sm:$0xff] %v6024_v44  ;;  %3598 = vmatmul.f32.gmra.mxu0 %v2925_v37 }
 0x373   : > { %v3133_v19 = vpop.f32.mrf.mxu2 }
 0x374   : > { %3386 = vmatmul.f32.gmra.mxu3 %v2921_v21  ;;  %v2493_v40 = vpop.f32.mrf.mxu1 }
 0x375   : > { %v2494_v29 = vadd.f32 %v2493_v40, %v5525_v55 }
 0x377   : > { %v2261_v24 = vpop.f32.mrf.mxu3  ;;  %v2747_v56 = vadd.f32 %v2494_v29, %v1562_v13  ;;  %2540 = vmatmul.f32.gmra.mxu1 %v2922_v45  ;;  %v3554_v17 = vpop.f32.mrf.mxu0  ;;  %v2927_v29 = vld [vmem:[#allocation2 + $0x200] sm:$0xff] }
 0x378   : > { %v6030_v8 = vadd.f32 %v2470_v46, %v2261_v24  ;;  %3183 = vmatmul.f32.gmra.mxu2 %v2926_v43  ;;  %v2931_v46 = vld [vmem:[#allocation2 + $0x220] sm:$0xff] }
 0x37a   : > { %7310 = vst [vmem:[#allocation224_spill] sm:$0xff] %v6030_v8  ;;  %3601 = vmatmul.f32.gmra.mxu0 %v2928_v63 }
 0x37b   : > { %v3136_v1 = vpop.f32.mrf.mxu2 }
 0x37c   : > { %3389 = vmatmul.f32.gmra.mxu3 %v2924_v51  ;;  %v2496_v21 = vpop.f32.mrf.mxu1 }
 0x37d   : > { %v2497_v55 = vadd.f32 %v2496_v21, %v5534_v25  ;;  %v1568_v25 = vadd.f32 %v5529_v5, %v1359_v4  ;;  %v2933_v4 = vld [vmem:[#allocation2 + $0x230] sm:$0xff] }
 0x37f   : > { %v3342_v49 = vpop.f32.mrf.mxu3  ;;  %v2748_v45 = vadd.f32 %v2497_v55, %v1565_v39  ;;  %2543 = vmatmul.f32.gmra.mxu1 %v2925_v37  ;;  %v3557_v40 = vpop.f32.mrf.mxu0  ;;  %v2932_v37 = vld [vmem:[#allocation2 + $0x228] sm:$0xff]  ;;  %v2934_v39 = vld [vmem:[#allocation2 + $0x238] sm:$0xff] }
 0x380   : > { %v3343_v13 = vadd.f32 %v3342_v49, %v3133_v19  ;;  %3186 = vmatmul.f32.gmra.mxu2 %v2929_v34  ;;  %v2930_v55 = vld [vmem:[#allocation2 + $0x218] sm:$0xff] }
 0x382   : > { %v3552_v43 = vadd.f32 %v3551_v50, %v3343_v13  ;;  %3604 = vmatmul.f32.gmra.mxu0 %v2931_v46 }
 0x383   : > { %v3139_v59 = vpop.f32.mrf.mxu2 }
 0x384   : > { %v6038_v24 = vadd.f32 %v3552_v43, %v2746_v48  ;;  %3392 = vmatmul.f32.gmra.mxu3 %v2927_v29  ;;  %v2499_v12 = vpop.f32.mrf.mxu1  ;;  %v2937_v43 = vld [vmem:[#allocation2 + $0x250] sm:$0xff] }
 0x385   : > { %v2500_v51 = vadd.f32 %v2499_v12, %v5541_v20  ;;  %v1571_v20 = vadd.f32 %v5537_v23, %v1362_v42 }
 0x387   : > { %v3345_v54 = vpop.f32.mrf.mxu3  ;;  %v2749_v21 = vadd.f32 %v2500_v51, %v1568_v25  ;;  %2546 = vmatmul.f32.gmra.mxu1 %v2928_v63  ;;  %v3560_v19 = vpop.f32.mrf.mxu0  ;;  %v2935_v63 = vld [vmem:[#allocation2 + $0x240] sm:$0xff] }
 0x388   : > { %v3346_v50 = vadd.f32 %v3345_v54, %v3136_v1  ;;  %3189 = vmatmul.f32.gmra.mxu2 %v2932_v37  ;;  %v2940_v54 = vld [vmem:[#allocation2 + $0x268] sm:$0xff] }
 0x38a   : > { %v3555_v34 = vadd.f32 %v3554_v17, %v3346_v50  ;;  %3607 = vmatmul.f32.gmra.mxu0 %v2934_v39  ;;  %v2936_v50 = vld [vmem:[#allocation2 + $0x248] sm:$0xff] }
 0x38b   : > { %v3142_v61 = vpop.f32.mrf.mxu2 }
 0x38c   : > { %v6044_v48 = vadd.f32 %v3555_v34, %v2747_v56  ;;  %3395 = vmatmul.f32.gmra.mxu3 %v2930_v55  ;;  %v2502_v5 = vpop.f32.mrf.mxu1 }
 0x38d   : > { %v2503_v49 = vadd.f32 %v2502_v5, %v5550_v35  ;;  %v1574_v35 = vadd.f32 %v5545_v60, %v1365_v22  ;;  %v2946_v22 = vld [vmem:[#allocation2 + $0x298] sm:$0xff] }
 0x38f   : > { %v3348_v13 = vpop.f32.mrf.mxu3  ;;  %v2750_v29 = vadd.f32 %v2503_v49, %v1571_v20  ;;  %2549 = vmatmul.f32.gmra.mxu1 %v2931_v46  ;;  %v3563_v1 = vpop.f32.mrf.mxu0  ;;  %v2938_v46 = vld [vmem:[#allocation2 + $0x258] sm:$0xff]  ;;  %v2943_v20 = vld [vmem:[#allocation2 + $0x280] sm:$0xff] }
 0x390   : > { %v3349_v17 = vadd.f32 %v3348_v13, %v3139_v59  ;;  %3192 = vmatmul.f32.gmra.mxu2 %v2935_v63  ;;  %v2939_v49 = vld [vmem:[#allocation2 + $0x260] sm:$0xff] }
 0x392   : > { %v3558_v12 = vadd.f32 %v3557_v40, %v3349_v17  ;;  %3610 = vmatmul.f32.gmra.mxu0 %v2937_v43 }
 0x393   : > { %v3145_v30 = vpop.f32.mrf.mxu2 }
 0x394   : > { %v6050_v56 = vadd.f32 %v3558_v12, %v2748_v45  ;;  %3398 = vmatmul.f32.gmra.mxu3 %v2933_v4  ;;  %v2505_v23 = vpop.f32.mrf.mxu1 }
 0x395   : > { %v2506_v25 = vadd.f32 %v2505_v23, %v5557_v15  ;;  %v1577_v15 = vadd.f32 %v5553_v7, %v1368_v26 }
 0x397   : > { %v3351_v51 = vpop.f32.mrf.mxu3  ;;  %v2751_v37 = vadd.f32 %v2506_v25, %v1574_v35  ;;  %2552 = vmatmul.f32.gmra.mxu1 %v2934_v39  ;;  %v3566_v59 = vpop.f32.mrf.mxu0  ;;  %v2941_v39 = vld [vmem:[#allocation2 + $0x270] sm:$0xff]  ;;  %v2947_v25 = vld [vmem:[#allocation2 + $0x2a0] sm:$0xff] }
 0x398   : > { %v3352_v40 = vadd.f32 %v3351_v51, %v3142_v61  ;;  %3195 = vmatmul.f32.gmra.mxu2 %v2938_v46 }
 0x39a   : > { %v3561_v55 = vadd.f32 %v3560_v19, %v3352_v40  ;;  %3613 = vmatmul.f32.gmra.mxu0 %v2940_v54  ;;  %v2949_v40 = vld [vmem:[#allocation2 + $0x2b0] sm:$0xff] }
 0x39b   : > { %v3148_v18 = vpop.f32.mrf.mxu2 }
 0x39c   : > { %v6056_v45 = vadd.f32 %v3561_v55, %v2749_v21  ;;  %3401 = vmatmul.f32.gmra.mxu3 %v2936_v50  ;;  %v2508_v60 = vpop.f32.mrf.mxu1  ;;  %v2945_v50 = vld [vmem:[#allocation2 + $0x290] sm:$0xff] }
 0x39d   : > { %v2509_v34 = vadd.f32 %v2508_v60, %v5569_v31  ;;  %v1580_v31 = vadd.f32 %v5564_v2, %v1371_v38 }
 0x39f   : > { %v3354_v42 = vpop.f32.mrf.mxu3  ;;  %v2752_v5 = vadd.f32 %v2509_v34, %v1577_v15  ;;  %2555 = vmatmul.f32.gmra.mxu1 %v2937_v43  ;;  %v3569_v61 = vpop.f32.mrf.mxu0  ;;  %v2944_v43 = vld [vmem:[#allocation2 + $0x288] sm:$0xff] }
 0x3a0   : > { %v3355_v19 = vadd.f32 %v3354_v42, %v3145_v30  ;;  %3198 = vmatmul.f32.gmra.mxu2 %v2941_v39  ;;  %v2942_v30 = vld [vmem:[#allocation2 + $0x278] sm:$0xff]  ;;  %v2952_v39 = vld [vmem:[#allocation2 + $0x2c8] sm:$0xff] }
 0x3a2   : > { %v3564_v63 = vadd.f32 %v3563_v1, %v3355_v19  ;;  %3616 = vmatmul.f32.gmra.mxu0 %v2943_v20 }
 0x3a3   : > { %v3151_v58 = vpop.f32.mrf.mxu2 }
 0x3a4   : > { %v6062_v21 = vadd.f32 %v3564_v63, %v2750_v29  ;;  %3404 = vmatmul.f32.gmra.mxu3 %v2939_v49  ;;  %v2511_v7 = vpop.f32.mrf.mxu1  ;;  %v2953_v63 = vld [vmem:[#allocation2 + $0x2d0] sm:$0xff] }
 0x3a5   : > { %v2512_v13 = vadd.f32 %v2511_v7, %v5579_v16  ;;  %v1583_v16 = vadd.f32 %v5575_v3, %v1374_v36 }
 0x3a7   : > { %v3357_v17 = vpop.f32.mrf.mxu3  ;;  %v2753_v4 = vadd.f32 %v2512_v13, %v1580_v31  ;;  %2558 = vmatmul.f32.gmra.mxu1 %v2940_v54  ;;  %v3572_v12 = vpop.f32.mrf.mxu0  ;;  %v2955_v31 = vld [vmem:[#allocation2 + $0x2e0] sm:$0xff] }
 0x3a8   : > { %v3358_v1 = vadd.f32 %v3357_v17, %v3148_v18  ;;  %3201 = vmatmul.f32.gmra.mxu2 %v2944_v43  ;;  %v2950_v18 = vld [vmem:[#allocation2 + $0x2b8] sm:$0xff]  ;;  %v7312_v43 = vld [vmem:[#allocation46_spill] sm:$0xff]  ;;  %v7313_v17 = vld [vmem:[#allocation67_spill] sm:$0xff] }
 0x3aa   : > { %v3567_v23 = vadd.f32 %v3566_v59, %v3358_v1  ;;  %3619 = vmatmul.f32.gmra.mxu0 %v2946_v22 }
 0x3ab   : > { %v3154_v52 = vpop.f32.mrf.mxu2 }
 0x3ac   : > { %v6068_v29 = vadd.f32 %v3567_v23, %v2751_v37  ;;  %3407 = vmatmul.f32.gmra.mxu3 %v2942_v30  ;;  %v2514_v2 = vpop.f32.mrf.mxu1  ;;  %v786_v30 = vld [vmem:[%s4994_s14 + $0xf9] sm:$0x7f] }
 0x3ad   : > { %v2515_v35 = vadd.f32 %v2514_v2, %v5592_v6  ;;  %v1586_v6 = vadd.f32 %v5587_v10, %v1377_v0  ;;  %v7314_v23 = vld [vmem:[#allocation68_spill] sm:$0xff]  ;;  %850 = vst [vmem:[#allocation2 + $0x328] sm:$0x7f] %v786_v30  ;;  %v2960_v30 = vld [vmem:[#allocation2 + $0x308] sm:$0xff] }
 0x3af   : > { %v3360_v46 = vpop.f32.mrf.mxu3  ;;  %v2754_v51 = vadd.f32 %v2515_v35, %v1583_v16  ;;  %2561 = vmatmul.f32.gmra.mxu1 %v2943_v20  ;;  %v3575_v54 = vpop.f32.mrf.mxu0  ;;  %v2956_v16 = vld [vmem:[#allocation2 + $0x2e8] sm:$0xff] }
 0x3b0   : > { %v3361_v59 = vadd.f32 %v3360_v46, %v3151_v58  ;;  %3204 = vmatmul.f32.gmra.mxu2 %v2947_v25 }
 0x3b2   : > { %v3570_v55 = vadd.f32 %v3569_v61, %v3361_v59  ;;  %3622 = vmatmul.f32.gmra.mxu0 %v2949_v40  ;;  %v2948_v61 = vld [vmem:[#allocation2 + $0x2a8] sm:$0xff]  ;;  %v2954_v59 = vld [vmem:[#allocation2 + $0x2d8] sm:$0xff] }
 0x3b3   : > { %v3157_v33 = vpop.f32.mrf.mxu2 }
 0x3b4   : > { %v6074_v37 = vadd.f32 %v3570_v55, %v2752_v5  ;;  %3410 = vmatmul.f32.gmra.mxu3 %v2945_v50  ;;  %v2517_v3 = vpop.f32.mrf.mxu1  ;;  %v7317_v55 = vld [vmem:[#allocation69_spill] sm:$0xff] }
 0x3b5   : > { %v2518_v26 = vadd.f32 %v2517_v3, %v5609_v28  ;;  %v7311_v28 = vld [vmem:[#allocation66_spill] sm:$0xff] }
 0x3b6   : > { %v1589_v19 = vadd.f32 %v7311_v28, %v1380_v14  ;;  %v7320_v28 = vld [vmem:[#allocation54_spill] sm:$0xff] }
 0x3b7   : > { %v3363_v60 = vpop.f32.mrf.mxu3  ;;  %v2755_v15 = vadd.f32 %v2518_v26, %v1586_v6  ;;  %2564 = vmatmul.f32.gmra.mxu1 %v2946_v22  ;;  %v3578_v34 = vpop.f32.mrf.mxu0  ;;  %v6087_v22 = vld [vmem:[%s4994_s14 + $0xf1] sm:$0xff]  ;;  %v7318_v26 = vld [vmem:[#allocation70_spill] sm:$0xff] }
 0x3b8   : > { %v3364_v42 = vadd.f32 %v3363_v60, %v3154_v52  ;;  %3207 = vmatmul.f32.gmra.mxu2 %v2950_v18  ;;  %v7315_v52 = vld [vmem:[#allocation72_spill] sm:$0xff]  ;;  %v7319_v60 = vld [vmem:[#allocation75_spill] sm:$0xff] }
 0x3ba   : > { %v3573_v20 = vadd.f32 %v3572_v12, %v3364_v42  ;;  %3625 = vmatmul.f32.gmra.mxu0 %v2952_v39 }
 0x3bb   : > { %v3160_v11 = vpop.f32.mrf.mxu2 }
 0x3bc   : > { %v6080_v5 = vadd.f32 %v3573_v20, %v2753_v4  ;;  %3413 = vmatmul.f32.gmra.mxu3 %v2948_v61  ;;  %v2520_v10 = vpop.f32.mrf.mxu1  ;;  %v1383_v4 = vadd.f32 %v7313_v17, %v7312_v43 }
 0x3bd   : > { %v2521_v49 = vadd.f32 %v2520_v10, %v5620_v47 }
 0x3be   : > { %v1592_v36 = vadd.f32 %v7314_v23, %v1383_v4 }
 0x3bf   : > { %v3366_v38 = vpop.f32.mrf.mxu3  ;;  %v2756_v58 = vadd.f32 %v2521_v49, %v1589_v19  ;;  %2567 = vmatmul.f32.gmra.mxu1 %v2949_v40  ;;  %v3581_v7 = vpop.f32.mrf.mxu0 }
 0x3c0   : > { %v3367_v13 = vadd.f32 %v3366_v38, %v3157_v33  ;;  %3210 = vmatmul.f32.gmra.mxu2 %v2953_v63 }
 0x3c2   : > { %v3576_v32 = vadd.f32 %v3575_v54, %v3367_v13  ;;  %3628 = vmatmul.f32.gmra.mxu0 %v2955_v31  ;;  %v2958_v54 = vld [vmem:[#allocation2 + $0x2f8] sm:$0xff]  ;;  %v7322_v13 = vld [vmem:[#allocation73_spill] sm:$0xff] }
 0x3c3   : > { %v3163_v12 = vpop.f32.mrf.mxu2 }
 0x3c4   : > { %v6089_v1 = vadd.f32 %v3576_v32, %v2754_v51  ;;  %3416 = vmatmul.f32.gmra.mxu3 %v2951_v9  ;;  %v2523_v47 = vpop.f32.mrf.mxu1  ;;  %v7316_v51 = vld [vmem:[#allocation50_spill] sm:$0xff] }
 0x3c5   : > { %v2524_v2 = vadd.f32 %v2523_v47, %v7315_v52  ;;  %v1386_v0 = vadd.f32 %v7317_v55, %v7316_v51  ;;  %v7323_v32 = vld [vmem:[#allocation78_spill] sm:$0xff] }
 0x3c7   : > { %v3369_v35 = vpop.f32.mrf.mxu3  ;;  %v2757_v25 = vadd.f32 %v2524_v2, %v1592_v36  ;;  %2570 = vmatmul.f32.gmra.mxu1 %v2952_v39  ;;  %v3584_v46 = vpop.f32.mrf.mxu0  ;;  %v1595_v18 = vadd.f32 %v7318_v26, %v1386_v0  ;;  %v2959_v39 = vld [vmem:[#allocation2 + $0x300] sm:$0xff]  ;;  %v7324_v36 = vld [vmem:[#allocation58_spill] sm:$0xff] }
 0x3c8   : > { %v3370_v40 = vadd.f32 %v3369_v35, %v3160_v11  ;;  %3213 = vmatmul.f32.gmra.mxu2 %v2956_v16 }
 0x3ca   : > { %v3579_v50 = vadd.f32 %v3578_v34, %v3370_v40  ;;  %3631 = vmatmul.f32.gmra.mxu0 %v2958_v54  ;;  %v2957_v34 = vld [vmem:[#allocation2 + $0x2f0] sm:$0xff]  ;;  %v7326_v40 = vld [vmem:[#allocation76_spill] sm:$0xff] }
 0x3cb   : > { %v3166_v33 = vpop.f32.mrf.mxu2 }
 0x3cc   : > { %v6096_v3 = vadd.f32 %v3579_v50, %v2755_v15  ;;  %3419 = vmatmul.f32.gmra.mxu3 %v2954_v59  ;;  %v2526_v6 = vpop.f32.mrf.mxu1  ;;  %v7321_v15 = vld [vmem:[#allocation71_spill] sm:$0xff]  ;;  %v7327_v50 = vld [vmem:[#allocation81_spill] sm:$0xff] }
 0x3cd   : > { %v2527_v42 = vadd.f32 %v2526_v6, %v7319_v60  ;;  %v1389_v19 = vadd.f32 %v7321_v15, %v7320_v28  ;;  %v2963_v6 = vld [vmem:[#allocation2 + $0x320] sm:$0xff] }
 0x3cf   : > { %v3372_v61 = vpop.f32.mrf.mxu3  ;;  %v2758_v20 = vadd.f32 %v2527_v42, %v1595_v18  ;;  %2573 = vmatmul.f32.gmra.mxu1 %v2955_v31  ;;  %v3587_v14 = vpop.f32.mrf.mxu0  ;;  %v1598_v9 = vadd.f32 %v7322_v13, %v1389_v19  ;;  %v2962_v31 = vld [vmem:[#allocation2 + $0x318] sm:$0xff]  ;;  %v7328_v18 = vld [vmem:[#allocation62_spill] sm:$0xff] }
 0x3d0   : > { %v3373_v11 = vadd.f32 %v3372_v61, %v3163_v12  ;;  %3216 = vmatmul.f32.gmra.mxu2 %v2959_v39  ;;  %v7333_v13 = vld [vmem:[#allocation80_spill] sm:$0xff] }
 0x3d2   : > { %v3582_v10 = vadd.f32 %v3581_v7, %v3373_v11  ;;  %3634 = vmatmul.f32.gmra.mxu0 %v6087_v22  ;;  %v2964_v7 = vld [vmem:[#allocation2 + $0x328] sm:$0xff]  ;;  %v7330_v11 = vld [vmem:[#allocation79_spill] sm:$0xff] }
 0x3d3   : > { %v3169_v49 = vpop.f32.mrf.mxu2 }
 0x3d4   : > { %v6103_v63 = vadd.f32 %v3582_v10, %v2756_v58  ;;  %3422 = vmatmul.f32.gmra.mxu3 %v2957_v34  ;;  %v2529_v38 = vpop.f32.mrf.mxu1  ;;  %v7325_v58 = vld [vmem:[#allocation74_spill] sm:$0xff]  ;;  %v7331_v10 = vld [vmem:[#allocation84_spill] sm:$0xff] }
 0x3d5   : > { %v2530_v43 = vadd.f32 %v2529_v38, %v7323_v32  ;;  %v1392_v52 = vadd.f32 %v7325_v58, %v7324_v36  ;;  %v7332_v38 = vld [vmem:[#allocation13_spill] sm:$0xff] }
 0x3d6   : > { %v2971_v36 = vld [vmem:[#allocation2 + $0x3c0] sm:$0xff] }
 0x3d7   : > { %v3375_v17 = vpop.f32.mrf.mxu3  ;;  %v2759_v4 = vadd.f32 %v2530_v43, %v1598_v9  ;;  %2576 = vmatmul.f32.gmra.mxu1 %v2958_v54  ;;  %v3590_v12 = vpop.f32.mrf.mxu0  ;;  %v1601_v59 = vadd.f32 %v7326_v40, %v1392_v52  ;;  %v1398_v9 = vadd.f32 %v7333_v13, %v7332_v38  ;;  %v7336_v40 = vld [vmem:[#allocation15_spill] sm:$0xff]  ;;  %v7342_v13 = vld [vmem:[#allocation88_spill] sm:$0xff] }
 0x3d8   : > { %v3376_v47 = vadd.f32 %v3375_v17, %v3166_v33  ;;  %3219 = vmatmul.f32.gmra.mxu2 %v2962_v31  ;;  %v1912_v31 = vld [vmem:[#allocation2 + $0x3a0] sm:$0xff]  ;;  %v7334_v17 = vld [vmem:[#allocation82_spill] sm:$0xff] }
 0x3da   : > { %v3585_v23 = vadd.f32 %v3584_v46, %v3376_v47  ;;  %3637 = vmatmul.f32.gmra.mxu0 %v2964_v7  ;;  %v4734_v46 = vld [vmem:[#allocation2] sm:$0xff]  ;;  %v1607_v47 = vadd.f32 %v7334_v17, %v1398_v9  ;;  %v2977_v17 = vld [vmem:[#allocation2 + $0x3f0] sm:$0xff] }
 0x3db   : > { %v3172_v2 = vpop.f32.mrf.mxu2 }
 0x3dc   : > { %v6109_v16 = vadd.f32 %v3585_v23, %v2757_v25  ;;  %3425 = vmatmul.f32.gmra.mxu3 %v2960_v30  ;;  %v2532_v35 = vpop.f32.mrf.mxu1  ;;  %v7329_v25 = vld [vmem:[#allocation77_spill] sm:$0xff]  ;;  %v7335_v30 = vld [vmem:[#allocation87_spill] sm:$0xff] }
 0x3dd   : > { %v2533_v51 = vadd.f32 %v2532_v35, %v7327_v50  ;;  %v1395_v60 = vadd.f32 %v7329_v25, %v7328_v18  ;;  %v7339_v18 = vld [vmem:[#allocation90_spill] sm:$0xff] }
 0x3df   : > { %v3378_v54 = vpop.f32.mrf.mxu3  ;;  %v2760_v55 = vadd.f32 %v2533_v51, %v1601_v59  ;;  %2579 = vmatmul.f32.gmra.mxu1 %v6087_v22  ;;  %v3593_v0 = vpop.f32.mrf.mxu0  ;;  %v1604_v34 = vadd.f32 %v7330_v11, %v1395_v60  ;;  %v2974_v60 = vld [vmem:[#allocation2 + $0x3d8] sm:$0xff] }
 0x3e0   : > { %v3379_v33 = vadd.f32 %v3378_v54, %v3169_v49  ;;  %3222 = vmatmul.f32.gmra.mxu2 %v4734_v46 }
 0x3e2   : > { %v3588_v26 = vadd.f32 %v3587_v14, %v3379_v33  ;;  %3640 = vmatmul.f32.gmra.mxu0 %v4734_v46  ;;  %v1915_v33 = vld [vmem:[#allocation2 + $0x3b8] sm:$0xff] }
 0x3e3   : > { %v3175_v42 = vpop.f32.mrf.mxu2 }
 0x3e4   : > { %v6116_v39 = vadd.f32 %v3588_v26, %v2758_v20  ;;  %3428 = vmatmul.f32.gmra.mxu3 %v2963_v6  ;;  %v2535_v61 = vpop.f32.mrf.mxu1  ;;  %v7338_v6 = vld [vmem:[#allocation85_spill] sm:$0xff] }
 0x3e5   : > { %v2536_v28 = vadd.f32 %v2535_v61, %v7331_v10  ;;  %v2972_v10 = vld [vmem:[#allocation2 + $0x3c8] sm:$0xff] }
 0x3e7   : > { %v3381_v22 = vpop.f32.mrf.mxu3  ;;  %v2761_v15 = vadd.f32 %v2536_v28, %v1604_v34  ;;  %2582 = vmatmul.f32.gmra.mxu1 %v2964_v7  ;;  %v3596_v19 = vpop.f32.mrf.mxu0 }
 0x3e8   : > { %v3382_v49 = vadd.f32 %v3381_v22, %v3172_v2  ;;  %3225 = vmatmul.f32.gmra.mxu2 %v4734_v46  ;;  %v7341_v22 = vld [vmem:[#allocation86_spill] sm:$0xff] }
 0x3ea   : > { %v3591_v14 = vadd.f32 %v3590_v12, %v3382_v49  ;;  %3643 = vmatmul.f32.gmra.mxu0 %v4734_v46  ;;  %v2973_v12 = vld [vmem:[#allocation2 + $0x3d0] sm:$0xff] }
 0x3eb   : > { %v3178_v32 = vpop.f32.mrf.mxu2 }
 0x3ec   : > { %v6122_v20 = vadd.f32 %v3591_v14, %v2759_v4  ;;  %3431 = vmatmul.f32.gmra.mxu3 %v4734_v46  ;;  %v2538_v43 = vpop.f32.mrf.mxu1  ;;  %v7337_v4 = vld [vmem:[#allocation83_spill] sm:$0xff] }
 0x3ed   : > { %v2539_v23 = vadd.f32 %v2538_v43, %v7335_v30  ;;  %v1401_v59 = vadd.f32 %v7337_v4, %v7336_v40  ;;  %v7343_v43 = vld [vmem:[#allocation93_spill] sm:$0xff] }
 0x3ee   : > { %v4086_v57 = vmul.f32 %v6122_v20, %v6122_v20 }
 0x3ef   : > { %v3384_v7 = vpop.f32.mrf.mxu3  ;;  %v2762_v58 = vadd.f32 %v2539_v23, %v1607_v47  ;;  %2585 = vmatmul.f32.gmra.mxu1 %v1912_v31  ;;  %v3599_v52 = vpop.f32.mrf.mxu0  ;;  %v1610_v26 = vadd.f32 %v7338_v6, %v1401_v59  ;;  %v2979_v23 = vld [vmem:[#allocation2 + $0x400] sm:$0xff]  ;;  %v7347_v6 = vld [vmem:[#allocation96_spill] sm:$0xff] }
 0x3f0   : > { %v3385_v2 = vadd.f32 %v3384_v7, %v3175_v42  ;;  %3228 = vmatmul.f32.gmra.mxu2 %v2971_v36  ;;  %v2975_v36 = vld [vmem:[#allocation2 + $0x3e0] sm:$0xff] }
 0x3f2   : > { %v3594_v35 = vadd.f32 %v3593_v0, %v3385_v2  ;;  %3646 = vmatmul.f32.gmra.mxu0 %v2973_v12  ;;  %v2976_v0 = vld [vmem:[#allocation2 + $0x3e8] sm:$0xff]  ;;  %v7344_v2 = vld [vmem:[#allocation20_spill] sm:$0xff] }
 0x3f3   : > { %v3181_v50 = vpop.f32.mrf.mxu2 }
 0x3f4   : > { %v6128_v51 = vadd.f32 %v3594_v35, %v2760_v55  ;;  %3434 = vmatmul.f32.gmra.mxu3 %v4734_v46  ;;  %v2541_v54 = vpop.f32.mrf.mxu1  ;;  %v7340_v55 = vld [vmem:[#allocation17_spill] sm:$0xff] }
 0x3f5   : > { %v2542_v25 = vadd.f32 %v2541_v54, %v7339_v18  ;;  %v1404_v46 = vadd.f32 %v7341_v22, %v7340_v55  ;;  %v7346_v54 = vld [vmem:[#allocation91_spill] sm:$0xff] }
 0x3f7   : > { %v3387_v61 = vpop.f32.mrf.mxu3  ;;  %v2763_v11 = vadd.f32 %v2542_v25, %v1610_v26  ;;  %2588 = vmatmul.f32.gmra.mxu1 %v1915_v33  ;;  %v3602_v42 = vpop.f32.mrf.mxu0  ;;  %v1613_v9 = vadd.f32 %v7342_v13, %v1404_v46 }
 0x3f8   : > { %v3388_v34 = vadd.f32 %v3387_v61, %v3178_v32  ;;  %3231 = vmatmul.f32.gmra.mxu2 %v2974_v60  ;;  %v2982_v60 = vld [vmem:[#allocation2 + $0x418] sm:$0xff] }
 0x3f9   : > { %v2978_v61 = vld [vmem:[#allocation2 + $0x3f8] sm:$0xff] }
 0x3fa   : > { %v3597_v28 = vadd.f32 %v3596_v19, %v3388_v34  ;;  %3649 = vmatmul.f32.gmra.mxu0 %v2976_v0 }
 0x3fb   : > { %v3184_v49 = vpop.f32.mrf.mxu2 }
 0x3fc   : > { %v6134_v14 = vadd.f32 %v3597_v28, %v2761_v15  ;;  %3437 = vmatmul.f32.gmra.mxu3 %v2972_v10  ;;  %v2544_v38 = vpop.f32.mrf.mxu1  ;;  %v7345_v15 = vld [vmem:[#allocation89_spill] sm:$0xff]  ;;  %v7348_v10 = vld [vmem:[#allocation23_spill] sm:$0xff] }
 0x3fd   : > { %v2545_v31 = vadd.f32 %v2544_v38, %v7343_v43  ;;  %v1407_v35 = vadd.f32 %v7345_v15, %v7344_v2  ;;  %v7350_v38 = vld [vmem:[#allocation94_spill] sm:$0xff] }
 0x3ff   : > { %v3390_v47 = vpop.f32.mrf.mxu3  ;;  %v2764_v30 = vadd.f32 %v2545_v31, %v1613_v9  ;;  %2591 = vmatmul.f32.gmra.mxu1 %v2973_v12  ;;  %v3605_v32 = vpop.f32.mrf.mxu0  ;;  %v1616_v33 = vadd.f32 %v7346_v54, %v1407_v35  ;;  %v2980_v12 = vld [vmem:[#allocation2 + $0x408] sm:$0xff]  ;;  %v7351_v9 = vld [vmem:[#allocation99_spill] sm:$0xff]  ;;  %v7354_v54 = vld [vmem:[#allocation97_spill] sm:$0xff] }
 0x400   : > { %v3391_v19 = vadd.f32 %v3390_v47, %v3181_v50  ;;  %3234 = vmatmul.f32.gmra.mxu2 %v2977_v17  ;;  %v2985_v47 = vld [vmem:[#allocation2 + $0x430] sm:$0xff] }
 0x402   : > { %v3600_v7 = vadd.f32 %v3599_v52, %v3391_v19  ;;  %3652 = vmatmul.f32.gmra.mxu0 %v2979_v23  ;;  %v2981_v19 = vld [vmem:[#allocation2 + $0x410] sm:$0xff] }
 0x403   : > { %v3187_v40 = vpop.f32.mrf.mxu2 }
 0x404   : > { %v6140_v4 = vadd.f32 %v3600_v7, %v2762_v58  ;;  %3440 = vmatmul.f32.gmra.mxu3 %v2975_v36  ;;  %v2547_v59 = vpop.f32.mrf.mxu1  ;;  %v7349_v58 = vld [vmem:[#allocation92_spill] sm:$0xff]  ;;  %v7352_v7 = vld [vmem:[#allocation26_spill] sm:$0xff] }
 0x405   : > { %v2548_v26 = vadd.f32 %v2547_v59, %v7347_v6  ;;  %v1410_v28 = vadd.f32 %v7349_v58, %v7348_v10  ;;  %v7355_v6 = vld [vmem:[#allocation102_spill] sm:$0xff] }
 0x406   : > { %v7357_v10 = vld [vmem:[#allocation98_spill] sm:$0xff] }
 0x407   : > { %v3393_v18 = vpop.f32.mrf.mxu3  ;;  %v2765_v25 = vadd.f32 %v2548_v26, %v1616_v33  ;;  %2594 = vmatmul.f32.gmra.mxu1 %v2976_v0  ;;  %v3608_v50 = vpop.f32.mrf.mxu0  ;;  %v1619_v13 = vadd.f32 %v7350_v38, %v1410_v28  ;;  %v2983_v0 = vld [vmem:[#allocation2 + $0x420] sm:$0xff] }
 0x408   : > { %v3394_v52 = vadd.f32 %v3393_v18, %v3184_v49  ;;  %3237 = vmatmul.f32.gmra.mxu2 %v2980_v12 }
 0x40a   : > { %v3603_v34 = vadd.f32 %v3602_v42, %v3394_v52  ;;  %3655 = vmatmul.f32.gmra.mxu0 %v2982_v60 }
 0x40b   : > { %v3190_v55 = vpop.f32.mrf.mxu2 }
 0x40c   : > { %v6146_v22 = vadd.f32 %v3603_v34, %v2763_v11  ;;  %3443 = vmatmul.f32.gmra.mxu3 %v2978_v61  ;;  %v2550_v46 = vpop.f32.mrf.mxu1  ;;  %v7353_v11 = vld [vmem:[#allocation95_spill] sm:$0xff]  ;;  %v2984_v61 = vld [vmem:[#allocation2 + $0x428] sm:$0xff] }
 0x40d   : > { %v2551_v43 = vadd.f32 %v2550_v46, %v7351_v9  ;;  %v1413_v2 = vadd.f32 %v7353_v11, %v7352_v7  ;;  %v7361_v11 = vld [vmem:[#allocation101_spill] sm:$0xff] }
 0x40f   : > { %v3396_v31 = vpop.f32.mrf.mxu3  ;;  %v2766_v17 = vadd.f32 %v2551_v43, %v1619_v13  ;;  %2597 = vmatmul.f32.gmra.mxu1 %v2979_v23  ;;  %v3611_v49 = vpop.f32.mrf.mxu0  ;;  %v1622_v33 = vadd.f32 %v7354_v54, %v1413_v2  ;;  %v2986_v23 = vld [vmem:[#allocation2 + $0x438] sm:$0xff] }
 0x410   : > { %v3397_v42 = vadd.f32 %v3396_v31, %v3187_v40  ;;  %3240 = vmatmul.f32.gmra.mxu2 %v2983_v0  ;;  %v7358_v13 = vld [vmem:[#allocation100_spill] sm:$0xff]  ;;  %v2989_v0 = vld [vmem:[#allocation2 + $0x450] sm:$0xff] }
 0x412   : > { %v3606_v36 = vadd.f32 %v3605_v32, %v3397_v42  ;;  %3658 = vmatmul.f32.gmra.mxu0 %v2985_v47  ;;  %v2988_v32 = vld [vmem:[#allocation2 + $0x448] sm:$0xff]  ;;  %v2991_v42 = vld [vmem:[#allocation2 + $0x460] sm:$0xff] }
 0x413   : > { %v3193_v15 = vpop.f32.mrf.mxu2 }
 0x414   : > { %v6152_v35 = vadd.f32 %v3606_v36, %v2764_v30  ;;  %3446 = vmatmul.f32.gmra.mxu3 %v2981_v19  ;;  %v2553_v59 = vpop.f32.mrf.mxu1  ;;  %v7356_v30 = vld [vmem:[#allocation29_spill] sm:$0xff] }
 0x415   : > { %v2554_v26 = vadd.f32 %v2553_v59, %v7355_v6  ;;  %v1416_v58 = vadd.f32 %v7357_v10, %v7356_v30  ;;  %v2987_v36 = vld [vmem:[#allocation2 + $0x440] sm:$0xff]  ;;  %v7362_v6 = vld [vmem:[#allocation103_spill] sm:$0xff]  ;;  %v3999_v30 = vadd.f32 %v6044_v48, %v6038_v24  ;;  %v4075_v10 = vmul.f32 %v6050_v56, %v6050_v56 }
 0x417   : > { %v3399_v12 = vpop.f32.mrf.mxu3  ;;  %v6156_v18 = vadd.f32 %v2554_v26, %v1622_v33  ;;  %2600 = vmatmul.f32.gmra.mxu1 %v2982_v60  ;;  %v6158_v40 = vpop.f32.mrf.mxu0  ;;  %v1625_v9 = vadd.f32 %v7358_v13, %v1416_v58  ;;  %v7359_v60 = vld [vmem:[#allocation105_spill] sm:$0xff]  ;;  %v2990_v58 = vld [vmem:[#allocation2 + $0x458] sm:$0xff] }
 0x418   : > { %v3400_v52 = vadd.f32 %v3399_v12, %v3190_v55  ;;  %3243 = vmatmul.f32.gmra.mxu2 %v2986_v23  ;;  %v2992_v12 = vld [vmem:[#allocation2 + $0x468] sm:$0xff]  ;;  %v7365_v13 = vld [vmem:[#allocation104_spill] sm:$0xff] }
 0x41a   : > { %v3609_v34 = vadd.f32 %v3608_v50, %v3400_v52  ;;  %3661 = vmatmul.f32.gmra.mxu0 %v2988_v32 }
 0x41b   : > { %v6162_v28 = vpop.f32.mrf.mxu2 }
 0x41c   : > { %v6164_v46 = vadd.f32 %v3609_v34, %v2765_v25  ;;  %3449 = vmatmul.f32.gmra.mxu3 %v2984_v61  ;;  %v2556_v38 = vpop.f32.mrf.mxu1  ;;  %v7360_v25 = vld [vmem:[#allocation32_spill] sm:$0xff] }
 0x41d   : > { %v2557_v43 = vadd.f32 %v2556_v38, %v7359_v60  ;;  %v1419_v2 = vadd.f32 %v7361_v11, %v7360_v25  ;;  %v2994_v34 = vld [vmem:[#allocation2 + $0x478] sm:$0xff]  ;;  %v7364_v38 = vld [vmem:[#allocation35_spill] sm:$0xff]  ;;  %v4077_v11 = vmul.f32 %v6062_v21, %v6062_v21 }
 0x41f   : > { %v3402_v31 = vpop.f32.mrf.mxu3  ;;  %v6168_v55 = vadd.f32 %v2557_v43, %v1625_v9  ;;  %2603 = vmatmul.f32.gmra.mxu1 %v2985_v47  ;;  %v6170_v50 = vpop.f32.mrf.mxu0  ;;  %v1628_v26 = vadd.f32 %v7362_v6, %v1419_v2  ;;  %v7363_v47 = vld [vmem:[#allocation108_spill] sm:$0xff]  ;;  %v1422_v9 = vadd.f32 %v7365_v13, %v7364_v38  ;;  %v4076_v43 = vmul.f32 %v6056_v45, %v6056_v45  ;;  %v7367_v2 = vld [vmem:[#allocation111_spill] sm:$0xff]  ;;  %v2995_v6 = vld [vmem:[#allocation2 + $0x480] sm:$0xff] }
 0x420   : > { %v3403_v19 = vadd.f32 %v3402_v31, %v3193_v15  ;;  %3246 = vmatmul.f32.gmra.mxu2 %v2989_v0  ;;  %v4074_v15 = vmul.f32 %v6044_v48, %v6044_v48  ;;  %v7366_v31 = vld [vmem:[#allocation106_spill] sm:$0xff]  ;;  %v2993_v38 = vld [vmem:[#allocation2 + $0x470] sm:$0xff] }
 0x422   : > { %v3612_v7 = vadd.f32 %v3611_v49, %v3403_v19  ;;  %3664 = vmatmul.f32.gmra.mxu0 %v2991_v42  ;;  %v1631_v19 = vadd.f32 %v7366_v31, %v1422_v9  ;;  %v7368_v9 = vld [vmem:[#allocation38_spill] sm:$0xff] }
 0x423   : > { %v6174_v59 = vpop.f32.mrf.mxu2 }
 0x424   : > { %v6176_v54 = vadd.f32 %v3612_v7, %v2766_v17  ;;  %3452 = vmatmul.f32.gmra.mxu3 %v2987_v36  ;;  %v2559_v33 = vpop.f32.mrf.mxu1  ;;  %v4073_v17 = vmul.f32 %v6038_v24, %v6038_v24 }
 0x425   : > { %v2560_v23 = vadd.f32 %v2559_v33, %v7363_v47 }
 0x426   : > { %v4137_v60 = vadd.f32 %v4074_v15, %v4073_v17  ;;  %v2997_v17 = vld [vmem:[#allocation2 + $0x490] sm:$0xff] }
 0x427   : > { %v6182_v52 = vpop.f32.mrf.mxu3  ;;  %v6184_v49 = vadd.f32 %v2560_v23, %v1628_v26  ;;  %2606 = vmatmul.f32.gmra.mxu1 %v2988_v32  ;;  %v6186_v61 = vpop.f32.mrf.mxu0  ;;  %v4000_v32 = vadd.f32 %v3999_v30, %v6050_v56  ;;  %v4078_v23 = vmul.f32 %v6068_v29, %v6068_v29 }
 0x428   : > { %3249 = vmatmul.f32.gmra.mxu2 %v2992_v12  ;;  %v4138_v7 = vadd.f32 %v4137_v60, %v4075_v10  ;;  %v7369_v60 = vld [vmem:[#allocation107_spill] sm:$0xff] }
 0x429   : > { %v4001_v25 = vadd.f32 %v4000_v32, %v6056_v45  ;;  %v1425_v32 = vadd.f32 %v7369_v60, %v7368_v9 }
 0x42a   : > { %3667 = vmatmul.f32.gmra.mxu0 %v2994_v34  ;;  %v4139_v26 = vadd.f32 %v4138_v7, %v4076_v43 }
 0x42b   : > { %v6199_v0 = vpop.f32.mrf.mxu2  ;;  %v4002_v47 = vadd.f32 %v4001_v25, %v6062_v21 }
 0x42c   : > { %3455 = vmatmul.f32.gmra.mxu3 %v2990_v58  ;;  %v2562_v36 = vpop.f32.mrf.mxu1  ;;  %v4140_v30 = vadd.f32 %v4139_v26, %v4077_v11  ;;  %v4079_v58 = vmul.f32 %v6074_v37, %v6074_v37 }
 0x42d   : > { %v2563_v33 = vadd.f32 %v2562_v36, %v7367_v2  ;;  %v4003_v10 = vadd.f32 %v4002_v47, %v6068_v29  ;;  %v7370_v36 = vld [vmem:[#allocation109_spill] sm:$0xff]  ;;  %v2998_v47 = vld [vmem:[#allocation2 + $0x498] sm:$0xff] }
 0x42e   : > { %v4141_v43 = vadd.f32 %v4140_v30, %v4078_v23  ;;  %v1634_v7 = vadd.f32 %v7370_v36, %v1425_v32  ;;  %v7372_v36 = vld [vmem:[#allocation41_spill] sm:$0xff] }
 0x42f   : > { %v6209_v12 = vpop.f32.mrf.mxu3  ;;  %v6211_v15 = vadd.f32 %v2563_v33, %v1631_v19  ;;  %2609 = vmatmul.f32.gmra.mxu1 %v2991_v42  ;;  %v6216_v13 = vpop.f32.mrf.mxu0  ;;  %v4004_v31 = vadd.f32 %v4003_v10, %v6074_v37  ;;  %v4080_v42 = vmul.f32 %v6080_v5, %v6080_v5  ;;  %v4081_v33 = vmul.f32 %v6089_v1, %v6089_v1 }
 0x430   : > { %3252 = vmatmul.f32.gmra.mxu2 %v2995_v6  ;;  %v4142_v11 = vadd.f32 %v4141_v43, %v4079_v58  ;;  %v7371_v6 = vld [vmem:[#allocation114_spill] sm:$0xff]  ;;  %v4082_v10 = vmul.f32 %v6096_v3, %v6096_v3  ;;  %v4083_v43 = vmul.f32 %v6103_v63, %v6103_v63  ;;  %v3409_v27 = vadd.f32 %v6209_v12, %v6174_v59 }
 0x431   : > { %v4005_v2 = vadd.f32 %v4004_v31, %v6080_v5  ;;  %v2996_v31 = vld [vmem:[#allocation2 + $0x488] sm:$0xff]  ;;  %v4091_v12 = vmul.f32 %v6152_v35, %v6152_v35 }
 0x432   : > { %3670 = vmatmul.f32.gmra.mxu0 %v2997_v17  ;;  %v4143_v23 = vadd.f32 %v4142_v11, %v4080_v42  ;;  %v7373_v42 = vld [vmem:[#allocation110_spill] sm:$0xff] }
 0x433   : > { %v6223_v19 = vpop.f32.mrf.mxu2  ;;  %v4006_v30 = vadd.f32 %v4005_v2, %v6089_v1 }
 0x434   : > { %3458 = vmatmul.f32.gmra.mxu3 %v2993_v38  ;;  %v2565_v25 = vpop.f32.mrf.mxu1  ;;  %v3000_v38 = vld [vmem:[#allocation2 + $0x4a8] sm:$0xff]  ;;  %v4144_v58 = vadd.f32 %v4143_v23, %v4081_v33  ;;  %v7374_v33 = vld [vmem:[#allocation112_spill] sm:$0xff] }
 0x435   : > { %v2566_v26 = vadd.f32 %v2565_v25, %v7371_v6  ;;  %v4007_v32 = vadd.f32 %v4006_v30, %v6096_v3  ;;  %v1428_v25 = vadd.f32 %v7373_v42, %v7372_v36  ;;  %v4085_v36 = vmul.f32 %v6116_v39, %v6116_v39 }
 0x436   : > { %v4145_v11 = vadd.f32 %v4144_v58, %v4082_v10  ;;  %v7375_v10 = vld [vmem:[#allocation117_spill] sm:$0xff] }
 0x437   : > { %v3411_v9 = vpop.f32.mrf.mxu3  ;;  %v6233_v60 = vadd.f32 %v2566_v26, %v1634_v7  ;;  %2612 = vmatmul.f32.gmra.mxu1 %v2994_v34  ;;  %v4008_v2 = vadd.f32 %v4007_v32, %v6103_v63  ;;  %v4084_v7 = vmul.f32 %v6109_v16, %v6109_v16  ;;  %v6245_v6 = vpop.f32.mrf.mxu0  ;;  %v1637_v26 = vadd.f32 %v7374_v33, %v1428_v25  ;;  %v3001_v32 = vld [vmem:[#allocation2 + $0x4b0] sm:$0xff]  ;;  %v7376_v33 = vld [vmem:[#allocation44_spill] sm:$0xff] }
 0x438   : > { %3255 = vmatmul.f32.gmra.mxu2 %v2998_v47  ;;  %v4146_v23 = vadd.f32 %v4145_v11, %v4083_v43  ;;  %v4087_v11 = vmul.f32 %v6128_v51, %v6128_v51 }
 0x439   : > { %v4009_v30 = vadd.f32 %v4008_v2, %v6109_v16  ;;  %v2999_v2 = vld [vmem:[#allocation2 + $0x4a0] sm:$0xff] }
 0x43a   : > { %3673 = vmatmul.f32.gmra.mxu0 %v3000_v38  ;;  %v4147_v42 = vadd.f32 %v4146_v23, %v4084_v7  ;;  %v7377_v7 = vld [vmem:[#allocation113_spill] sm:$0xff] }
 0x43b   : > { %v6243_v34 = vpop.f32.mrf.mxu2  ;;  %v4010_v8 = vadd.f32 %v4009_v30, %v6116_v39 }
 0x43c   : > { %3461 = vmatmul.f32.gmra.mxu3 %v2996_v31  ;;  %v2568_v47 = vpop.f32.mrf.mxu1  ;;  %v3003_v31 = vld [vmem:[#allocation2 + $0x4c0] sm:$0xff]  ;;  %v4148_v43 = vadd.f32 %v4147_v42, %v4085_v36 }
 0x43d   : > { %v2569_v58 = vadd.f32 %v2568_v47, %v7375_v10  ;;  %v4011_v25 = vadd.f32 %v4010_v8, %v6122_v20  ;;  %v1431_v47 = vadd.f32 %v7377_v7, %v7376_v33  ;;  %v7378_v10 = vld [vmem:[#allocation115_spill] sm:$0xff]  ;;  %v3406_v8 = vadd.f32 %v6182_v52, %v6162_v28  ;;  %v3004_v7 = vld [vmem:[#allocation2 + $0x4c8] sm:$0xff] }
 0x43e   : > { %v4149_v23 = vadd.f32 %v4148_v43, %v4086_v57  ;;  %v4089_v33 = vmul.f32 %v6140_v4, %v6140_v4  ;;  %v7379_v57 = vld [vmem:[#allocation120_spill] sm:$0xff]  ;;  %v4090_v28 = vmul.f32 %v6146_v22, %v6146_v22 }
 0x43f   : > { %v3414_v44 = vpop.f32.mrf.mxu3  ;;  %v6255_v53 = vadd.f32 %v2569_v58, %v1637_v26  ;;  %2615 = vmatmul.f32.gmra.mxu1 %v2997_v17  ;;  %v4012_v30 = vadd.f32 %v4011_v25, %v6128_v51  ;;  %v4088_v26 = vmul.f32 %v6134_v14, %v6134_v14  ;;  %v1640_v58 = vadd.f32 %v7378_v10, %v1431_v47  ;;  %v3629_v25 = vpop.f32.mrf.mxu0 }
 0x440   : > { %3258 = vmatmul.f32.gmra.mxu2 %v3001_v32  ;;  %v4150_v32 = vadd.f32 %v4149_v23, %v4087_v11  ;;  %v3615_v23 = vadd.f32 %v6158_v40, %v3406_v8 }
 0x441   : > { %v4013_v42 = vadd.f32 %v4012_v30, %v6134_v14  ;;  %v3412_v30 = vadd.f32 %v3411_v9, %v6199_v0  ;;  %v7382_v9 = vld [vmem:[#allocation118_spill] sm:$0xff] }
 0x442   : > { %3676 = vmatmul.f32.gmra.mxu0 %v3003_v31  ;;  %v4151_v41 = vadd.f32 %v4150_v32, %v4088_v26  ;;  %v3002_v26 = vld [vmem:[#allocation2 + $0x4b8] sm:$0xff] }
 0x443   : > { %v3211_v17 = vpop.f32.mrf.mxu2  ;;  %v4014_v47 = vadd.f32 %v4013_v42, %v6140_v4  ;;  %v7381_v32 = vld [vmem:[#allocation116_spill] sm:$0xff] }
 0x444   : > { %3464 = vmatmul.f32.gmra.mxu3 %v2999_v2  ;;  %v2571_v36 = vpop.f32.mrf.mxu1  ;;  %v6279_v2 = vld [vmem:[#allocation2 + $0x4d8] sm:$0xff]  ;;  %v4152_v10 = vadd.f32 %v4151_v41, %v4089_v33  ;;  %v4092_v41 = vmul.f32 %v6164_v46, %v6164_v46  ;;  %v6296_v33 = vadd.f32 %v3615_v23, %v6156_v18 }
 0x445   : > { %v2572_v43 = vadd.f32 %v2571_v36, %v7379_v57  ;;  %v4015_v59 = vadd.f32 %v4014_v47, %v6146_v22  ;;  %v7380_v36 = vld [vmem:[#allocation48_spill] sm:$0xff]  ;;  %v3621_v57 = vadd.f32 %v6186_v61, %v3412_v30  ;;  %v7383_v47 = vld [vmem:[#allocation123_spill] sm:$0xff] }
 0x446   : > { %v1434_v42 = vadd.f32 %v7381_v32, %v7380_v36  ;;  %v4153_v40 = vadd.f32 %v4152_v10, %v4090_v28  ;;  %v3007_v10 = vld [vmem:[#allocation2 + $0x4e0] sm:$0xff] }
 0x447   : > { %v3417_v52 = vpop.f32.mrf.mxu3  ;;  %v6277_v11 = vadd.f32 %v2572_v43, %v1640_v58  ;;  %2618 = vmatmul.f32.gmra.mxu1 %v3000_v38  ;;  %v3618_v58 = vadd.f32 %v6170_v50, %v3409_v27  ;;  %v3415_v38 = vadd.f32 %v3414_v44, %v6223_v19  ;;  %v4016_v0 = vadd.f32 %v4015_v59, %v6152_v35  ;;  %v3632_v30 = vpop.f32.mrf.mxu0 }
 0x448   : > { %3261 = vmatmul.f32.gmra.mxu2 %v3004_v7  ;;  %v1643_v8 = vadd.f32 %v7382_v9, %v1434_v42  ;;  %v3418_v43 = vadd.f32 %v3417_v52, %v6243_v34  ;;  %v4154_v44 = vadd.f32 %v4153_v40, %v4091_v12  ;;  %v4093_v19 = vmul.f32 %v6176_v54, %v6176_v54  ;;  %v3009_v12 = vld [vmem:[#allocation2 + $0x4f0] sm:$0xff] }
 0x449   : > { %v4017_v50 = vadd.f32 %v4016_v0, %v6164_v46  ;;  %v6305_v59 = vadd.f32 %v3618_v58, %v6168_v55  ;;  %v3624_v18 = vadd.f32 %v6216_v13, %v3415_v38  ;;  %v6314_v36 = vadd.f32 %v3621_v57, %v6184_v49  ;;  %v3005_v42 = vld [vmem:[#allocation2 + $0x4d0] sm:$0xff]  ;;  %v7384_v0 = vld [vmem:[#allocation52_spill] sm:$0xff] }
 0x44a   : > { %3679 = vmatmul.f32.gmra.mxu0 %v6279_v2  ;;  %v4155_v61 = vadd.f32 %v4154_v44, %v4092_v41  ;;  %v3627_v55 = vadd.f32 %v6245_v6, %v3418_v43  ;;  %v7385_v41 = vld [vmem:[#allocation119_spill] sm:$0xff]  ;;  %v7386_v43 = vld [vmem:[#allocation121_spill] sm:$0xff] }
 0x44b   : > { %v3214_v7 = vpop.f32.mrf.mxu2  ;;  %v4018_v34 = vadd.f32 %v4017_v50, %v6176_v54  ;;  %v4095_v38 = vmul.f32 %v6305_v59, %v6305_v59  ;;  %v1437_v49 = vadd.f32 %v7385_v41, %v7384_v0 }
 0x44c   : > { %3467 = vmatmul.f32.gmra.mxu3 %v3002_v26  ;;  %v2574_v27 = vpop.f32.mrf.mxu1  ;;  %v4094_v26 = vmul.f32 %v6296_v33, %v6296_v33  ;;  %v4156_v13 = vadd.f32 %v4155_v61, %v4093_v19  ;;  %v3012_v61 = vld [vmem:[#allocation2 + $0x508] sm:$0xff] }
 0x44d   : > { %v2575_v28 = vadd.f32 %v2574_v27, %v7383_v47  ;;  %v4019_v58 = vadd.f32 %v4018_v34, %v6296_v33  ;;  %v1646_v27 = vadd.f32 %v7386_v43, %v1437_v49 }
 0x44e   : > { %v4157_v9 = vadd.f32 %v4156_v13, %v4094_v26 }
 0x44f   : > { %v3420_v52 = vpop.f32.mrf.mxu3  ;;  %v6309_v23 = vadd.f32 %v2575_v28, %v1643_v8  ;;  %2621 = vmatmul.f32.gmra.mxu1 %v3003_v31  ;;  %v6321_v31 = vadd.f32 %v3624_v18, %v6211_v15  ;;  %v4020_v6 = vadd.f32 %v4019_v58, %v6305_v59  ;;  %v6329_v8 = vadd.f32 %v3627_v55, %v6233_v60  ;;  %v7387_v15 = vld [vmem:[#allocation126_spill] sm:$0xff]  ;;  %v3635_v13 = vpop.f32.mrf.mxu0 }
 0x450   : > { %v3421_v32 = vadd.f32 %v3420_v52, %v3211_v17  ;;  %3264 = vmatmul.f32.gmra.mxu2 %v3007_v10  ;;  %v4096_v17 = vmul.f32 %v6314_v36, %v6314_v36  ;;  %v4158_v50 = vadd.f32 %v4157_v9, %v4095_v38 }
 0x451   : > { %v4021_v19 = vadd.f32 %v4020_v6, %v6314_v36  ;;  %v4097_v47 = vmul.f32 %v6321_v31, %v6321_v31  ;;  %v4098_v26 = vmul.f32 %v6329_v8, %v6329_v8  ;;  %v7390_v6 = vld [vmem:[#allocation124_spill] sm:$0xff] }
 0x452   : > { %v3630_v40 = vadd.f32 %v3629_v25, %v3421_v32  ;;  %3682 = vmatmul.f32.gmra.mxu0 %v3009_v12  ;;  %v3010_v25 = vld [vmem:[#allocation2 + $0x4f8] sm:$0xff]  ;;  %v4159_v34 = vadd.f32 %v4158_v50, %v4096_v17  ;;  %v3008_v32 = vld [vmem:[#allocation2 + $0x4e8] sm:$0xff] }
 0x453   : > { %v3217_v18 = vpop.f32.mrf.mxu2  ;;  %v4022_v52 = vadd.f32 %v4021_v19, %v6321_v31  ;;  %v3015_v19 = vld [vmem:[#allocation2 + $0x520] sm:$0xff] }
 0x454   : > { %3470 = vmatmul.f32.gmra.mxu3 %v3005_v42  ;;  %v2577_v57 = vpop.f32.mrf.mxu1  ;;  %v6337_v28 = vadd.f32 %v3630_v40, %v6255_v53  ;;  %v4160_v42 = vadd.f32 %v4159_v34, %v4097_v47  ;;  %v7389_v40 = vld [vmem:[#allocation122_spill] sm:$0xff] }
 0x455   : > { %v2578_v44 = vadd.f32 %v2577_v57, %v7387_v15  ;;  %v4023_v53 = vadd.f32 %v4022_v52, %v6329_v8  ;;  %v7391_v57 = vld [vmem:[#allocation129_spill] sm:$0xff] }
 0x456   : > { %v4099_v58 = vmul.f32 %v6337_v28, %v6337_v28  ;;  %v4161_v41 = vadd.f32 %v4160_v42, %v4098_v26  ;;  %v7392_v26 = vld [vmem:[#allocation60_spill] sm:$0xff] }
 0x457   : > { %v3423_v10 = vpop.f32.mrf.mxu3  ;;  %v2775_v60 = vadd.f32 %v2578_v44, %v1646_v27  ;;  %2624 = vmatmul.f32.gmra.mxu1 %v6279_v2  ;;  %v7388_v2 = vld [vmem:[#allocation56_spill] sm:$0xff]  ;;  %v4024_v49 = vadd.f32 %v4023_v53, %v6337_v28  ;;  %v3013_v27 = vld [vmem:[#allocation2 + $0x510] sm:$0xff]  ;;  %v3638_v42 = vpop.f32.mrf.mxu0 }
 0x458   : > { %v3424_v55 = vadd.f32 %v3423_v10, %v3214_v7  ;;  %3267 = vmatmul.f32.gmra.mxu2 %v3010_v25  ;;  %v1440_v0 = vadd.f32 %v7389_v40, %v7388_v2  ;;  %v4162_v15 = vadd.f32 %v4161_v41, %v4099_v58  ;;  %v3011_v10 = vld [vmem:[#allocation2 + $0x500] sm:$0xff] }
 0x45a   : > { %v3633_v38 = vadd.f32 %v3632_v30, %v3424_v55  ;;  %3685 = vmatmul.f32.gmra.mxu0 %v3012_v61  ;;  %v1649_v17 = vadd.f32 %v7390_v6, %v1440_v0  ;;  %v7393_v55 = vld [vmem:[#allocation125_spill] sm:$0xff]  ;;  %v3016_v0 = vld [vmem:[#allocation2 + $0x528] sm:$0xff] }
 0x45b   : > { %v3220_v34 = vpop.f32.mrf.mxu2 }
 0x45c   : > { %v6350_v9 = vadd.f32 %v3633_v38, %v6277_v11  ;;  %3473 = vmatmul.f32.gmra.mxu3 %v3008_v32  ;;  %v2580_v7 = vpop.f32.mrf.mxu1  ;;  %v1443_v32 = vadd.f32 %v7393_v55, %v7392_v26  ;;  %v7394_v38 = vld [vmem:[#allocation127_spill] sm:$0xff]  ;;  %v3019_v55 = vld [vmem:[#allocation2 + $0x540] sm:$0xff] }
 0x45d   : > { %v2581_v43 = vadd.f32 %v2580_v7, %v7391_v57  ;;  %v7396_v57 = vld [vmem:[#allocation14_spill] sm:$0xff] }
 0x45e   : > { %v4025_v30 = vadd.f32 %v4024_v49, %v6350_v9  ;;  %v4100_v44 = vmul.f32 %v6350_v9, %v6350_v9  ;;  %v1652_v2 = vadd.f32 %v7394_v38, %v1443_v32 }
 0x45f   : > { %v3426_v25 = vpop.f32.mrf.mxu3  ;;  %v2776_v50 = vadd.f32 %v2581_v43, %v1649_v17  ;;  %2627 = vmatmul.f32.gmra.mxu1 %v3009_v12  ;;  %v7395_v12 = vld [vmem:[#allocation132_spill] sm:$0xff] }
 0x460   : > { %v4163_v47 = vadd.f32 %v4162_v15, %v4100_v44  ;;  %v3427_v11 = vadd.f32 %v3426_v25, %v3217_v18  ;;  %3270 = vmatmul.f32.gmra.mxu2 %v3013_v27  ;;  %v7397_v43 = vld [vmem:[#allocation128_spill] sm:$0xff] }
 0x461   : > { %v1446_v27 = vadd.f32 %v7397_v43, %v7396_v57  ;;  %v3018_v57 = vld [vmem:[#allocation2 + $0x538] sm:$0xff] }
 0x462   : > { %v3636_v52 = vadd.f32 %v3635_v13, %v3427_v11  ;;  %3688 = vmatmul.f32.gmra.mxu0 %v3015_v19 }
 0x463   : > { %v3223_v15 = vpop.f32.mrf.mxu2 }
 0x464   : > { %v6360_v53 = vadd.f32 %v3636_v52, %v6309_v23  ;;  %3476 = vmatmul.f32.gmra.mxu3 %v3011_v10  ;;  %v2583_v58 = vpop.f32.mrf.mxu1  ;;  %v3014_v23 = vld [vmem:[#allocation2 + $0x518] sm:$0xff]  ;;  %v3641_v10 = vpop.f32.mrf.mxu0  ;;  %v7399_v52 = vld [vmem:[#allocation135_spill] sm:$0xff] }
 0x465   : > { %v2584_v40 = vadd.f32 %v2583_v58, %v7395_v12 }
 0x466   : > { %v4026_v18 = vadd.f32 %v4025_v30, %v6360_v53  ;;  %v4101_v13 = vmul.f32 %v6360_v53, %v6360_v53  ;;  %v7398_v30 = vld [vmem:[#allocation130_spill] sm:$0xff] }
 0x467   : > { %v3429_v41 = vpop.f32.mrf.mxu3  ;;  %v2777_v49 = vadd.f32 %v2584_v40, %v1652_v2  ;;  %2630 = vmatmul.f32.gmra.mxu1 %v3012_v61  ;;  %v1655_v11 = vadd.f32 %v7398_v30, %v1446_v27  ;;  %v7400_v30 = vld [vmem:[#allocation16_spill] sm:$0xff] }
 0x468   : > { %v4164_v7 = vadd.f32 %v4163_v47, %v4101_v13  ;;  %v3430_v6 = vadd.f32 %v3429_v41, %v3220_v34  ;;  %3273 = vmatmul.f32.gmra.mxu2 %v3016_v0 }
 0x46a   : > { %v3639_v17 = vadd.f32 %v3638_v42, %v3430_v6  ;;  %3691 = vmatmul.f32.gmra.mxu0 %v3018_v57 }
 0x46b   : > { %v3226_v12 = vpop.f32.mrf.mxu2 }
 0x46c   : > { %v6369_v44 = vadd.f32 %v3639_v17, %v2775_v60  ;;  %3479 = vmatmul.f32.gmra.mxu3 %v3014_v23  ;;  %v2586_v25 = vpop.f32.mrf.mxu1  ;;  %v3017_v60 = vld [vmem:[#allocation2 + $0x530] sm:$0xff]  ;;  %v3644_v13 = vpop.f32.mrf.mxu0  ;;  %v3020_v23 = vld [vmem:[#allocation2 + $0x548] sm:$0xff] }
 0x46d   : > { %v2587_v26 = vadd.f32 %v2586_v25, %v7399_v52 }
 0x46e   : > { %v4027_v61 = vadd.f32 %v4026_v18, %v6369_v44  ;;  %v4102_v47 = vmul.f32 %v6369_v44, %v6369_v44 }
 0x46f   : > { %v3432_v34 = vpop.f32.mrf.mxu3  ;;  %v2778_v32 = vadd.f32 %v2587_v26, %v1655_v11  ;;  %2633 = vmatmul.f32.gmra.mxu1 %v3015_v19  ;;  %v7401_v11 = vld [vmem:[#allocation131_spill] sm:$0xff] }
 0x470   : > { %v4165_v42 = vadd.f32 %v4164_v7, %v4102_v47  ;;  %v3433_v58 = vadd.f32 %v3432_v34, %v3223_v15  ;;  %3276 = vmatmul.f32.gmra.mxu2 %v3019_v55  ;;  %v7402_v47 = vld [vmem:[#allocation133_spill] sm:$0xff] }
 0x472   : > { %v3642_v38 = vadd.f32 %v3641_v10, %v3433_v58  ;;  %v1449_v10 = vadd.f32 %v7401_v11, %v7400_v30 }
 0x473   : > { %v3229_v52 = vpop.f32.mrf.mxu2 }
 0x474   : > { %v6376_v2 = vadd.f32 %v3642_v38, %v2776_v50  ;;  %3482 = vmatmul.f32.gmra.mxu3 %v3017_v60  ;;  %v1658_v34 = vadd.f32 %v7402_v47, %v1449_v10  ;;  %v3647_v58 = vpop.f32.mrf.mxu0 }
 0x476   : > { %v4028_v40 = vadd.f32 %v4027_v61, %v6376_v2  ;;  %v4103_v0 = vmul.f32 %v6376_v2, %v6376_v2 }
 0x477   : > { %v3435_v18 = vpop.f32.mrf.mxu3  ;;  %2636 = vmatmul.f32.gmra.mxu1 %v3018_v57 }
 0x478   : > { %v4166_v41 = vadd.f32 %v4165_v42, %v4103_v0  ;;  %v3436_v6 = vadd.f32 %v3435_v18, %v3226_v12  ;;  %v2589_v42 = vpop.f32.mrf.mxu1  ;;  %v7403_v12 = vld [vmem:[#allocation138_spill] sm:$0xff]  ;;  %v3022_v18 = vld [vmem:[#allocation2 + $0x558] sm:$0xff] }
 0x479   : > { %3279 = vmatmul.f32.gmra.mxu2 %v3022_v18 }
 0x47a   : > { %v3645_v19 = vadd.f32 %v3644_v13, %v3436_v6  ;;  %v3023_v13 = vld [vmem:[#allocation2 + $0x560] sm:$0xff] }
 0x47c   : > { %v6381_v7 = vadd.f32 %v3645_v19, %v2777_v49  ;;  %3485 = vmatmul.f32.gmra.mxu3 %v3020_v23  ;;  %v3650_v10 = vpop.f32.mrf.mxu0 }
 0x47e   : > { %v4029_v17 = vadd.f32 %v4028_v40, %v6381_v7  ;;  %v4104_v50 = vmul.f32 %v6381_v7, %v6381_v7  ;;  %v2590_v40 = vadd.f32 %v2589_v42, %v7403_v12  ;;  %v7404_v42 = vld [vmem:[#allocation19_spill] sm:$0xff] }
 0x47f   : > { %v3438_v26 = vpop.f32.mrf.mxu3 }
 0x480   : > { %v4030_v43 = vrot.slane %v4029_v17, 4  ;;  %v4167_v27 = vadd.f32 %v4166_v41, %v4104_v50  ;;  %v3439_v61 = vadd.f32 %v3438_v26, %v3229_v52  ;;  %v3021_v41 = vld [vmem:[#allocation2 + $0x550] sm:$0xff]  ;;  %v2779_v19 = vadd.f32 %v2590_v40, %v1658_v34  ;;  %v2592_v11 = vpop.f32.mrf.mxu1  ;;  %v7406_v40 = vld [vmem:[#allocation136_spill] sm:$0xff] }
 0x481   : > { %3694 = vmatmul.f32.gmra.mxu0 %v3021_v41  ;;  %2639 = vmatmul.f32.gmra.mxu1 %v3021_v41  ;;  %v7407_v41 = vld [vmem:[#allocation22_spill] sm:$0xff] }
 0x482   : > { %v4031_v15 = vadd.f32 %v4030_v43, %v4029_v17  ;;  %v4168_v25 = vrot.slane %v4167_v27, 4  ;;  %v3648_v0 = vadd.f32 %v3647_v58, %v3439_v61  ;;  %v3232_v43 = vpop.f32.mrf.mxu2  ;;  %v3024_v61 = vld [vmem:[#allocation2 + $0x568] sm:$0xff] }
 0x483   : > { %v7405_v58 = vld [vmem:[#allocation134_spill] sm:$0xff] }
 0x484   : > { %v4032_v49 = vrot.slane %v4031_v15, 2  ;;  %v4169_v55 = vadd.f32 %v4168_v25, %v4167_v27  ;;  %v6390_v17 = vadd.f32 %v3648_v0, %v2778_v32  ;;  %3488 = vmatmul.f32.gmra.mxu3 %v3023_v13  ;;  %v3653_v13 = vpop.f32.mrf.mxu0 }
 0x486   : > { %v4033_v60 = vadd.f32 %v4032_v49, %v4031_v15  ;;  %v4170_v38 = vrot.slane %v4169_v55, 2  ;;  %v3025_v49 = vld [vmem:[#allocation2 + $0x570] sm:$0xff] }
 0x487   : > { %v3441_v27 = vpop.f32.mrf.mxu3  ;;  %3282 = vmatmul.f32.gmra.mxu2 %v3025_v49 }
 0x488   : > { %v4034_v6 = vrot.slane %v4033_v60, 1  ;;  %v4171_v23 = vadd.f32 %v4170_v38, %v4169_v55  ;;  %v3442_v30 = vadd.f32 %v3441_v27, %v3232_v43  ;;  %v3026_v55 = vld [vmem:[#allocation2 + $0x578] sm:$0xff]  ;;  %v2595_v18 = vpop.f32.mrf.mxu1 }
 0x489   : > { %3697 = vmatmul.f32.gmra.mxu0 %v3024_v61  ;;  %2642 = vmatmul.f32.gmra.mxu1 %v3024_v61  ;;  %v3029_v61 = vld [vmem:[#allocation2 + $0x590] sm:$0xff]  ;;  %v7413_v43 = vld [vmem:[#allocation140_spill] sm:$0xff] }
 0x48a   : > { %v4035_v50 = vadd.f32 %v4034_v6, %v4033_v60  ;;  %v4172_v57 = vrot.slane %v4171_v23, 1  ;;  %v1452_v60 = vadd.f32 %v7405_v58, %v7404_v42  ;;  %v3235_v38 = vpop.f32.mrf.mxu2  ;;  %v7408_v6 = vld [vmem:[#allocation137_spill] sm:$0xff]  ;;  %v3651_v49 = vadd.f32 %v3650_v10, %v3442_v30  ;;  %v7410_v42 = vld [vmem:[#allocation139_spill] sm:$0xff]  ;;  %v7414_v30 = vld [vmem:[#allocation142_spill] sm:$0xff] }
 0x48c   : > { %v4173_v15 = vadd.f32 %v4172_v57, %v4171_v23  ;;  %v6392_v25 = vmul.f32 0.00390625, %v4035_v50  ;;  %3491 = vmatmul.f32.gmra.mxu3 %v3026_v55  ;;  %v1661_v0 = vadd.f32 %v7406_v40, %v1452_v60  ;;  %v1455_v23 = vadd.f32 %v7408_v6, %v7407_v41  ;;  %v3028_v55 = vld [vmem:[#allocation2 + $0x588] sm:$0xff]  ;;  %v7411_v40 = vld [vmem:[#allocation144_spill] sm:$0xff]  ;;  %v7412_v6 = vld [vmem:[#allocation25_spill] sm:$0xff] }
 0x48d   : > { %v2596_v41 = vadd.f32 %v2595_v18, %v7411_v40  ;;  %v1458_v57 = vadd.f32 %v7413_v43, %v7412_v6  ;;  %v6421_v27 = vadd.f32 %v3651_v49, %v2779_v19  ;;  %v3030_v40 = vld [vmem:[#allocation2 + $0x598] sm:$0xff] }
 0x48e   : > { %v4213_v52 = vmul.f32 0.00390625, %v4173_v15  ;;  %v4215_v26 = vmul.f32 %v6392_v25, %v6392_v25  ;;  %v1664_v58 = vadd.f32 %v7410_v42, %v1455_v23  ;;  %v4221_v19 = vsub.f32 %v6050_v56, %v6392_v25 }
 0x48f   : > { %v3444_v12 = vpop.f32.mrf.mxu3  ;;  %3285 = vmatmul.f32.gmra.mxu2 %v3028_v55  ;;  %v1667_v10 = vadd.f32 %v7414_v30, %v1458_v57  ;;  %v4222_v57 = vsub.f32 %v6056_v45, %v6392_v25  ;;  %v3656_v55 = vpop.f32.mrf.mxu0  ;;  %v4226_v56 = vsub.f32 %v6080_v5, %v6392_v25  ;;  %v4227_v45 = vsub.f32 %v6089_v1, %v6392_v25 }
 0x490   : > { %v4217_v47 = vsub.f32 %v4213_v52, %v4215_v26  ;;  %v7409_v52 = vld [vmem:[#allocation141_spill] sm:$0xff]  ;;  %v3445_v60 = vadd.f32 %v3444_v12, %v3235_v38  ;;  %v2781_v32 = vadd.f32 %v2596_v41, %v1664_v58  ;;  %v4219_v38 = vsub.f32 %v6038_v24, %v6392_v25  ;;  %v2598_v49 = vpop.f32.mrf.mxu1 }
 0x491   : > { %v2593_v26 = vadd.f32 %v2592_v11, %v7409_v52  ;;  %v4224_v24 = vsub.f32 %v6068_v29, %v6392_v25  ;;  %v4229_v29 = vsub.f32 %v6103_v63, %v6392_v25  ;;  %v3031_v58 = vld [vmem:[#allocation2 + $0x5a0] sm:$0xff]  ;;  %v4231_v5 = vsub.f32 %v6116_v39, %v6392_v25 }
 0x492   : > { %v6398_v34 = vadd.f32 1e-05, %v4217_v47  ;;  %v3027_v47 = vld [vmem:[#allocation2 + $0x580] sm:$0xff]  ;;  %v3654_v11 = vadd.f32 %v3653_v13, %v3445_v60  ;;  %v3238_v12 = vpop.f32.mrf.mxu2  ;;  %v3032_v60 = vld [vmem:[#allocation2 + $0x5a8] sm:$0xff]  ;;  %v4233_v63 = vsub.f32 %v6128_v51, %v6392_v25  ;;  %v4235_v39 = vsub.f32 %v6140_v4, %v6392_v25 }
 0x493   : > { %v2780_v50 = vadd.f32 %v2593_v26, %v1661_v0  ;;  %3700 = vmatmul.f32.gmra.mxu0 %v3027_v47  ;;  %2645 = vmatmul.f32.gmra.mxu1 %v3027_v47  ;;  %v4220_v0 = vsub.f32 %v6044_v48, %v6392_v25  ;;  %v4223_v26 = vsub.f32 %v6062_v21, %v6392_v25 }
 0x494   : > { %4729 = vrsqrt.f32 %v6398_v34  ;;  %3494 = vmatmul.f32.gmra.mxu3 %v3029_v61  ;;  %v4225_v48 = vsub.f32 %v6074_v37, %v6392_v25  ;;  %v4228_v21 = vsub.f32 %v6096_v3, %v6392_v25  ;;  %v4230_v37 = vsub.f32 %v6109_v16, %v6392_v25 }
 0x495   : > { %v6431_v43 = vadd.f32 %v3654_v11, %v2780_v50  ;;  %v7415_v50 = vld [vmem:[#allocation147_spill] sm:$0xff]  ;;  %v4232_v3 = vsub.f32 %v6122_v20, %v6392_v25  ;;  %v4234_v16 = vsub.f32 %v6134_v14, %v6392_v25  ;;  %vm4291_vm2 = vweird.f32 %v6398_v34 }
 0x496   : > { %v2599_v61 = vadd.f32 %v2598_v49, %v7415_v50  ;;  %v4237_v20 = vsub.f32 %v6152_v35, %v6392_v25  ;;  %v4238_v51 = vsub.f32 %v6164_v46, %v6392_v25  ;;  %v4239_v14 = vsub.f32 %v6176_v54, %v6392_v25  ;;  %v3035_v50 = vld [vmem:[#allocation2 + $0x5c0] sm:$0xff] }
 0x497   : > { %v3447_v18 = vpop.f32.mrf.mxu3  ;;  %3288 = vmatmul.f32.gmra.mxu2 %v3031_v58  ;;  %v4240_v4 = vsub.f32 %v6296_v33, %v6392_v25  ;;  %v4242_v35 = vsub.f32 %v6314_v36, %v6392_v25  ;;  %v4243_v46 = vsub.f32 %v6321_v31, %v6392_v25  ;;  %v6490_v54 = vpop.f32.mrf.mxu0  ;;  %v7416_v33 = vsub.f32 %v6381_v7, %v6392_v25 }
 0x498   : > { %v3448_v13 = vadd.f32 %v3447_v18, %v3238_v12  ;;  %v6454_v41 = vadd.f32 %v2599_v61, %v1667_v10  ;;  %v4244_v12 = vsub.f32 %v6329_v8, %v6392_v25  ;;  %v6488_v18 = vpop.f32.mrf.mxu1  ;;  %v3034_v8 = vld [vmem:[#allocation2 + $0x5b8] sm:$0xff] }
 0x49a   : > { %v4730_v15 = vpop.eup %4729  ;;  %v3657_v47 = vadd.f32 %v3656_v55, %v3448_v13  ;;  %v3241_v30 = vpop.f32.mrf.mxu2 }
 0x49b   : > { %v4286_v23 = vmul.f32 %v4730_v15, %v6398_v34  ;;  %vm4292_vm1 = vweird.f32 %v4730_v15  ;;  %3703 = vmatmul.f32.gmra.mxu0 %v3030_v40  ;;  %2648 = vmatmul.f32.gmra.mxu1 %v3030_v40 }
 0x49c   : > { %v6456_v6 = vadd.f32 %v3657_v47, %v2781_v32  ;;  %3497 = vmatmul.f32.gmra.mxu3 %v3032_v60  ;;  %v4236_v32 = vsub.f32 %v6146_v22, %v6392_v25  ;;  %vm4293_vm3 = vmor %vm4291_vm2, %vm4292_vm1  ;;  %v4241_v22 = vsub.f32 %v6305_v59, %v6392_v25 }
 0x49d   : > { %v4287_v52 = vmul.f32 %v4730_v15, %v4286_v23 }
 0x49f   : > { %v4288_v42 = vmul.f32 0.5, %v4287_v52  ;;  %v3450_v10 = vpop.f32.mrf.mxu3  ;;  %3291 = vmatmul.f32.gmra.mxu2 %v3034_v8 }
 0x4a0   : > { %v6480_v34 = vadd.f32 %v3450_v10, %v3241_v30  ;;  %v7420_v30 = vsub.f32 %v6369_v44, %v6392_v25 }
 0x4a1   : > { %v4289_v1 = vsub.f32 1.5, %v4288_v42 }
 0x4a2   : > { %v3244_v40 = vpop.f32.mrf.mxu2 }
 0x4a3   : > { %v4290_v11 = vmul.f32 %v4730_v15, %v4289_v1 }
 0x4a4   : > { %3500 = vmatmul.f32.gmra.mxu3 %v3035_v50  ;;  %v7426_v50 = vld [vmem:[#allocation34_spill] sm:$0xff] }
 0x4a5   : > { %v4294_v23 = vsel %vm4293_vm3, %v4730_v15, %v4290_v11 }
 0x4a6   : > { %v4336_v59 = vmul.f32 %v4294_v23, %v7416_v33  ;;  %v4305_v13 = vmul.f32 %v4294_v23, %v4219_v38  ;;  %v4306_v52 = vmul.f32 %v4294_v23, %v4220_v0  ;;  %v4307_v15 = vmul.f32 %v4294_v23, %v4221_v19  ;;  %v3033_v38 = vld [vmem:[#allocation2 + $0x5b0] sm:$0xff] }
 0x4a7   : > { %v4308_v49 = vmul.f32 %v4294_v23, %v4222_v57  ;;  %v6495_v55 = vmul.f32 %v4294_v23, %v4223_v26  ;;  %v6497_v36 = vmul.f32 %v4294_v23, %v4224_v24  ;;  %v6499_v31 = vmul.f32 %v4294_v23, %v4225_v48  ;;  %3706 = vmatmul.f32.gmra.mxu0 %v3033_v38 }
 0x4a8   : > { %v4400_v61 = vmax.f32 %v4336_v59, 0.0  ;;  %v6501_v47 = vmul.f32 %v4294_v23, %v4226_v56  ;;  %v6503_v42 = vmul.f32 %v4294_v23, %v4227_v45  ;;  %v6505_v7 = vmul.f32 %v4294_v23, %v4228_v21  ;;  %2651 = vmatmul.f32.gmra.mxu1 %v3033_v38  ;;  %v3036_v59 = vld [vmem:[#allocation2 + $0x5c8] sm:$0xff] }
 0x4a9   : > { %v6507_v0 = vmul.f32 %v4294_v23, %v4229_v29  ;;  %v6509_v19 = vmul.f32 %v4294_v23, %v4230_v37  ;;  %v6511_v57 = vmul.f32 %v4294_v23, %v4231_v5  ;;  %v6513_v26 = vmul.f32 %v4294_v23, %v4232_v3  ;;  %v3453_v37 = vpop.f32.mrf.mxu3 }
 0x4aa   : > { %4464 = vst [vmem:[%s6517_s15 + $0xf8] sm:$0xff] %v4400_v61  ;;  %v6520_v24 = vmul.f32 %v4294_v23, %v4233_v63  ;;  %v6522_v48 = vmul.f32 %v4294_v23, %v4234_v16  ;;  %v6524_v56 = vmul.f32 %v4294_v23, %v4235_v39  ;;  %v6526_v45 = vmul.f32 %v4294_v23, %v4236_v32 }
 0x4ab   : > { %v6528_v21 = vmul.f32 %v4294_v23, %v4237_v20  ;;  %v6530_v29 = vmul.f32 %v4294_v23, %v4238_v51  ;;  %v6532_v58 = vmul.f32 %v4294_v23, %v4239_v14  ;;  %v6534_v60 = vmul.f32 %v4294_v23, %v4240_v4  ;;  %v2604_v14 = vpop.f32.mrf.mxu1 }
 0x4ac   : > { %v6536_v5 = vmul.f32 %v4294_v23, %v4241_v22  ;;  %v6538_v1 = vmul.f32 %v4294_v23, %v4242_v35  ;;  %v6540_v3 = vmul.f32 %v4294_v23, %v4243_v46  ;;  %v6542_v63 = vmul.f32 %v4294_v23, %v4244_v12  ;;  %v3038_v12 = vld [vmem:[#allocation2 + $0x5d8] sm:$0xff] }
 0x4ad   : > { %v7417_v16 = vsub.f32 %v6337_v28, %v6392_v25  ;;  %v7418_v32 = vsub.f32 %v6350_v9, %v6392_v25  ;;  %v7419_v20 = vsub.f32 %v6360_v53, %v6392_v25  ;;  %v6562_v10 = vmul.f32 %v4294_v23, %v7420_v30  ;;  %v3662_v28 = vpop.f32.mrf.mxu0  ;;  %v3037_v53 = vld [vmem:[#allocation2 + $0x5d0] sm:$0xff]  ;;  %3503 = vmatmul.f32.gmra.mxu3 %v3038_v12 }
 0x4ae   : > { %v7421_v4 = vsub.f32 %v6376_v2, %v6392_v25  ;;  %v4369_v9 = vmax.f32 %v4305_v13, 0.0  ;;  %v4370_v35 = vmax.f32 %v4306_v52, 0.0  ;;  %v4371_v46 = vmax.f32 %v4307_v15, 0.0  ;;  %3294 = vmatmul.f32.gmra.mxu2 %v3037_v53  ;;  %v7422_v2 = vld [vmem:[#allocation28_spill] sm:$0xff]  ;;  %v7423_v25 = vld [vmem:[#allocation143_spill] sm:$0xff]  ;;  %v7425_v15 = vld [vmem:[#allocation146_spill] sm:$0xff] }
 0x4af   : > { %v6547_v39 = vmul.f32 %v4294_v23, %v7417_v16  ;;  %v6552_v11 = vmul.f32 %v4294_v23, %v7418_v32  ;;  %v6557_v51 = vmul.f32 %v4294_v23, %v7419_v20  ;;  %v4372_v33 = vmax.f32 %v4308_v49, 0.0  ;;  %v7424_v52 = vld [vmem:[#allocation31_spill] sm:$0xff]  ;;  %3709 = vmatmul.f32.gmra.mxu0 %v3036_v59  ;;  %v7428_v32 = vld [vmem:[#allocation145_spill] sm:$0xff] }
 0x4b0   : > { %v6567_v22 = vmul.f32 %v4294_v23, %v7421_v4  ;;  %v4373_v44 = vmax.f32 %v6495_v55, 0.0  ;;  %4433 = vst [vmem:[%s6517_s15] sm:$0xff] %v4369_v9  ;;  %v4374_v8 = vmax.f32 %v6497_v36, 0.0  ;;  %v1461_v23 = vadd.f32 %v7423_v25, %v7422_v2  ;;  %v7427_v55 = vld [vmem:[#allocation149_spill] sm:$0xff]  ;;  %v3247_v36 = vpop.f32.mrf.mxu2  ;;  %2654 = vmatmul.f32.gmra.mxu1 %v3036_v59  ;;  %v7430_v9 = vld [vmem:[#allocation151_spill] sm:$0xff] }
 0x4b1   : > { %4434 = vst [vmem:[%s6517_s15 + $0x8] sm:$0xff] %v4370_v35  ;;  %v4375_v13 = vmax.f32 %v6499_v31, 0.0  ;;  %v1464_v49 = vadd.f32 %v7425_v15, %v7424_v52  ;;  %v1467_v61 = vadd.f32 %v7427_v55, %v7426_v50  ;;  %v4376_v38 = vmax.f32 %v6501_v47, 0.0  ;;  %v3456_v16 = vpop.f32.mrf.mxu3  ;;  %v7429_v31 = vld [vmem:[#allocation148_spill] sm:$0xff]  ;;  %v7432_v59 = vld [vmem:[#allocation153_spill] sm:$0xff]  ;;  %v3041_v52 = vld [vmem:[#allocation2 + $0x5f0] sm:$0xff] }
 0x4b2   : > { %4435 = vst [vmem:[%s6517_s15 + $0x10] sm:$0xff] %v4371_v46  ;;  %v1670_v20 = vadd.f32 %v7428_v32, %v1461_v23  ;;  %v4377_v30 = vmax.f32 %v6503_v42, 0.0  ;;  %v4378_v46 = vmax.f32 %v6505_v7, 0.0  ;;  %v4379_v47 = vmax.f32 %v6507_v0, 0.0  ;;  %v3040_v23 = vld [vmem:[#allocation2 + $0x5e8] sm:$0xff] }
 0x4b3   : > { %4436 = vst [vmem:[%s6517_s15 + $0x18] sm:$0xff] %v4372_v33  ;;  %v1673_v4 = vadd.f32 %v7429_v31, %v1464_v49  ;;  %v1676_v35 = vadd.f32 %v7430_v9, %v1467_v61  ;;  %v2607_v53 = vpop.f32.mrf.mxu1  ;;  %v7431_v33 = vld [vmem:[#allocation150_spill] sm:$0xff]  ;;  %v3660_v42 = vadd.f32 %v6490_v54, %v6480_v34  ;;  %v2605_v25 = vadd.f32 %v2604_v14, %v7432_v59  ;;  %v7434_v61 = vld [vmem:[#allocation37_spill] sm:$0xff]  ;;  %v7437_v9 = vld [vmem:[#allocation159_spill] sm:$0xff] }
 0x4b4   : > { %4437 = vst [vmem:[%s6517_s15 + $0x20] sm:$0xff] %v4373_v44  ;;  %v2602_v2 = vadd.f32 %v6488_v18, %v7431_v33  ;;  %v3454_v44 = vadd.f32 %v3453_v37, %v3244_v40  ;;  %v4380_v7 = vmax.f32 %v6509_v19, 0.0  ;;  %v4381_v0 = vmax.f32 %v6511_v57, 0.0  ;;  %v3039_v37 = vld [vmem:[#allocation2 + $0x5e0] sm:$0xff]  ;;  %v7438_v59 = vld [vmem:[#allocation40_spill] sm:$0xff] }
 0x4b5   : > { %4438 = vst [vmem:[%s6517_s15 + $0x28] sm:$0xff] %v4374_v8  ;;  %v3665_v12 = vpop.f32.mrf.mxu0  ;;  %v3457_v8 = vadd.f32 %v3456_v16, %v3247_v36  ;;  %v6603_v34 = vadd.f32 %v3660_v42, %v6454_v41  ;;  %v2784_v54 = vadd.f32 %v2605_v25, %v1673_v4  ;;  %v4382_v14 = vmax.f32 %v6513_v26, 0.0  ;;  %3506 = vmatmul.f32.gmra.mxu3 %v3041_v52  ;;  %v7439_v25 = vld [vmem:[#allocation155_spill] sm:$0xff] }
 0x4b6   : > { %4439 = vst [vmem:[%s6517_s15 + $0x30] sm:$0xff] %v4375_v13  ;;  %v7433_v13 = vld [vmem:[#allocation156_spill] sm:$0xff]  ;;  %v2783_v18 = vadd.f32 %v2602_v2, %v1670_v20  ;;  %v3663_v40 = vadd.f32 %v3662_v28, %v3454_v44  ;;  %3297 = vmatmul.f32.gmra.mxu2 %v3040_v23  ;;  %v4383_v49 = vmax.f32 %v6520_v24, 0.0  ;;  %v4384_v41 = vmax.f32 %v6522_v48, 0.0 }
 0x4b7   : > { %4440 = vst [vmem:[%s6517_s15 + $0x38] sm:$0xff] %v4376_v38  ;;  %v2608_v15 = vadd.f32 %v2607_v53, %v7433_v13  ;;  %v3666_v57 = vadd.f32 %v3665_v12, %v3457_v8  ;;  %3712 = vmatmul.f32.gmra.mxu0 %v3039_v37  ;;  %v7435_v38 = vld [vmem:[#allocation152_spill] sm:$0xff]  ;;  %v4385_v16 = vmax.f32 %v6524_v56, 0.0  ;;  %v4386_v32 = vmax.f32 %v6526_v45, 0.0 }
 0x4b8   : > { %4441 = vst [vmem:[%s6517_s15 + $0x40] sm:$0xff] %v4377_v30  ;;  %v6609_v50 = vadd.f32 %v3663_v40, %v2783_v18  ;;  %v3250_v26 = vpop.f32.mrf.mxu2  ;;  %v1470_v36 = vadd.f32 %v7435_v38, %v7434_v61  ;;  %2657 = vmatmul.f32.gmra.mxu1 %v3039_v37  ;;  %v7436_v30 = vld [vmem:[#allocation154_spill] sm:$0xff]  ;;  %v4387_v4 = vmax.f32 %v6528_v21, 0.0  ;;  %v4388_v53 = vmax.f32 %v6530_v29, 0.0  ;;  %v3042_v2 = vld [vmem:[#allocation2 + $0x5f8] sm:$0xff]  ;;  %v3047_v40 = vld [vmem:[#allocation2 + $0x620] sm:$0xff] }
 0x4b9   : > { %4442 = vst [vmem:[%s6517_s15 + $0x48] sm:$0xff] %v4378_v46  ;;  %v2785_v19 = vadd.f32 %v2608_v15, %v1676_v35  ;;  %v6613_v28 = vadd.f32 %v3666_v57, %v2784_v54  ;;  %v3459_v55 = vpop.f32.mrf.mxu3  ;;  %v3043_v46 = vld [vmem:[#allocation2 + $0x600] sm:$0xff]  ;;  %v4389_v45 = vmax.f32 %v6532_v58, 0.0  ;;  %v4390_v21 = vmax.f32 %v6534_v60, 0.0  ;;  %v7441_v15 = vld [vmem:[#allocation162_spill] sm:$0xff]  ;;  %v3046_v54 = vld [vmem:[#allocation2 + $0x618] sm:$0xff] }
 0x4ba   : > { %4443 = vst [vmem:[%s6517_s15 + $0x50] sm:$0xff] %v4379_v47  ;;  %v3460_v24 = vadd.f32 %v3459_v55, %v3250_v26  ;;  %v1679_v31 = vadd.f32 %v7436_v30, %v1470_v36  ;;  %v3044_v47 = vld [vmem:[#allocation2 + $0x608] sm:$0xff]  ;;  %v4391_v42 = vmax.f32 %v6536_v5, 0.0  ;;  %v4392_v29 = vmax.f32 %v6538_v1, 0.0  ;;  %v7440_v1 = vld [vmem:[#allocation157_spill] sm:$0xff]  ;;  %v7444_v36 = vld [vmem:[#allocation160_spill] sm:$0xff] }
 0x4bb   : > { %4444 = vst [vmem:[%s6517_s15 + $0x58] sm:$0xff] %v4380_v7  ;;  %v2610_v48 = vpop.f32.mrf.mxu1  ;;  %v1473_v23 = vadd.f32 %v7439_v25, %v7438_v59  ;;  %v4393_v52 = vmax.f32 %v6540_v3, 0.0  ;;  %v4394_v7 = vmax.f32 %v6542_v63, 0.0  ;;  %v4395_v13 = vmax.f32 %v6547_v39, 0.0  ;;  %v3045_v39 = vld [vmem:[#allocation2 + $0x610] sm:$0xff]  ;;  %v7443_v26 = vld [vmem:[#allocation158_spill] sm:$0xff] }
 0x4bc   : > { %4445 = vst [vmem:[%s6517_s15 + $0x60] sm:$0xff] %v4381_v0  ;;  %v2611_v35 = vadd.f32 %v2610_v48, %v7437_v9  ;;  %v4396_v37 = vmax.f32 %v6552_v11, 0.0  ;;  %v4397_v63 = vmax.f32 %v6557_v51, 0.0  ;;  %v4398_v57 = vmax.f32 %v6562_v10, 0.0  ;;  %v3050_v48 = vld [vmem:[#allocation2 + $0x638] sm:$0xff]  ;;  %v3053_v59 = vld [vmem:[#allocation2 + $0x650] sm:$0xff] }
 0x4bd   : > { %4446 = vst [vmem:[%s6517_s15 + $0x68] sm:$0xff] %v4382_v14  ;;  %v3668_v20 = vpop.f32.mrf.mxu0  ;;  %3509 = vmatmul.f32.gmra.mxu3 %v3044_v47  ;;  %v1682_v8 = vadd.f32 %v7440_v1, %v1473_v23 }
 0x4be   : > { %4447 = vst [vmem:[%s6517_s15 + $0x70] sm:$0xff] %v4383_v49  ;;  %v3669_v56 = vadd.f32 %v3668_v20, %v3460_v24  ;;  %v2786_v12 = vadd.f32 %v2611_v35, %v1679_v31  ;;  %3300 = vmatmul.f32.gmra.mxu2 %v3043_v46  ;;  %v4399_v49 = vmax.f32 %v6567_v22, 0.0  ;;  %v6666_v20 = vld [vmem:[%s4994_s14 + $0x1f1] sm:$0xff]  ;;  %v7446_v46 = vld [vmem:[#allocation161_spill] sm:$0xff] }
 0x4bf   : > { %4448 = vst [vmem:[%s6517_s15 + $0x78] sm:$0xff] %v4384_v41  ;;  %3715 = vmatmul.f32.gmra.mxu0 %v3042_v2  ;;  %v7442_v41 = vld [vmem:[#allocation43_spill] sm:$0xff] }
 0x4c0   : > { %4449 = vst [vmem:[%s6517_s15 + $0x80] sm:$0xff] %v4385_v16  ;;  %v6629_v33 = vadd.f32 %v3669_v56, %v2785_v19  ;;  %v3253_v58 = vpop.f32.mrf.mxu2  ;;  %2660 = vmatmul.f32.gmra.mxu1 %v3042_v2  ;;  %v1476_v55 = vadd.f32 %v7443_v26, %v7442_v41  ;;  %v7445_v56 = vld [vmem:[#allocation47_spill] sm:$0xff]  ;;  %v7454_v26 = vld [vmem:[#allocation166_spill] sm:$0xff] }
 0x4c1   : > { %4450 = vst [vmem:[%s6517_s15 + $0x88] sm:$0xff] %v4386_v32  ;;  %v3462_v44 = vpop.f32.mrf.mxu3  ;;  %v3049_v32 = vld [vmem:[#allocation2 + $0x630] sm:$0xff]  ;;  %v1479_v47 = vadd.f32 %v7446_v46, %v7445_v56 }
 0x4c2   : > { %4451 = vst [vmem:[%s6517_s15 + $0x90] sm:$0xff] %v4387_v4  ;;  %v3463_v60 = vadd.f32 %v3462_v44, %v3253_v58  ;;  %v1685_v16 = vadd.f32 %v7444_v36, %v1476_v55  ;;  %v3048_v4 = vld [vmem:[#allocation2 + $0x628] sm:$0xff]  ;;  %v7447_v2 = vld [vmem:[#allocation163_spill] sm:$0xff]  ;;  %v7455_v36 = vld [vmem:[#allocation168_spill] sm:$0xff] }
 0x4c3   : > { %4452 = vst [vmem:[%s6517_s15 + $0x98] sm:$0xff] %v4388_v53  ;;  %v2613_v5 = vpop.f32.mrf.mxu1  ;;  %v3052_v44 = vld [vmem:[#allocation2 + $0x648] sm:$0xff]  ;;  %v7453_v41 = vld [vmem:[#allocation55_spill] sm:$0xff] }
 0x4c4   : > { %4453 = vst [vmem:[%s6517_s15 + $0xa0] sm:$0xff] %v4389_v45  ;;  %v2614_v18 = vadd.f32 %v2613_v5, %v7441_v15  ;;  %v818_v45 = vld [vmem:[%s4994_s14 + $0x1f9] sm:$0x7f]  ;;  %v7449_v5 = vld [vmem:[#allocation51_spill] sm:$0xff]  ;;  %v1485_v55 = vadd.f32 %v7454_v26, %v7453_v41 }
 0x4c5   : > { %4454 = vst [vmem:[%s6517_s15 + $0xa8] sm:$0xff] %v4390_v21  ;;  %v3671_v0 = vpop.f32.mrf.mxu0  ;;  %3512 = vmatmul.f32.gmra.mxu3 %v3047_v40  ;;  %v1688_v21 = vadd.f32 %v7447_v2, %v1479_v47  ;;  %v7457_v46 = vld [vmem:[#allocation59_spill] sm:$0xff]  ;;  %v7458_v47 = vld [vmem:[#allocation169_spill] sm:$0xff] }
 0x4c6   : > { %4455 = vst [vmem:[%s6517_s15 + $0xb0] sm:$0xff] %v4391_v42  ;;  %v3672_v3 = vadd.f32 %v3671_v0, %v3463_v60  ;;  %v2787_v14 = vadd.f32 %v2614_v18, %v1682_v8  ;;  %3303 = vmatmul.f32.gmra.mxu2 %v3046_v54  ;;  %v7448_v42 = vld [vmem:[#allocation167_spill] sm:$0xff]  ;;  %v7450_v0 = vld [vmem:[#allocation164_spill] sm:$0xff]  ;;  %v7451_v18 = vld [vmem:[#allocation165_spill] sm:$0xff] }
 0x4c7   : > { %4456 = vst [vmem:[%s6517_s15 + $0xb8] sm:$0xff] %v4392_v29  ;;  %3718 = vmatmul.f32.gmra.mxu0 %v3045_v39  ;;  %v1482_v1 = vadd.f32 %v7450_v0, %v7449_v5  ;;  %v7452_v54 = vld [vmem:[#allocation170_spill] sm:$0xff]  ;;  %v7459_v2 = vld [vmem:[#allocation171_spill] sm:$0xff]  ;;  %v7462_v0 = vld [vmem:[#allocation172_spill] sm:$0xff] }
 0x4c8   : > { %4457 = vst [vmem:[%s6517_s15 + $0xc0] sm:$0xff] %v4393_v52  ;;  %v6651_v19 = vadd.f32 %v3672_v3, %v2786_v12  ;;  %v3256_v11 = vpop.f32.mrf.mxu2  ;;  %2663 = vmatmul.f32.gmra.mxu1 %v3045_v39  ;;  %v3051_v52 = vld [vmem:[#allocation2 + $0x640] sm:$0xff]  ;;  %v7461_v5 = vld [vmem:[#allocation63_spill] sm:$0xff] }
 0x4c9   : > { %4458 = vst [vmem:[%s6517_s15 + $0xc8] sm:$0xff] %v4394_v7  ;;  %v3465_v51 = vpop.f32.mrf.mxu3  ;;  %v1691_v3 = vadd.f32 %v7451_v18, %v1482_v1  ;;  %v1491_v1 = vadd.f32 %v7462_v0, %v7461_v5  ;;  %v7475_v5 = vld [vmem:[#allocation183_spill] sm:$0xff] }
 0x4ca   : > { %4459 = vst [vmem:[%s6517_s15 + $0xd0] sm:$0xff] %v4395_v13  ;;  %v3466_v61 = vadd.f32 %v3465_v51, %v3256_v11 }
 0x4cb   : > { %4460 = vst [vmem:[%s6517_s15 + $0xd8] sm:$0xff] %v4396_v37  ;;  %v2616_v38 = vpop.f32.mrf.mxu1 }
 0x4cc   : > { %4461 = vst [vmem:[%s6517_s15 + $0xe0] sm:$0xff] %v4397_v63  ;;  %v2617_v22 = vadd.f32 %v2616_v38, %v5898_v62  ;;  %v3055_v63 = vld [vmem:[#allocation2 + $0x660] sm:$0xff] }
 0x4cd   : > { %4462 = vst [vmem:[%s6517_s15 + $0xe8] sm:$0xff] %v4398_v57  ;;  %v3674_v10 = vpop.f32.mrf.mxu0  ;;  %3515 = vmatmul.f32.gmra.mxu3 %v3050_v48  ;;  %v3058_v48 = vld [vmem:[#allocation2 + $0x678] sm:$0xff] }
 0x4ce   : > { %4463 = vst [vmem:[%s6517_s15 + $0xf0] sm:$0xff] %v4399_v49  ;;  %v3675_v24 = vadd.f32 %v3674_v10, %v3466_v61  ;;  %v2788_v30 = vadd.f32 %v2617_v22, %v1685_v16  ;;  %3306 = vmatmul.f32.gmra.mxu2 %v3049_v32  ;;  %v3054_v49 = vld [vmem:[#allocation2 + $0x658] sm:$0xff]  ;;  %v1694_v16 = vadd.f32 %v7455_v36, %v1485_v55  ;;  %v7456_v22 = vld [vmem:[#allocation173_spill] sm:$0xff] }
 0x4cf   : > { %3721 = vmatmul.f32.gmra.mxu0 %v3048_v4  ;;  %882 = vst [vmem:[#allocation2 + $0x688] sm:$0x7f] %v818_v45 }
 0x4d0   : > { %v6668_v31 = vadd.f32 %v3675_v24, %v2787_v14  ;;  %v3259_v9 = vpop.f32.mrf.mxu2  ;;  %2666 = vmatmul.f32.gmra.mxu1 %v3048_v4  ;;  %v3056_v14 = vld [vmem:[#allocation2 + $0x668] sm:$0xff] }
 0x4d1   : > { %v3468_v35 = vpop.f32.mrf.mxu3 }
 0x4d2   : > { %v3469_v53 = vadd.f32 %v3468_v35, %v3259_v9 }
 0x4d3   : > { %v2619_v62 = vpop.f32.mrf.mxu1 }
 0x4d4   : > { %v2620_v29 = vadd.f32 %v2619_v62, %v7448_v42  ;;  %v7460_v42 = vld [vmem:[#allocation176_spill] sm:$0xff] }
 0x4d5   : > { %v3677_v12 = vpop.f32.mrf.mxu0  ;;  %3518 = vmatmul.f32.gmra.mxu3 %v3053_v59 }
 0x4d6   : > { %v3678_v58 = vadd.f32 %v3677_v12, %v3469_v53  ;;  %v2789_v25 = vadd.f32 %v2620_v29, %v1688_v21  ;;  %3309 = vmatmul.f32.gmra.mxu2 %v3052_v44  ;;  %v1488_v53 = vadd.f32 %v7458_v47, %v7457_v46  ;;  %v7471_v47 = vld [vmem:[#allocation180_spill] sm:$0xff] }
 0x4d7   : > { %3724 = vmatmul.f32.gmra.mxu0 %v3051_v52 }
 0x4d8   : > { %v6675_v23 = vadd.f32 %v3678_v58, %v2788_v30  ;;  %v3262_v60 = vpop.f32.mrf.mxu2  ;;  %2669 = vmatmul.f32.gmra.mxu1 %v3051_v52  ;;  %v3059_v30 = vld [vmem:[#allocation2 + $0x680] sm:$0xff]  ;;  %v1697_v21 = vadd.f32 %v7459_v2, %v1488_v53 }
 0x4d9   : > { %v3471_v7 = vpop.f32.mrf.mxu3  ;;  %v4735_v52 = vld [vmem:[#allocation2] sm:$0xff] }
 0x4da   : > { %v3472_v8 = vadd.f32 %v3471_v7, %v3262_v60 }
 0x4db   : > { %v2622_v13 = vpop.f32.mrf.mxu1 }
 0x4dc   : > { %v2623_v40 = vadd.f32 %v2622_v13, %v7452_v54 }
 0x4dd   : > { %v3680_v15 = vpop.f32.mrf.mxu0  ;;  %3521 = vmatmul.f32.gmra.mxu3 %v3056_v14 }
 0x4de   : > { %v3681_v37 = vadd.f32 %v3680_v15, %v3472_v8  ;;  %v2790_v39 = vadd.f32 %v2623_v40, %v1691_v3  ;;  %3312 = vmatmul.f32.gmra.mxu2 %v3055_v63  ;;  %v7463_v15 = vld [vmem:[#allocation174_spill] sm:$0xff]  ;;  %v7464_v3 = vld [vmem:[#allocation179_spill] sm:$0xff] }
 0x4df   : > { %3727 = vmatmul.f32.gmra.mxu0 %v3054_v49  ;;  %v1700_v18 = vadd.f32 %v7463_v15, %v1491_v1  ;;  %v7476_v1 = vld [vmem:[#allocation188_spill] sm:$0xff] }
 0x4e0   : > { %v6681_v57 = vadd.f32 %v3681_v37, %v2789_v25  ;;  %v3265_v11 = vpop.f32.mrf.mxu2  ;;  %2672 = vmatmul.f32.gmra.mxu1 %v3054_v49  ;;  %v3060_v25 = vld [vmem:[#allocation2 + $0x688] sm:$0xff] }
 0x4e1   : > { %v3474_v51 = vpop.f32.mrf.mxu3  ;;  %v7465_v49 = vld [vmem:[#allocation18_spill] sm:$0xff] }
 0x4e2   : > { %v3475_v61 = vadd.f32 %v3474_v51, %v3265_v11  ;;  %v7466_v11 = vld [vmem:[#allocation175_spill] sm:$0xff] }
 0x4e3   : > { %v2625_v38 = vpop.f32.mrf.mxu1  ;;  %v1494_v51 = vadd.f32 %v7466_v11, %v7465_v49  ;;  %v7479_v11 = vld [vmem:[#allocation186_spill] sm:$0xff] }
 0x4e4   : > { %v2626_v24 = vadd.f32 %v2625_v38, %v7456_v22 }
 0x4e5   : > { %v3683_v10 = vpop.f32.mrf.mxu0  ;;  %3524 = vmatmul.f32.gmra.mxu3 %v3059_v30  ;;  %v7469_v30 = vld [vmem:[#allocation21_spill] sm:$0xff] }
 0x4e6   : > { %v3684_v32 = vadd.f32 %v3683_v10, %v3475_v61  ;;  %v2791_v4 = vadd.f32 %v2626_v24, %v1694_v16  ;;  %3315 = vmatmul.f32.gmra.mxu2 %v3058_v48  ;;  %v7467_v61 = vld [vmem:[#allocation177_spill] sm:$0xff]  ;;  %v7468_v10 = vld [vmem:[#allocation182_spill] sm:$0xff] }
 0x4e7   : > { %3730 = vmatmul.f32.gmra.mxu0 %v6666_v20  ;;  %v1703_v38 = vadd.f32 %v7467_v61, %v1494_v51 }
 0x4e8   : > { %v6687_v9 = vadd.f32 %v3684_v32, %v2790_v39  ;;  %v3268_v35 = vpop.f32.mrf.mxu2  ;;  %2675 = vmatmul.f32.gmra.mxu1 %v6666_v20 }
 0x4e9   : > { %v3477_v56 = vpop.f32.mrf.mxu3 }
 0x4ea   : > { %v3478_v45 = vadd.f32 %v3477_v56, %v3268_v35 }
 0x4eb   : > { %v2628_v62 = vpop.f32.mrf.mxu1 }
 0x4ec   : > { %v2629_v29 = vadd.f32 %v2628_v62, %v7460_v42 }
 0x4ed   : > { %v3686_v12 = vpop.f32.mrf.mxu0  ;;  %3527 = vmatmul.f32.gmra.mxu3 %v4735_v52 }
 0x4ee   : > { %v3687_v58 = vadd.f32 %v3686_v12, %v3478_v45  ;;  %v2792_v44 = vadd.f32 %v2629_v29, %v1697_v21  ;;  %3318 = vmatmul.f32.gmra.mxu2 %v4735_v52  ;;  %v7472_v45 = vld [vmem:[#allocation185_spill] sm:$0xff] }
 0x4ef   : > { %3733 = vmatmul.f32.gmra.mxu0 %v3060_v25 }
 0x4f0   : > { %v6695_v59 = vadd.f32 %v3687_v58, %v2791_v4  ;;  %v3271_v60 = vpop.f32.mrf.mxu2  ;;  %2678 = vmatmul.f32.gmra.mxu1 %v3060_v25  ;;  %v7470_v4 = vld [vmem:[#allocation178_spill] sm:$0xff]  ;;  %v7474_v25 = vld [vmem:[#allocation181_spill] sm:$0xff] }
 0x4f1   : > { %v3480_v7 = vpop.f32.mrf.mxu3  ;;  %v1497_v35 = vadd.f32 %v7470_v4, %v7469_v30 }
 0x4f2   : > { %v3481_v8 = vadd.f32 %v3480_v7, %v3271_v60 }
 0x4f3   : > { %v2631_v20 = vpop.f32.mrf.mxu1  ;;  %v1706_v53 = vadd.f32 %v7471_v47, %v1497_v35  ;;  %v7483_v35 = vld [vmem:[#allocation189_spill] sm:$0xff] }
 0x4f4   : > { %v2632_v54 = vadd.f32 %v2631_v20, %v7464_v3 }
 0x4f5   : > { %v3689_v13 = vpop.f32.mrf.mxu0  ;;  %3530 = vmatmul.f32.gmra.mxu3 %v4735_v52 }
 0x4f6   : > { %v3690_v40 = vadd.f32 %v3689_v13, %v3481_v8  ;;  %v2793_v37 = vadd.f32 %v2632_v54, %v1700_v18  ;;  %3321 = vmatmul.f32.gmra.mxu2 %v4735_v52  ;;  %v7477_v54 = vld [vmem:[#allocation27_spill] sm:$0xff] }
 0x4f7   : > { %3736 = vmatmul.f32.gmra.mxu0 %v4735_v52 }
 0x4f8   : > { %v6701_v63 = vadd.f32 %v3690_v40, %v2792_v44  ;;  %v3274_v14 = vpop.f32.mrf.mxu2  ;;  %v7473_v44 = vld [vmem:[#allocation24_spill] sm:$0xff] }
 0x4f9   : > { %v3483_v39 = vpop.f32.mrf.mxu3  ;;  %v7478_v40 = vld [vmem:[#allocation184_spill] sm:$0xff] }
 0x4fa   : > { %v3484_v41 = vadd.f32 %v3483_v39, %v3274_v14 }
 0x4fb   : > { %v2634_v26 = vpop.f32.mrf.mxu1 }
 0x4fc   : > { %v2635_v36 = vadd.f32 %v2634_v26, %v7468_v10 }
 0x4fd   : > { %v3692_v55 = vpop.f32.mrf.mxu0 }
 0x4fe   : > { %v3693_v16 = vadd.f32 %v3692_v55, %v3484_v41  ;;  %v2794_v22 = vadd.f32 %v2635_v36, %v1703_v38  ;;  %v7480_v41 = vld [vmem:[#allocation191_spill] sm:$0xff] }
 0x4ff   : > { %3739 = vmatmul.f32.gmra.mxu0 %v4735_v52  ;;  %v1500_v52 = vadd.f32 %v7474_v25, %v7473_v44 }
 0x500   : > { %v6707_v24 = vadd.f32 %v3693_v16, %v2793_v37  ;;  %v3277_v32 = vpop.f32.mrf.mxu2  ;;  %v1503_v37 = vadd.f32 %v7478_v40, %v7477_v54  ;;  %v7481_v16 = vld [vmem:[#allocation30_spill] sm:$0xff]  ;;  %v7490_v54 = vld [vmem:[#allocation193_spill] sm:$0xff] }
 0x501   : > { %v3486_v48 = vpop.f32.mrf.mxu3  ;;  %v1709_v0 = vadd.f32 %v7475_v5, %v1500_v52  ;;  %v7488_v5 = vld [vmem:[#allocation197_spill] sm:$0xff] }
 0x502   : > { %v3487_v56 = vadd.f32 %v3486_v48, %v3277_v32  ;;  %v1712_v51 = vadd.f32 %v7479_v11, %v1503_v37  ;;  %v4106_v11 = vmul.f32 %v6421_v27, %v6421_v27 }
 0x503   : > { %v2637_v46 = vpop.f32.mrf.mxu1 }
 0x504   : > { %v2638_v62 = vadd.f32 %v2637_v46, %v7472_v45  ;;  %v7484_v46 = vld [vmem:[#allocation194_spill] sm:$0xff] }
 0x505   : > { %v3695_v12 = vpop.f32.mrf.mxu0 }
 0x506   : > { %v3696_v2 = vadd.f32 %v3695_v12, %v3487_v56  ;;  %v2795_v21 = vadd.f32 %v2638_v62, %v1706_v53 }
 0x508   : > { %v6713_v42 = vadd.f32 %v3696_v2, %v2794_v22  ;;  %v3280_v29 = vpop.f32.mrf.mxu2  ;;  %v7482_v22 = vld [vmem:[#allocation187_spill] sm:$0xff] }
 0x509   : > { %v3489_v58 = vpop.f32.mrf.mxu3  ;;  %v1506_v32 = vadd.f32 %v7482_v22, %v7481_v16  ;;  %v4108_v22 = vmul.f32 %v6456_v6, %v6456_v6 }
 0x50a   : > { %v3490_v60 = vadd.f32 %v3489_v58, %v3280_v29  ;;  %v7486_v29 = vld [vmem:[#allocation190_spill] sm:$0xff] }
 0x50b   : > { %v2640_v7 = vpop.f32.mrf.mxu1  ;;  %v1715_v56 = vadd.f32 %v7483_v35, %v1506_v32 }
 0x50c   : > { %v2641_v8 = vadd.f32 %v2640_v7, %v7476_v1 }
 0x50d   : > { %v3698_v20 = vpop.f32.mrf.mxu0 }
 0x50e   : > { %v2796_v13 = vadd.f32 %v2641_v8, %v1709_v0  ;;  %v3699_v15 = vadd.f32 %v3698_v20, %v3490_v60  ;;  %v7487_v60 = vld [vmem:[#allocation192_spill] sm:$0xff] }
 0x510   : > { %v6719_v18 = vadd.f32 %v3699_v15, %v2795_v21  ;;  %v3283_v3 = vpop.f32.mrf.mxu2  ;;  %v7485_v21 = vld [vmem:[#allocation33_spill] sm:$0xff] }
 0x511   : > { %v3492_v14 = vpop.f32.mrf.mxu3  ;;  %v1509_v58 = vadd.f32 %v7486_v29, %v7485_v21  ;;  %v4110_v29 = vmul.f32 %v6609_v50, %v6609_v50 }
 0x512   : > { %v3493_v39 = vadd.f32 %v3492_v14, %v3283_v3  ;;  %v7489_v3 = vld [vmem:[#allocation36_spill] sm:$0xff] }
 0x513   : > { %v2643_v49 = vpop.f32.mrf.mxu1  ;;  %v1718_v7 = vadd.f32 %v7487_v60, %v1509_v58  ;;  %v1512_v40 = vadd.f32 %v7490_v54, %v7489_v3  ;;  %v7496_v58 = vld [vmem:[#allocation203_spill] sm:$0xff]  ;;  %v4111_v60 = vmul.f32 %v6613_v28, %v6613_v28  ;;  %v7497_v54 = vld [vmem:[#allocation42_spill] sm:$0xff] }
 0x514   : > { %v2644_v26 = vadd.f32 %v2643_v49, %v7480_v41 }
 0x515   : > { %v3701_v55 = vpop.f32.mrf.mxu0 }
 0x516   : > { %v2797_v61 = vadd.f32 %v2644_v26, %v1712_v51  ;;  %v3702_v38 = vadd.f32 %v3701_v55, %v3493_v39  ;;  %v7491_v39 = vld [vmem:[#allocation195_spill] sm:$0xff]  ;;  %v7492_v51 = vld [vmem:[#allocation200_spill] sm:$0xff]  ;;  %v4105_v26 = vmul.f32 %v6390_v17, %v6390_v17  ;;  %v4107_v55 = vmul.f32 %v6431_v43, %v6431_v43 }
 0x517   : > { %v1721_v49 = vadd.f32 %v7491_v39, %v1512_v40  ;;  %v7498_v40 = vld [vmem:[#allocation199_spill] sm:$0xff] }
 0x518   : > { %v6725_v10 = vadd.f32 %v3702_v38, %v2796_v13  ;;  %v3286_v36 = vpop.f32.mrf.mxu2  ;;  %v4174_v16 = vadd.f32 %v4106_v11, %v4105_v26 }
 0x519   : > { %v3495_v48 = vpop.f32.mrf.mxu3 }
 0x51a   : > { %v3496_v30 = vadd.f32 %v3495_v48, %v3286_v36  ;;  %v4036_v36 = vadd.f32 %v6421_v27, %v6390_v17 }
 0x51b   : > { %v2646_v4 = vpop.f32.mrf.mxu1 }
 0x51c   : > { %v2647_v47 = vadd.f32 %v2646_v4, %v7484_v46  ;;  %v4037_v32 = vadd.f32 %v4036_v36, %v6431_v43  ;;  %v7494_v4 = vld [vmem:[#allocation196_spill] sm:$0xff]  ;;  %v4109_v46 = vmul.f32 %v6603_v34, %v6603_v34 }
 0x51d   : > { %v3704_v53 = vpop.f32.mrf.mxu0 }
 0x51e   : > { %v2798_v45 = vadd.f32 %v2647_v47, %v1715_v56  ;;  %v3705_v62 = vadd.f32 %v3704_v53, %v3496_v30  ;;  %v7493_v30 = vld [vmem:[#allocation39_spill] sm:$0xff]  ;;  %v4175_v56 = vadd.f32 %v4174_v16, %v4107_v55  ;;  %v4038_v53 = vadd.f32 %v4037_v32, %v6456_v6  ;;  %v7499_v55 = vld [vmem:[#allocation201_spill] sm:$0xff]  ;;  %v7500_v32 = vld [vmem:[#allocation206_spill] sm:$0xff] }
 0x51f   : > { %v1515_v35 = vadd.f32 %v7494_v4, %v7493_v30 }
 0x520   : > { %v6731_v12 = vadd.f32 %v3705_v62, %v2797_v61  ;;  %v3289_v2 = vpop.f32.mrf.mxu2  ;;  %v7495_v62 = vld [vmem:[#allocation198_spill] sm:$0xff]  ;;  %v4176_v21 = vadd.f32 %v4175_v56, %v4108_v22  ;;  %v4114_v22 = vmul.f32 %v6668_v31, %v6668_v31  ;;  %v4115_v56 = vmul.f32 %v6675_v23, %v6675_v23 }
 0x521   : > { %v3498_v44 = vpop.f32.mrf.mxu3 }
 0x522   : > { %v3499_v25 = vadd.f32 %v3498_v44, %v3289_v2  ;;  %v1724_v2 = vadd.f32 %v7495_v62, %v1515_v35 }
 0x523   : > { %v2649_v52 = vpop.f32.mrf.mxu1 }
 0x524   : > { %v2650_v0 = vadd.f32 %v2649_v52, %v7488_v5  ;;  %v4177_v52 = vadd.f32 %v4176_v21, %v4109_v46 }
 0x525   : > { %v3707_v8 = vpop.f32.mrf.mxu0 }
 0x526   : > { %v6737_v1 = vadd.f32 %v2650_v0, %v1718_v7  ;;  %v3708_v20 = vadd.f32 %v3707_v8, %v3499_v25  ;;  %v4039_v25 = vadd.f32 %v4038_v53, %v6603_v34  ;;  %v4178_v8 = vadd.f32 %v4177_v52, %v4110_v29  ;;  %v7501_v29 = vld [vmem:[#allocation45_spill] sm:$0xff] }
 0x527   : > { %v4117_v52 = vmul.f32 %v6687_v9, %v6687_v9 }
 0x528   : > { %v6739_v13 = vadd.f32 %v3708_v20, %v2798_v45  ;;  %v6741_v15 = vpop.f32.mrf.mxu2  ;;  %v4040_v0 = vadd.f32 %v4039_v25, %v6609_v50  ;;  %v4112_v20 = vmul.f32 %v6629_v33, %v6629_v33  ;;  %v4179_v39 = vadd.f32 %v4178_v8, %v4111_v60 }
 0x529   : > { %v6745_v37 = vpop.f32.mrf.mxu3 }
 0x52a   : > { %v4041_v3 = vadd.f32 %v4040_v0, %v6613_v28  ;;  %v4180_v16 = vadd.f32 %v4179_v39, %v4112_v20  ;;  %v7504_v39 = vld [vmem:[#allocation209_spill] sm:$0xff] }
 0x52b   : > { %v2652_v14 = vpop.f32.mrf.mxu1 }
 0x52c   : > { %v2653_v41 = vadd.f32 %v2652_v14, %v7492_v51  ;;  %v1518_v14 = vadd.f32 %v7498_v40, %v7497_v54 }
 0x52d   : > { %v6757_v38 = vpop.f32.mrf.mxu0 }
 0x52e   : > { %v6755_v61 = vadd.f32 %v2653_v41, %v1721_v49  ;;  %v4113_v49 = vmul.f32 %v6651_v19, %v6651_v19  ;;  %v4042_v41 = vadd.f32 %v4041_v3, %v6629_v33  ;;  %v1727_v36 = vadd.f32 %v7499_v55, %v1518_v14  ;;  %v7503_v3 = vld [vmem:[#allocation204_spill] sm:$0xff] }
 0x52f   : > { %v4118_v14 = vmul.f32 %v6695_v59, %v6695_v59  ;;  %v4119_v55 = vmul.f32 %v6701_v63, %v6701_v63 }
 0x530   : > { %v4043_v4 = vadd.f32 %v4042_v41, %v6651_v19  ;;  %v4181_v35 = vadd.f32 %v4180_v16, %v4113_v49 }
 0x531   : > { %v6764_v48 = vpop.f32.mrf.mxu2  ;;  %v3504_v47 = vpop.f32.mrf.mxu3 }
 0x532   : > { %v4182_v62 = vadd.f32 %v4181_v35, %v4114_v22  ;;  %v7505_v35 = vld [vmem:[#allocation49_spill] sm:$0xff] }
 0x533   : > { %v2655_v45 = vpop.f32.mrf.mxu1 }
 0x534   : > { %v2656_v44 = vadd.f32 %v2655_v45, %v7496_v58  ;;  %v4044_v45 = vadd.f32 %v4043_v4, %v6668_v31  ;;  %v7502_v58 = vld [vmem:[#allocation202_spill] sm:$0xff]  ;;  %v4183_v25 = vadd.f32 %v4182_v62, %v4115_v56  ;;  %v3502_v4 = vadd.f32 %v6745_v37, %v6741_v15  ;;  %v7506_v56 = vld [vmem:[#allocation205_spill] sm:$0xff] }
 0x535   : > { %v6780_v5 = vpop.f32.mrf.mxu0  ;;  %v4122_v15 = vmul.f32 %v6719_v18, %v6719_v18 }
 0x536   : > { %v6778_v7 = vadd.f32 %v2656_v44, %v1724_v2  ;;  %v4116_v2 = vmul.f32 %v6681_v57, %v6681_v57  ;;  %v4045_v21 = vadd.f32 %v4044_v45, %v6675_v23  ;;  %v1521_v44 = vadd.f32 %v7502_v58, %v7501_v29 }
 0x537   : > { %v1524_v45 = vadd.f32 %v7506_v56, %v7505_v35  ;;  %v3505_v29 = vadd.f32 %v3504_v47, %v6764_v48  ;;  %v3711_v37 = vadd.f32 %v6757_v38, %v3502_v4  ;;  %v4123_v48 = vmul.f32 %v6725_v10, %v6725_v10  ;;  %v7509_v35 = vld [vmem:[#allocation53_spill] sm:$0xff]  ;;  %v7510_v56 = vld [vmem:[#allocation208_spill] sm:$0xff] }
 0x538   : > { %v4046_v8 = vadd.f32 %v4045_v21, %v6681_v57  ;;  %v1730_v54 = vadd.f32 %v7503_v3, %v1521_v44  ;;  %v4184_v40 = vadd.f32 %v4183_v25, %v4116_v2  ;;  %v4121_v21 = vmul.f32 %v6713_v42, %v6713_v42  ;;  %v7507_v25 = vld [vmem:[#allocation207_spill] sm:$0xff] }
 0x539   : > { %v3298_v11 = vpop.f32.mrf.mxu2  ;;  %v3507_v51 = vpop.f32.mrf.mxu3  ;;  %v3714_v47 = vadd.f32 %v6780_v5, %v3505_v29  ;;  %v4124_v38 = vmul.f32 %v6731_v12, %v6731_v12 }
 0x53a   : > { %v4047_v41 = vadd.f32 %v4046_v8, %v6687_v9 }
 0x53b   : > { %v2658_v26 = vpop.f32.mrf.mxu1 }
 0x53c   : > { %v2659_v30 = vadd.f32 %v2658_v26, %v7500_v32  ;;  %v4185_v26 = vadd.f32 %v4184_v40, %v4117_v52  ;;  %v4048_v22 = vadd.f32 %v4047_v41, %v6695_v59  ;;  %v1733_v52 = vadd.f32 %v7507_v25, %v1524_v45 }
 0x53d   : > { %v3716_v53 = vpop.f32.mrf.mxu0  ;;  %v1527_v45 = vadd.f32 %v7510_v56, %v7509_v35 }
 0x53e   : > { %v6798_v46 = vadd.f32 %v2659_v30, %v1727_v36  ;;  %v4186_v32 = vadd.f32 %v4185_v26, %v4118_v14  ;;  %v4120_v30 = vmul.f32 %v6707_v24, %v6707_v24  ;;  %v4049_v62 = vadd.f32 %v4048_v22, %v6701_v63 }
 0x540   : > { %v4187_v2 = vadd.f32 %v4186_v32, %v4119_v55  ;;  %v4050_v8 = vadd.f32 %v4049_v62, %v6707_v24  ;;  %v4125_v62 = vmul.f32 %v6739_v13, %v6739_v13 }
 0x541   : > { %v3301_v60 = vpop.f32.mrf.mxu2  ;;  %v3510_v0 = vpop.f32.mrf.mxu3 }
 0x542   : > { %v4188_v3 = vadd.f32 %v4187_v2, %v4120_v30  ;;  %v4051_v14 = vadd.f32 %v4050_v8, %v6713_v42  ;;  %v3511_v22 = vadd.f32 %v3510_v0, %v3301_v60  ;;  %v6841_v30 = vadd.f32 %v3711_v37, %v6737_v1  ;;  %v7512_v8 = vld [vmem:[#allocation215_spill] sm:$0xff] }
 0x543   : > { %v2661_v20 = vpop.f32.mrf.mxu1  ;;  %v6849_v60 = vadd.f32 %v3714_v47, %v6755_v61 }
 0x544   : > { %v2662_v49 = vadd.f32 %v2661_v20, %v7504_v39  ;;  %v3508_v39 = vadd.f32 %v3507_v51, %v3298_v11  ;;  %v4052_v55 = vadd.f32 %v4051_v14, %v6719_v18 }
 0x545   : > { %v3719_v16 = vpop.f32.mrf.mxu0 }
 0x546   : > { %v2803_v36 = vadd.f32 %v2662_v49, %v1730_v54  ;;  %v7508_v54 = vld [vmem:[#allocation212_spill] sm:$0xff]  ;;  %v4189_v49 = vadd.f32 %v4188_v3, %v4121_v21  ;;  %v4053_v11 = vadd.f32 %v4052_v55, %v6725_v10  ;;  %v3717_v51 = vadd.f32 %v3716_v53, %v3508_v39 }
 0x547   : > { %v3720_v1 = vadd.f32 %v3719_v16, %v3511_v22  ;;  %v4127_v16 = vmul.f32 %v6849_v60, %v6849_v60  ;;  %v7514_v22 = vld [vmem:[#allocation211_spill] sm:$0xff] }
 0x548   : > { %v4190_v32 = vadd.f32 %v4189_v49, %v4122_v15  ;;  %v4054_v21 = vadd.f32 %v4053_v11, %v6731_v12  ;;  %v6858_v61 = vadd.f32 %v3717_v51, %v6778_v7 }
 0x549   : > { %v3304_v58 = vpop.f32.mrf.mxu2  ;;  %v3513_v44 = vpop.f32.mrf.mxu3  ;;  %v6864_v39 = vadd.f32 %v3720_v1, %v6798_v46 }
 0x54a   : > { %v3514_v4 = vadd.f32 %v3513_v44, %v3304_v58  ;;  %v4191_v5 = vadd.f32 %v4190_v32, %v4123_v48  ;;  %v4126_v44 = vmul.f32 %v6841_v30, %v6841_v30  ;;  %v4055_v3 = vadd.f32 %v4054_v21, %v6739_v13 }
 0x54b   : > { %v2664_v20 = vpop.f32.mrf.mxu1  ;;  %v4128_v7 = vmul.f32 %v6858_v61, %v6858_v61  ;;  %v4129_v46 = vmul.f32 %v6864_v39, %v6864_v39 }
 0x54c   : > { %v2665_v40 = vadd.f32 %v2664_v20, %v7508_v54  ;;  %v4192_v58 = vadd.f32 %v4191_v5, %v4124_v38  ;;  %v4056_v14 = vadd.f32 %v4055_v3, %v6841_v30  ;;  %v7515_v5 = vld [vmem:[#allocation213_spill] sm:$0xff] }
 0x54d   : > { %v3722_v26 = vpop.f32.mrf.mxu0  ;;  %v7517_v3 = vld [vmem:[#allocation61_spill] sm:$0xff] }
 0x54e   : > { %v2804_v41 = vadd.f32 %v2665_v40, %v1733_v52  ;;  %v7511_v52 = vld [vmem:[#allocation210_spill] sm:$0xff]  ;;  %v3723_v15 = vadd.f32 %v3722_v26, %v3514_v4  ;;  %v4193_v37 = vadd.f32 %v4192_v58, %v4125_v62  ;;  %v4057_v47 = vadd.f32 %v4056_v14, %v6849_v60  ;;  %v7513_v26 = vld [vmem:[#allocation57_spill] sm:$0xff] }
 0x54f   : > { %v1736_v53 = vadd.f32 %v7511_v52, %v1527_v45  ;;  %v1530_v32 = vadd.f32 %v7514_v22, %v7513_v26  ;;  %v7519_v26 = vld [vmem:[#allocation216_spill] sm:$0xff] }
 0x550   : > { %v4194_v48 = vadd.f32 %v4193_v37, %v4126_v44  ;;  %v6869_v55 = vadd.f32 %v3723_v15, %v2803_v36  ;;  %v4058_v4 = vadd.f32 %v4057_v47, %v6858_v61  ;;  %v7518_v15 = vld [vmem:[#allocation214_spill] sm:$0xff] }
 0x551   : > { %v3307_v0 = vpop.f32.mrf.mxu2  ;;  %v3516_v2 = vpop.f32.mrf.mxu3  ;;  %v1739_v62 = vadd.f32 %v7515_v5, %v1530_v32  ;;  %v1533_v37 = vadd.f32 %v7518_v15, %v7517_v3  ;;  %v7520_v32 = vld [vmem:[#allocation221_spill] sm:$0xff] }
 0x552   : > { %v3517_v29 = vadd.f32 %v3516_v2, %v3307_v0  ;;  %v4195_v38 = vadd.f32 %v4194_v48, %v4127_v16  ;;  %v7516_v0 = vld [vmem:[#allocation218_spill] sm:$0xff]  ;;  %v4059_v21 = vadd.f32 %v4058_v4, %v6864_v39  ;;  %v4130_v1 = vmul.f32 %v6869_v55, %v6869_v55  ;;  %v7525_v15 = vld [vmem:[#allocation65_spill] sm:$0xff] }
 0x553   : > { %v2667_v25 = vpop.f32.mrf.mxu1  ;;  %v1742_v22 = vadd.f32 %v7519_v26, %v1533_v37  ;;  %v7526_v37 = vld [vmem:[#allocation220_spill] sm:$0xff]  ;;  %v7527_v26 = vld [vmem:[#allocation222_spill] sm:$0xff] }
 0x554   : > { %v2668_v20 = vadd.f32 %v2667_v25, %v7512_v8  ;;  %v4196_v2 = vadd.f32 %v4195_v38, %v4128_v7 }
 0x555   : > { %v3725_v40 = vpop.f32.mrf.mxu0 }
 0x556   : > { %v2805_v54 = vadd.f32 %v2668_v20, %v1736_v53  ;;  %v3726_v49 = vadd.f32 %v3725_v40, %v3517_v29  ;;  %v4197_v52 = vadd.f32 %v4196_v2, %v4129_v46  ;;  %v4060_v53 = vadd.f32 %v4059_v21, %v6869_v55 }
 0x558   : > { %v6876_v35 = vadd.f32 %v3726_v49, %v2804_v41  ;;  %v4198_v44 = vadd.f32 %v4197_v52, %v4130_v1 }
 0x559   : > { %v3310_v11 = vpop.f32.mrf.mxu2  ;;  %v3519_v51 = vpop.f32.mrf.mxu3 }
 0x55a   : > { %v3520_v56 = vadd.f32 %v3519_v51, %v3310_v11  ;;  %v4131_v41 = vmul.f32 %v6876_v35, %v6876_v35  ;;  %v4061_v8 = vadd.f32 %v4060_v53, %v6876_v35  ;;  %v7524_v53 = vld [vmem:[#allocation223_spill] sm:$0xff] }
 0x55b   : > { %v2670_v45 = vpop.f32.mrf.mxu1 }
 0x55c   : > { %v2671_v36 = vadd.f32 %v2670_v45, %v7516_v0  ;;  %v4199_v14 = vadd.f32 %v4198_v44, %v4131_v41  ;;  %v7522_v45 = vld [vmem:[#allocation217_spill] sm:$0xff] }
 0x55d   : > { %v3728_v25 = vpop.f32.mrf.mxu0 }
 0x55e   : > { %v2806_v29 = vadd.f32 %v2671_v36, %v1739_v62  ;;  %v3729_v58 = vadd.f32 %v3728_v25, %v3520_v56  ;;  %v7521_v56 = vld [vmem:[#allocation64_spill] sm:$0xff]  ;;  %v7523_v25 = vld [vmem:[#allocation219_spill] sm:$0xff] }
 0x55f   : > { %v1536_v5 = vadd.f32 %v7522_v45, %v7521_v56 }
 0x560   : > { %v6887_v20 = vadd.f32 %v3729_v58, %v2805_v54 }
 0x561   : > { %v3313_v16 = vpop.f32.mrf.mxu2  ;;  %v3522_v40 = vpop.f32.mrf.mxu3  ;;  %v1745_v52 = vadd.f32 %v7523_v25, %v1536_v5 }
 0x562   : > { %v4062_v49 = vadd.f32 %v4061_v8, %v6887_v20  ;;  %v4132_v48 = vmul.f32 %v6887_v20, %v6887_v20  ;;  %v3523_v47 = vadd.f32 %v3522_v40, %v3313_v16  ;;  %v1539_v16 = vadd.f32 %v7526_v37, %v7525_v15 }
 0x563   : > { %v2673_v7 = vpop.f32.mrf.mxu1 }
 0x564   : > { %v2674_v38 = vadd.f32 %v2673_v7, %v7520_v32  ;;  %v4200_v11 = vadd.f32 %v4199_v14, %v4132_v48  ;;  %v7528_v32 = vld [vmem:[#allocation224_spill] sm:$0xff] }
 0x565   : > { %v3731_v51 = vpop.f32.mrf.mxu0 }
 0x566   : > { %v2807_v54 = vadd.f32 %v2674_v38, %v1742_v22  ;;  %v3732_v4 = vadd.f32 %v3731_v51, %v3523_v47  ;;  %v1748_v22 = vadd.f32 %v7527_v26, %v1539_v16 }
 0x568   : > { %v6896_v46 = vadd.f32 %v3732_v4, %v2806_v29 }
 0x569   : > { %v3316_v62 = vpop.f32.mrf.mxu2  ;;  %v3525_v0 = vpop.f32.mrf.mxu3 }
 0x56a   : > { %v4063_v36 = vadd.f32 %v4062_v49, %v6896_v46  ;;  %v4133_v2 = vmul.f32 %v6896_v46, %v6896_v46  ;;  %v3526_v21 = vadd.f32 %v3525_v0, %v3316_v62 }
 0x56b   : > { %v2676_v1 = vpop.f32.mrf.mxu1 }
 0x56c   : > { %v2677_v41 = vadd.f32 %v2676_v1, %v7524_v53  ;;  %v4201_v58 = vadd.f32 %v4200_v11, %v4133_v2 }
 0x56d   : > { %v3734_v29 = vpop.f32.mrf.mxu0 }
 0x56e   : > { %v2808_v44 = vadd.f32 %v2677_v41, %v1745_v52  ;;  %v3735_v8 = vadd.f32 %v3734_v29, %v3526_v21 }
 0x570   : > { %v6905_v3 = vadd.f32 %v3735_v8, %v2807_v54 }
 0x571   : > { %v3319_v40 = vpop.f32.mrf.mxu2  ;;  %v3528_v14 = vpop.f32.mrf.mxu3 }
 0x572   : > { %v4064_v49 = vadd.f32 %v4063_v36, %v6905_v3  ;;  %v4134_v48 = vmul.f32 %v6905_v3, %v6905_v3  ;;  %v3529_v47 = vadd.f32 %v3528_v14, %v3319_v40 }
 0x573   : > { %v2679_v7 = vpop.f32.mrf.mxu1 }
 0x574   : > { %v2680_v38 = vadd.f32 %v2679_v7, %v7528_v32  ;;  %v4202_v11 = vadd.f32 %v4201_v58, %v4134_v48 }
 0x575   : > { %v3737_v54 = vpop.f32.mrf.mxu0 }
 0x576   : > { %v2809_v51 = vadd.f32 %v2680_v38, %v1748_v22  ;;  %v3738_v4 = vadd.f32 %v3737_v54, %v3529_v47 }
 0x578   : > { %v6914_v56 = vadd.f32 %v3738_v4, %v2808_v44 }
 0x579   : > { %v3322_v45 = vpop.f32.mrf.mxu2  ;;  %v3531_v5 = vpop.f32.mrf.mxu3 }
 0x57a   : > { %v4065_v62 = vadd.f32 %v4064_v49, %v6914_v56  ;;  %v4135_v0 = vmul.f32 %v6914_v56, %v6914_v56  ;;  %v3532_v36 = vadd.f32 %v3531_v5, %v3322_v45 }
 0x57c   : > { %v4203_v2 = vadd.f32 %v4202_v11, %v4135_v0 }
 0x57d   : > { %v3740_v21 = vpop.f32.mrf.mxu0 }
 0x57e   : > { %v3741_v1 = vadd.f32 %v3740_v21, %v3532_v36 }
 0x580   : > { %v6919_v25 = vadd.f32 %v3741_v1, %v2809_v51 }
 0x582   : > { %v4066_v52 = vadd.f32 %v4065_v62, %v6919_v25  ;;  %v4136_v53 = vmul.f32 %v6919_v25, %v6919_v25 }
 0x584   : > { %v4067_v41 = vrot.slane %v4066_v52, 4  ;;  %v4204_v58 = vadd.f32 %v4203_v2, %v4136_v53 }
 0x586   : > { %v4068_v44 = vadd.f32 %v4067_v41, %v4066_v52  ;;  %v4205_v29 = vrot.slane %v4204_v58, 4 }
 0x588   : > { %v4069_v8 = vrot.slane %v4068_v44, 2  ;;  %v4206_v15 = vadd.f32 %v4205_v29, %v4204_v58 }
 0x58a   : > { %v4070_v37 = vadd.f32 %v4069_v8, %v4068_v44  ;;  %v4207_v16 = vrot.slane %v4206_v15, 2 }
 0x58c   : > { %v4071_v40 = vrot.slane %v4070_v37, 1  ;;  %v4208_v14 = vadd.f32 %v4207_v16, %v4206_v15 }
 0x58e   : > { %v4072_v49 = vadd.f32 %v4071_v40, %v4070_v37  ;;  %v4209_v48 = vrot.slane %v4208_v14, 1 }
 0x590   : > { %v4210_v47 = vadd.f32 %v4209_v48, %v4208_v14  ;;  %v6924_v7 = vmul.f32 0.00390625, %v4072_v49 }
 0x592   : > { %v4214_v26 = vmul.f32 0.00390625, %v4210_v47  ;;  %v4216_v22 = vmul.f32 %v6924_v7, %v6924_v7  ;;  %v4282_v32 = vsub.f32 %v6919_v25, %v6924_v7  ;;  %v4277_v51 = vsub.f32 %v6876_v35, %v6924_v7 }
 0x593   : > { %v4278_v54 = vsub.f32 %v6887_v20, %v6924_v7  ;;  %v4279_v4 = vsub.f32 %v6896_v46, %v6924_v7  ;;  %v4280_v45 = vsub.f32 %v6905_v3, %v6924_v7  ;;  %v4281_v5 = vsub.f32 %v6914_v56, %v6924_v7 }
 0x594   : > { %v4218_v38 = vsub.f32 %v4214_v26, %v4216_v22  ;;  %v4251_v2 = vsub.f32 %v6390_v17, %v6924_v7  ;;  %v4252_v21 = vsub.f32 %v6421_v27, %v6924_v7  ;;  %v4253_v1 = vsub.f32 %v6431_v43, %v6924_v7 }
 0x595   : > { %v4254_v25 = vsub.f32 %v6456_v6, %v6924_v7  ;;  %v4255_v53 = vsub.f32 %v6603_v34, %v6924_v7  ;;  %v4256_v41 = vsub.f32 %v6609_v50, %v6924_v7  ;;  %v4257_v58 = vsub.f32 %v6613_v28, %v6924_v7 }
 0x596   : > { %v4284_v11 = vadd.f32 1e-05, %v4218_v38  ;;  %v4258_v17 = vsub.f32 %v6629_v33, %v6924_v7  ;;  %v4259_v27 = vsub.f32 %v6651_v19, %v6924_v7  ;;  %v4260_v43 = vsub.f32 %v6668_v31, %v6924_v7 }
 0x597   : > { %v4261_v6 = vsub.f32 %v6675_v23, %v6924_v7  ;;  %v4262_v34 = vsub.f32 %v6681_v57, %v6924_v7  ;;  %v4263_v50 = vsub.f32 %v6687_v9, %v6924_v7  ;;  %v4264_v28 = vsub.f32 %v6695_v59, %v6924_v7 }
 0x598   : > { %4731 = vrsqrt.f32 %v4284_v11  ;;  %v4265_v33 = vsub.f32 %v6701_v63, %v6924_v7  ;;  %v4266_v19 = vsub.f32 %v6707_v24, %v6924_v7  ;;  %v4267_v31 = vsub.f32 %v6713_v42, %v6924_v7 }
 0x599   : > { %vm4301_vm5 = vweird.f32 %v4284_v11  ;;  %v4268_v57 = vsub.f32 %v6719_v18, %v6924_v7  ;;  %v4269_v9 = vsub.f32 %v6725_v10, %v6924_v7  ;;  %v4270_v59 = vsub.f32 %v6731_v12, %v6924_v7 }
 0x59a   : > { %v4271_v63 = vsub.f32 %v6739_v13, %v6924_v7  ;;  %v4272_v24 = vsub.f32 %v6841_v30, %v6924_v7  ;;  %v4273_v42 = vsub.f32 %v6849_v60, %v6924_v7  ;;  %v4274_v18 = vsub.f32 %v6858_v61, %v6924_v7 }
 0x59b   : > { %v4275_v10 = vsub.f32 %v6864_v39, %v6924_v7  ;;  %v4276_v8 = vsub.f32 %v6869_v55, %v6924_v7 }
 0x59e   : > { %v4732_v62 = vpop.eup %4731 }
 0x59f   : > { %v4296_v0 = vmul.f32 %v4732_v62, %v4284_v11  ;;  %vm4302_vm4 = vweird.f32 %v4732_v62 }
 0x5a0   : > { %vm4303_vm6 = vmor %vm4301_vm5, %vm4302_vm4 }
 0x5a1   : > { %v4297_v36 = vmul.f32 %v4732_v62, %v4296_v0 }
 0x5a3   : > { %v4298_v52 = vmul.f32 0.5, %v4297_v36 }
 0x5a5   : > { %v4299_v44 = vsub.f32 1.5, %v4298_v52 }
 0x5a7   : > { %v4300_v23 = vmul.f32 %v4732_v62, %v4299_v44 }
 0x5a9   : > { %v4304_v29 = vsel %vm4303_vm6, %v4732_v62, %v4300_v23 }
 0x5aa   : > { %v4368_v12 = vmul.f32 %v4304_v29, %v4282_v32  ;;  %v4337_v15 = vmul.f32 %v4304_v29, %v4251_v2  ;;  %v4338_v13 = vmul.f32 %v4304_v29, %v4252_v21  ;;  %v4339_v37 = vmul.f32 %v4304_v29, %v4253_v1 }
 0x5ab   : > { %v4340_v16 = vmul.f32 %v4304_v29, %v4254_v25  ;;  %v4341_v30 = vmul.f32 %v4304_v29, %v4255_v53  ;;  %v4342_v40 = vmul.f32 %v4304_v29, %v4256_v41  ;;  %v4343_v14 = vmul.f32 %v4304_v29, %v4257_v58 }
 0x5ac   : > { %v4432_v60 = vmax.f32 %v4368_v12, 0.0  ;;  %v4344_v49 = vmul.f32 %v4304_v29, %v4258_v17  ;;  %v4345_v48 = vmul.f32 %v4304_v29, %v4259_v27  ;;  %v4346_v47 = vmul.f32 %v4304_v29, %v4260_v43 }
 0x5ad   : > { %v4347_v61 = vmul.f32 %v4304_v29, %v4261_v6  ;;  %v4348_v26 = vmul.f32 %v4304_v29, %v4262_v34  ;;  %v4349_v22 = vmul.f32 %v4304_v29, %v4263_v50  ;;  %v4350_v39 = vmul.f32 %v4304_v29, %v4264_v28 }
 0x5ae   : > { %4496 = vst [vmem:[%s6517_s15 + $0x1f8] sm:$0xff] %v4432_v60  ;;  %v4351_v38 = vmul.f32 %v4304_v29, %v4265_v33  ;;  %v4352_v55 = vmul.f32 %v4304_v29, %v4266_v19  ;;  %v4353_v32 = vmul.f32 %v4304_v29, %v4267_v31  ;;  %v4354_v11 = vmul.f32 %v4304_v29, %v4268_v57 }
 0x5af   : > { %v4355_v62 = vmul.f32 %v4304_v29, %v4269_v9  ;;  %v4356_v0 = vmul.f32 %v4304_v29, %v4270_v59  ;;  %v4357_v36 = vmul.f32 %v4304_v29, %v4271_v63  ;;  %v4358_v2 = vmul.f32 %v4304_v29, %v4272_v24 }
 0x5b0   : > { %v4359_v21 = vmul.f32 %v4304_v29, %v4273_v42  ;;  %v4360_v1 = vmul.f32 %v4304_v29, %v4274_v18  ;;  %v4361_v25 = vmul.f32 %v4304_v29, %v4275_v10  ;;  %v6993_v52 = vmul.f32 %v4304_v29, %v4276_v8 }
 0x5b1   : > { %v6998_v53 = vmul.f32 %v4304_v29, %v4277_v51  ;;  %v7003_v41 = vmul.f32 %v4304_v29, %v4278_v54  ;;  %v7008_v58 = vmul.f32 %v4304_v29, %v4279_v4  ;;  %v7013_v17 = vmul.f32 %v4304_v29, %v4280_v45 }
 0x5b2   : > { %v7018_v35 = vmul.f32 %v4304_v29, %v4281_v5  ;;  %v4401_v20 = vmax.f32 %v4337_v15, 0.0  ;;  %v4402_v51 = vmax.f32 %v4338_v13, 0.0  ;;  %v4403_v54 = vmax.f32 %v4339_v37, 0.0 }
 0x5b3   : > { %v4404_v27 = vmax.f32 %v4340_v16, 0.0  ;;  %v4405_v46 = vmax.f32 %v4341_v30, 0.0  ;;  %v4406_v4 = vmax.f32 %v4342_v40, 0.0  ;;  %v4407_v3 = vmax.f32 %v4343_v14, 0.0 }
 0x5b4   : > { %4465 = vst [vmem:[%s6517_s15 + $0x100] sm:$0xff] %v4401_v20  ;;  %v4408_v45 = vmax.f32 %v4344_v49, 0.0  ;;  %v4409_v56 = vmax.f32 %v4345_v48, 0.0  ;;  %v4410_v7 = vmax.f32 %v4346_v47, 0.0  ;;  %v4411_v5 = vmax.f32 %v4347_v61, 0.0 }
 0x5b5   : > { %4466 = vst [vmem:[%s6517_s15 + $0x108] sm:$0xff] %v4402_v51  ;;  %v4412_v43 = vmax.f32 %v4348_v26, 0.0  ;;  %v4413_v6 = vmax.f32 %v4349_v22, 0.0  ;;  %v4414_v44 = vmax.f32 %v4350_v39, 0.0  ;;  %v4415_v34 = vmax.f32 %v4351_v38, 0.0 }
 0x5b6   : > { %4467 = vst [vmem:[%s6517_s15 + $0x110] sm:$0xff] %v4403_v54  ;;  %v4416_v50 = vmax.f32 %v4352_v55, 0.0  ;;  %v4417_v28 = vmax.f32 %v4353_v32, 0.0  ;;  %v4418_v33 = vmax.f32 %v4354_v11, 0.0  ;;  %v4419_v19 = vmax.f32 %v4355_v62, 0.0 }
 0x5b7   : > { %4468 = vst [vmem:[%s6517_s15 + $0x118] sm:$0xff] %v4404_v27  ;;  %v4420_v31 = vmax.f32 %v4356_v0, 0.0  ;;  %v4421_v23 = vmax.f32 %v4357_v36, 0.0  ;;  %v4422_v57 = vmax.f32 %v4358_v2, 0.0  ;;  %v4423_v9 = vmax.f32 %v4359_v21, 0.0 }
 0x5b8   : > { %4469 = vst [vmem:[%s6517_s15 + $0x120] sm:$0xff] %v4405_v46  ;;  %v4424_v59 = vmax.f32 %v4360_v1, 0.0  ;;  %v4425_v63 = vmax.f32 %v4361_v25, 0.0  ;;  %v4426_v24 = vmax.f32 %v6993_v52, 0.0  ;;  %v4427_v42 = vmax.f32 %v6998_v53, 0.0 }
 0x5b9   : > { %4470 = vst [vmem:[%s6517_s15 + $0x128] sm:$0xff] %v4406_v4  ;;  %v4428_v29 = vmax.f32 %v7003_v41, 0.0  ;;  %v4429_v18 = vmax.f32 %v7008_v58, 0.0  ;;  %v4430_v10 = vmax.f32 %v7013_v17, 0.0  ;;  %v4431_v8 = vmax.f32 %v7018_v35, 0.0 }
 0x5ba   : > { %4471 = vst [vmem:[%s6517_s15 + $0x130] sm:$0xff] %v4407_v3 }
 0x5bb   : > { %4472 = vst [vmem:[%s6517_s15 + $0x138] sm:$0xff] %v4408_v45 }
 0x5bc   : > { %4473 = vst [vmem:[%s6517_s15 + $0x140] sm:$0xff] %v4409_v56 }
 0x5bd   : > { %4474 = vst [vmem:[%s6517_s15 + $0x148] sm:$0xff] %v4410_v7 }
 0x5be   : > { %4475 = vst [vmem:[%s6517_s15 + $0x150] sm:$0xff] %v4411_v5 }
 0x5bf   : > { %4476 = vst [vmem:[%s6517_s15 + $0x158] sm:$0xff] %v4412_v43 }
 0x5c0   : > { %4477 = vst [vmem:[%s6517_s15 + $0x160] sm:$0xff] %v4413_v6 }
 0x5c1   : > { %4478 = vst [vmem:[%s6517_s15 + $0x168] sm:$0xff] %v4414_v44 }
 0x5c2   : > { %4479 = vst [vmem:[%s6517_s15 + $0x170] sm:$0xff] %v4415_v34 }
 0x5c3   : > { %4480 = vst [vmem:[%s6517_s15 + $0x178] sm:$0xff] %v4416_v50 }
 0x5c4   : > { %4481 = vst [vmem:[%s6517_s15 + $0x180] sm:$0xff] %v4417_v28 }
 0x5c5   : > { %4482 = vst [vmem:[%s6517_s15 + $0x188] sm:$0xff] %v4418_v33 }
 0x5c6   : > { %4483 = vst [vmem:[%s6517_s15 + $0x190] sm:$0xff] %v4419_v19 }
 0x5c7   : > { %4484 = vst [vmem:[%s6517_s15 + $0x198] sm:$0xff] %v4420_v31 }
 0x5c8   : > { %4485 = vst [vmem:[%s6517_s15 + $0x1a0] sm:$0xff] %v4421_v23 }
 0x5c9   : > { %4486 = vst [vmem:[%s6517_s15 + $0x1a8] sm:$0xff] %v4422_v57 }
 0x5ca   : > { %4487 = vst [vmem:[%s6517_s15 + $0x1b0] sm:$0xff] %v4423_v9 }
 0x5cb   : > { %4488 = vst [vmem:[%s6517_s15 + $0x1b8] sm:$0xff] %v4424_v59 }
 0x5cc   : > { %4489 = vst [vmem:[%s6517_s15 + $0x1c0] sm:$0xff] %v4425_v63 }
 0x5cd   : > { %4490 = vst [vmem:[%s6517_s15 + $0x1c8] sm:$0xff] %v4426_v24 }
 0x5ce   : > { %4491 = vst [vmem:[%s6517_s15 + $0x1d0] sm:$0xff] %v4427_v42 }
 0x5cf   : > { %4492 = vst [vmem:[%s6517_s15 + $0x1d8] sm:$0xff] %v4428_v29 }
 0x5d0   : > { %4493 = vst [vmem:[%s6517_s15 + $0x1e0] sm:$0xff] %v4429_v18 }
 0x5d1   : > { %4494 = vst [vmem:[%s6517_s15 + $0x1e8] sm:$0xff] %v4430_v10 }
 0x5d2   : > { %4495 = vst [vmem:[%s6517_s15 + $0x1f0] sm:$0xff] %v4431_v8 }
 0x5d3   : > { %4823 = shalt.err (!%p4820_p10)
}
 0x5d4   : > { %s4872_s5 = smov 128   ;;  %s4873_s30 = smov 8  }
 0x5d5   : > { %4673 = dma.vmem_to_hbm [thread:$0]  (%p4958_p3), %s4512_s13, 8192, %s4514_s17, %s4498_s18, %s4872_s5, %s4872_s5, %s4873_s30  }
 0x5d6 PF: > { %s4528_s6 = sand.u32 1, %s4854_s9   ;;  %p7529_p12 = scmp.ge.s32.totalorder %s4866_s12, 2 }
 0x5d7   : > { %s4529_s7 = scalar_lea.sflag [#allocation6], %s4528_s6 }
 0x5d8   : > { %p4684_p13 = pnand %p7529_p12, %p4924_p6 }
 0x5da   : > { %p4685_p0 = pneg %p4684_p13 }
 0x5dc   : > { %4849 = dma.done.wait (%p4685_p0), %s4529_s7, 8192  }
 0x5dd   : > { %4851 = vsyncadd (%p4685_p0), %s4529_s7, 4294959104  ;;  %p16_p5 = scmp.ge.s32.totalorder %s4942_s23, 4   ;;  %s7530_s9 = smov %s4858_s10 }
 0x5de   : > { %s7531_s10 = smov %s4862_s11  ;;  %s7532_s11 = smov %s4954_s28 }
 0x5df   : > { %s7533_s12 = smov %s4942_s23  ;;  %18 = sbr.rel (!%p16_p5) target bundleno = 6 (0x6), region = 82 }
 0x5e4   :  { %4535 = vsyncpa [#allocation5], 1 }
 0x5e5   :  { %4537 = vsyncpa [#allocation5 + $0x1], 1 }
 0x5e6   :  { %4538 = vsyncpa [#allocation8], 1 }
 0x5e7   :  { %4539 = vsyncpa [#allocation6], 1 }
 0x5e8   :  { %4541 = vsyncpa [#allocation6 + $0x1], 1 }

</bundles_post_ra>
